<compile_context>
chip_gen: v7x
topology: tpu7x:2x2x1
jax: 0.10.0
libtpu: 0.0.40
codegen_flags: <defaults>
</compile_context>

<pallas_src>
import math
import functools

import jax
import jax.numpy as jnp
from jax.experimental import pallas as pl
from jax.experimental.pallas import tpu as pltpu


NEG_INF = jnp.float32(-1e30)
LN_EPS = 1e-5


# ----------------------------------------------------------------------------
# In-kernel helpers
# ----------------------------------------------------------------------------

def _layernorm(x, g, b):
    mu = jnp.mean(x, axis=-1, keepdims=True)
    var = jnp.mean(jnp.square(x - mu), axis=-1, keepdims=True)
    return (x - mu) * jax.lax.rsqrt(var + LN_EPS) * g + b


# ----------------------------------------------------------------------------
# Fused attention kernel: LN -> QKV proj -> per-head softmax attn ->
#                         out-proj -> residual add  (one grid step per batch)
# ----------------------------------------------------------------------------

def _fused_attn_kernel(num_heads, scale, use_bias, want_probs, *refs):
    (q_ref, kv_ref, g_ref, beta_ref,
     wq_ref, bq_ref, wkv_ref, bkv_ref, wo_ref, bo_ref) = refs[:10]
    pos = 10
    bias_ref = None
    if use_bias:
        bias_ref = refs[pos]
        pos += 1
    o_ref = refs[pos]
    pos += 1
    probs_ref = refs[pos] if want_probs else None

    x_q = q_ref[...]                                   # (Lq, D), residual source
    ln_q = _layernorm(x_q, g_ref[...], beta_ref[...])  # (Lq, D)
    ln_kv = _layernorm(kv_ref[...], g_ref[...], beta_ref[...])  # (Lk, D)

    D = x_q.shape[-1]
    Dh = D // num_heads

    # Projections (fused K/V matmul: (Lk, D) @ (D, 2D)).
    q = (jnp.dot(ln_q, wq_ref[...], preferred_element_type=jnp.float32)
         + bq_ref[...]) * scale                         # (Lq, D)
    kv = (jnp.dot(ln_kv, wkv_ref[...], preferred_element_type=jnp.float32)
          + bkv_ref[...])                               # (Lk, 2D)
    k = kv[:, :D]
    v = kv[:, D:]

    ctx_heads = []
    probs_acc = None
    for h in range(num_heads):                          # static unroll (small H)
        sl = slice(h * Dh, (h + 1) * Dh)
        q_h = q[:, sl]
        k_h = k[:, sl]
        v_h = v[:, sl]
        s = jax.lax.dot_general(q_h, k_h, (((1,), (1,)), ((), ())),
                                preferred_element_type=jnp.float32)  # (Lq, Lk)
        if use_bias:
            s = s + bias_ref[...]                       # (1, Lk) broadcast
        m = jnp.max(s, axis=-1, keepdims=True)
        e = jnp.exp(s - m)
        p = e * pl.reciprocal(jnp.sum(e, axis=-1, keepdims=True), approx=True)
        if want_probs:
            probs_acc = p if probs_acc is None else probs_acc + p
        ctx_heads.append(jnp.dot(p, v_h, preferred_element_type=jnp.float32))

    ctx = jnp.concatenate(ctx_heads, axis=-1)           # (Lq, D)
    out = jnp.dot(ctx, wo_ref[...], preferred_element_type=jnp.float32) + bo_ref[...]
    o_ref[...] = x_q + out                              # fused residual add

    if want_probs:
        probs_ref[...] = probs_acc * (1.0 / num_heads)  # head-averaged


def fused_attention(q_src, kv_src, ln_g, ln_b, p, num_heads,
                    key_bias=None, want_probs=False):
    """q_src: (B, Lq, D) pre-LN residual stream, kv_src: (B, Lk, D).

    Returns q_src + MHA(LN(q_src), LN(kv_src), LN(kv_src)); optionally the
    head-averaged attention weights (B, Lq, Lk)."""
    B, Lq, D = q_src.shape
    Lk = kv_src.shape[1]
    scale = 1.0 / math.sqrt(D // num_heads)
    use_bias = key_bias is not None

    kernel = functools.partial(_fused_attn_kernel, num_heads, scale,
                               use_bias, want_probs)

    in_specs = [
        pl.BlockSpec((None, Lq, D), lambda b: (b, 0, 0)),   # q / residual
        pl.BlockSpec((None, Lk, D), lambda b: (b, 0, 0)),   # kv source
        pl.BlockSpec((1, D), lambda b: (0, 0)),             # LN gamma
        pl.BlockSpec((1, D), lambda b: (0, 0)),             # LN beta
        pl.BlockSpec((D, D), lambda b: (0, 0)),             # W_q
        pl.BlockSpec((1, D), lambda b: (0, 0)),             # b_q
        pl.BlockSpec((D, 2 * D), lambda b: (0, 0)),         # W_kv (fused K|V)
        pl.BlockSpec((1, 2 * D), lambda b: (0, 0)),         # b_kv
        pl.BlockSpec((D, D), lambda b: (0, 0)),             # W_o
        pl.BlockSpec((1, D), lambda b: (0, 0)),             # b_o
    ]
    inputs = [q_src, kv_src, ln_g.reshape(1, D), ln_b.reshape(1, D),
              p["w_q"], p["b_q"].reshape(1, D),
              p["w_kv"], p["b_kv"].reshape(1, 2 * D),
              p["w_o"], p["b_o"].reshape(1, D)]

    if use_bias:
        in_specs.append(pl.BlockSpec((None, 1, Lk), lambda b: (b, 0, 0)))
        inputs.append(key_bias.reshape(B, 1, Lk))

    out_specs = [pl.BlockSpec((None, Lq, D), lambda b: (b, 0, 0))]
    out_shape = [jax.ShapeDtypeStruct((B, Lq, D), jnp.float32)]
    if want_probs:
        out_specs.append(pl.BlockSpec((None, Lq, Lk), lambda b: (b, 0, 0)))
        out_shape.append(jax.ShapeDtypeStruct((B, Lq, Lk), jnp.float32))

    results = pl.pallas_call(
        kernel,
        grid=(B,),
        in_specs=in_specs,
        out_specs=out_specs,
        out_shape=out_shape,
        compiler_params=pltpu.CompilerParams(
            dimension_semantics=("parallel",)),
    )(*inputs)

    if want_probs:
        return results[0], results[1]
    return results[0]


# ----------------------------------------------------------------------------
# Fused MLP kernel: LN -> c_fc -> QuickGELU -> c_proj -> residual add
# ----------------------------------------------------------------------------

def _fused_mlp_kernel(x_ref, g_ref, b_ref, wfc_ref, bfc_ref, wpj_ref, bpj_ref,
                      o_ref):
    x = x_ref[...]                                       # (L, D)
    h = _layernorm(x, g_ref[...], b_ref[...])
    h = jnp.dot(h, wfc_ref[...], preferred_element_type=jnp.float32) + bfc_ref[...]
    h = h * jax.nn.sigmoid(1.702 * h)                    # QuickGELU
    h = jnp.dot(h, wpj_ref[...], preferred_element_type=jnp.float32) + bpj_ref[...]
    o_ref[...] = x + h                                   # fused residual add


def fused_mlp(x, ln_g, ln_b, p):
    B, L, D = x.shape
    Dff = p["fc_w"].shape[1]
    return pl.pallas_call(
        _fused_mlp_kernel,
        grid=(B,),
        in_specs=[
            pl.BlockSpec((None, L, D), lambda b: (b, 0, 0)),
            pl.BlockSpec((1, D), lambda b: (0, 0)),
            pl.BlockSpec((1, D), lambda b: (0, 0)),
            pl.BlockSpec((D, Dff), lambda b: (0, 0)),
            pl.BlockSpec((1, Dff), lambda b: (0, 0)),
            pl.BlockSpec((Dff, D), lambda b: (0, 0)),
            pl.BlockSpec((1, D), lambda b: (0, 0)),
        ],
        out_specs=pl.BlockSpec((None, L, D), lambda b: (b, 0, 0)),
        out_shape=jax.ShapeDtypeStruct((B, L, D), jnp.float32),
        compiler_params=pltpu.CompilerParams(
            dimension_semantics=("parallel",)),
    )(x, ln_g.reshape(1, D), ln_b.reshape(1, D),
      p["fc_w"], p["fc_b"].reshape(1, Dff),
      p["proj_w"], p["proj_b"].reshape(1, D))


# ----------------------------------------------------------------------------
# HOI residual attention block + transformer (batch-first internally)
# ----------------------------------------------------------------------------

def hoi_block_forward(image, hoi, key_bias_full, key_bias_img, p, num_heads):
    """image: (B, L_img, D), hoi: (B, L_hoi, D) — batch-first."""
    # [HOI] x [PATCH] cross attention (ln_1 on both streams), residual fused.
    hoi, attn_map = fused_attention(hoi, image, p["ln1_g"], p["ln1_b"],
                                    p["cross_attn"], num_heads,
                                    key_bias=key_bias_full, want_probs=True)
    # hoi = hoi + mlp(ln_2(hoi))
    hoi = fused_mlp(hoi, p["ln2_g"], p["ln2_b"], p["mlp"])

    # [CLS + PATCH] self attention on ln_1(image) (uses original image), MLP.
    image = fused_attention(image, image, p["ln1_g"], p["ln1_b"],
                            p["attn"], num_heads,
                            key_bias=key_bias_img, want_probs=False)
    image = fused_mlp(image, p["ln2_g"], p["ln2_b"], p["mlp"])

    # [HOI] x [CLS + HOI] sequential parsing (parse_attn_mask is None).
    x = jnp.concatenate([image[:, 0:1], hoi], axis=1)
    x = fused_attention(x, x, p["hoi_ln1_g"], p["hoi_ln1_b"],
                        p["parse_attn"], num_heads,
                        key_bias=None, want_probs=False)
    hoi = x[:, 1:]
    return image, hoi, attn_map


def hoi_transformer_forward(image, hoi, mask, params, num_heads):
    """Interface matches PyTorch: image (L_img, B, D), hoi (L_hoi, B, D),
    mask (B, L_img) bool key_padding_mask. Returns seq-first outputs."""
    image = jnp.transpose(image, (1, 0, 2))              # -> (B, L_img, D)
    hoi = jnp.transpose(hoi, (1, 0, 2))                  # -> (B, L_hoi, D)
    B, L_img, _ = image.shape

    # Build the additive key biases once (constant across layers).
    key_bias_full = jnp.where(mask, NEG_INF, 0.0).astype(jnp.float32)
    key_bias_full = key_bias_full.reshape(B, 1, L_img)
    image_mask = mask.at[:, 0].set(False)
    key_bias_img = jnp.where(image_mask, NEG_INF, 0.0).astype(jnp.float32)
    key_bias_img = key_bias_img.reshape(B, 1, L_img)

    attn_map = None
    for layer_params in params:
        image, hoi, attn_map = hoi_block_forward(
            image, hoi, key_bias_full, key_bias_img, layer_params, num_heads)

    return (jnp.transpose(image, (1, 0, 2)),
            jnp.transpose(hoi, (1, 0, 2)),
            attn_map)                                    # (B, L_hoi, L_img)


# ----------------------------------------------------------------------------
# Parameter init (torch layout) + one-time conversion to matmul-ready layout
# ----------------------------------------------------------------------------

def init_mha_params(key, D):
    k1, k2, k3, k4 = jax.random.split(key, 4)
    return {
        "in_w": jax.random.normal(k1, (3 * D, D), jnp.float32) * 0.02,
        "in_b": jax.random.normal(k2, (3 * D,), jnp.float32) * 0.02,
        "out_w": jax.random.normal(k3, (D, D), jnp.float32) * 0.02,
        "out_b": jax.random.normal(k4, (D,), jnp.float32) * 0.02,
    }


def init_block_params(key, D):
    keys = jax.random.split(key, 8)
    return {
        "parse_attn": init_mha_params(keys[0], D),
        "cross_attn": init_mha_params(keys[1], D),
        "attn": init_mha_params(keys[2], D),
        "ln1_g": jnp.ones((D,), jnp.float32),
        "ln1_b": jnp.zeros((D,), jnp.float32),
        "ln2_g": jnp.ones((D,), jnp.float32),
        "ln2_b": jnp.zeros((D,), jnp.float32),
        "hoi_ln1_g": jnp.ones((D,), jnp.float32),
        "hoi_ln1_b": jnp.zeros((D,), jnp.float32),
        "mlp": {
            "fc_w": jax.random.normal(keys[3], (4 * D, D), jnp.float32) * 0.02,
            "fc_b": jax.random.normal(keys[4], (4 * D,), jnp.float32) * 0.02,
            "proj_w": jax.random.normal(keys[5], (D, 4 * D), jnp.float32) * 0.02,
            "proj_b": jax.random.normal(keys[6], (D,), jnp.float32) * 0.02,
        },
    }


def prepare_mha_params(p, D):
    # torch: q = x @ in_w[:D].T + in_b[:D]; k|v fused into one (D, 2D) matmul.
    return {
        "w_q": p["in_w"][:D].T,           # (D, D)
        "b_q": p["in_b"][:D],
        "w_kv": p["in_w"][D:].T,          # (D, 2D)
        "b_kv": p["in_b"][D:],
        "w_o": p["out_w"].T,              # (D, D)
        "b_o": p["out_b"],
    }


def prepare_block_params(p, D):
    return {
        "cross_attn": prepare_mha_params(p["cross_attn"], D),
        "attn": prepare_mha_params(p["attn"], D),
        "parse_attn": prepare_mha_params(p["parse_attn"], D),
        "ln1_g": p["ln1_g"], "ln1_b": p["ln1_b"],
        "ln2_g": p["ln2_g"], "ln2_b": p["ln2_b"],
        "hoi_ln1_g": p["hoi_ln1_g"], "hoi_ln1_b": p["hoi_ln1_b"],
        "mlp": {
            "fc_w": p["mlp"]["fc_w"].T,       # (D, 4D)
            "fc_b": p["mlp"]["fc_b"],
            "proj_w": p["mlp"]["proj_w"].T,   # (4D, D)
            "proj_b": p["mlp"]["proj_b"],
        },
    }


# ----------------------------------------------------------------------------
# Main
# ----------------------------------------------------------------------------

if __name__ == "__main__":
    WIDTH = 32       # d_model
    LAYERS = 2
    HEADS = 4
    B = 2
    L_IMG = 17       # CLS + 16 patches
    L_HOI = 8

    root = jax.random.PRNGKey(0)
    k_img, k_hoi, k_params = jax.random.split(root, 3)

    image = jax.random.normal(k_img, (L_IMG, B, WIDTH), jnp.float32)
    hoi = jax.random.normal(k_hoi, (L_HOI, B, WIDTH), jnp.float32)

    # key_padding_mask: True = padded key position (batch 1 has 3 padded patches)
    mask = jnp.zeros((B, L_IMG), dtype=bool)
    mask = mask.at[1, L_IMG - 3:].set(True)

    layer_keys = jax.random.split(k_params, LAYERS)
    params = [prepare_block_params(init_block_params(k, WIDTH), WIDTH)
              for k in layer_keys]

    fwd = jax.jit(functools.partial(hoi_transformer_forward, num_heads=HEADS))
    image_out, hoi_out, attn_map = fwd(image, hoi, mask, params)
    jax.block_until_ready((image_out, hoi_out, attn_map))

    assert image_out.shape == (L_IMG, B, WIDTH)
    assert hoi_out.shape == (L_HOI, B, WIDTH)
    assert attn_map.shape == (B, L_HOI, L_IMG)
    assert bool(jnp.all(jnp.isfinite(image_out)))
    assert bool(jnp.all(jnp.isfinite(hoi_out)))
    print("KERNEL_OK")
</pallas_src>

<mosaic_0001>
module attributes {stable_mosaic.version = 11 : i64} {
  func.func @_fused_attn_kernel(%arg0: i32, %arg1: memref<1x17x32xf32, #tpu.memory_space<vmem>>, %arg2: memref<1x17x32xf32, #tpu.memory_space<vmem>>, %arg3: memref<1x32xf32, #tpu.memory_space<vmem>>, %arg4: memref<1x32xf32, #tpu.memory_space<vmem>>, %arg5: memref<32x32xf32, #tpu.memory_space<vmem>>, %arg6: memref<1x32xf32, #tpu.memory_space<vmem>>, %arg7: memref<32x64xf32, #tpu.memory_space<vmem>>, %arg8: memref<1x64xf32, #tpu.memory_space<vmem>>, %arg9: memref<32x32xf32, #tpu.memory_space<vmem>>, %arg10: memref<1x32xf32, #tpu.memory_space<vmem>>, %arg11: memref<1x1x17xf32, #tpu.memory_space<vmem>>, %arg12: memref<1x17x32xf32, #tpu.memory_space<vmem>>) attributes {dimension_semantics = [#tpu.dimension_semantics<parallel>], iteration_bounds = array<i64: 2>, scalar_prefetch = 0 : i64, scratch_operands = 0 : i64, tpu.core_type = #tpu.core_type<tc>, window_params = [{transform_indices = @transform_0, window_bounds = array<i64: 1, 17, 32>}, {transform_indices = @transform_1, window_bounds = array<i64: 1, 17, 32>}, {pipeline_mode = #tpu.pipeline_mode<synchronous>, transform_indices = @transform_2, window_bounds = array<i64: 1, 32>}, {pipeline_mode = #tpu.pipeline_mode<synchronous>, transform_indices = @transform_3, window_bounds = array<i64: 1, 32>}, {pipeline_mode = #tpu.pipeline_mode<synchronous>, transform_indices = @transform_4, window_bounds = array<i64: 32, 32>}, {pipeline_mode = #tpu.pipeline_mode<synchronous>, transform_indices = @transform_5, window_bounds = array<i64: 1, 32>}, {pipeline_mode = #tpu.pipeline_mode<synchronous>, transform_indices = @transform_6, window_bounds = array<i64: 32, 64>}, {pipeline_mode = #tpu.pipeline_mode<synchronous>, transform_indices = @transform_7, window_bounds = array<i64: 1, 64>}, {pipeline_mode = #tpu.pipeline_mode<synchronous>, transform_indices = @transform_8, window_bounds = array<i64: 32, 32>}, {pipeline_mode = #tpu.pipeline_mode<synchronous>, transform_indices = @transform_9, window_bounds = array<i64: 1, 32>}, {transform_indices = @transform_10, window_bounds = array<i64: 1, 1, 17>}, {transform_indices = @transform_11, window_bounds = array<i64: 1, 17, 32>}]} {
    %c0 = arith.constant 0 : index
    %c0_0 = arith.constant 0 : index
    %c0_1 = arith.constant 0 : index
    %0 = vector.load %arg1[%c0, %c0_0, %c0_1] : memref<1x17x32xf32, #tpu.memory_space<vmem>>, vector<1x17x32xf32>
    %1 = vector.shape_cast %0 : vector<1x17x32xf32> to vector<17x32xf32>
    %c0_2 = arith.constant 0 : index
    %c0_3 = arith.constant 0 : index
    %2 = vector.load %arg3[%c0_2, %c0_3] : memref<1x32xf32, #tpu.memory_space<vmem>>, vector<1x32xf32>
    %c0_4 = arith.constant 0 : index
    %c0_5 = arith.constant 0 : index
    %3 = vector.load %arg4[%c0_4, %c0_5] : memref<1x32xf32, #tpu.memory_space<vmem>>, vector<1x32xf32>
    %cst = arith.constant dense<0.000000e+00> : vector<17xf32>
    %4 = vector.multi_reduction <add>, %1, %cst [1] : vector<17x32xf32> to vector<17xf32>
    %5 = vector.shape_cast %4 : vector<17xf32> to vector<17x1xf32>
    %cst_6 = arith.constant 3.200000e+01 : f32
    %6 = vector.broadcast %cst_6 : f32 to vector<17x1xf32>
    %7 = arith.divf %5, %6 : vector<17x1xf32>
    %8 = vector.broadcast %7 : vector<17x1xf32> to vector<17x32xf32>
    %9 = arith.subf %1, %8 : vector<17x32xf32>
    %10 = arith.mulf %9, %9 : vector<17x32xf32>
    %cst_7 = arith.constant dense<0.000000e+00> : vector<17xf32>
    %11 = vector.multi_reduction <add>, %10, %cst_7 [1] : vector<17x32xf32> to vector<17xf32>
    %12 = vector.shape_cast %11 : vector<17xf32> to vector<17x1xf32>
    %cst_8 = arith.constant 3.200000e+01 : f32
    %13 = vector.broadcast %cst_8 : f32 to vector<17x1xf32>
    %14 = arith.divf %12, %13 : vector<17x1xf32>
    %15 = vector.broadcast %7 : vector<17x1xf32> to vector<17x32xf32>
    %16 = arith.subf %1, %15 : vector<17x32xf32>
    %cst_9 = arith.constant 9.99999974E-6 : f32
    %17 = vector.broadcast %cst_9 : f32 to vector<17x1xf32>
    %18 = arith.addf %14, %17 : vector<17x1xf32>
    %19 = math.rsqrt %18 : vector<17x1xf32>
    %20 = vector.broadcast %19 : vector<17x1xf32> to vector<17x32xf32>
    %21 = arith.mulf %16, %20 : vector<17x32xf32>
    %22 = vector.broadcast %2 : vector<1x32xf32> to vector<17x32xf32>
    %23 = arith.mulf %21, %22 : vector<17x32xf32>
    %24 = vector.broadcast %3 : vector<1x32xf32> to vector<17x32xf32>
    %25 = arith.addf %23, %24 : vector<17x32xf32>
    %c0_10 = arith.constant 0 : index
    %c0_11 = arith.constant 0 : index
    %c0_12 = arith.constant 0 : index
    %26 = vector.load %arg2[%c0_10, %c0_11, %c0_12] : memref<1x17x32xf32, #tpu.memory_space<vmem>>, vector<1x17x32xf32>
    %27 = vector.shape_cast %26 : vector<1x17x32xf32> to vector<17x32xf32>
    %c0_13 = arith.constant 0 : index
    %c0_14 = arith.constant 0 : index
    %28 = vector.load %arg3[%c0_13, %c0_14] : memref<1x32xf32, #tpu.memory_space<vmem>>, vector<1x32xf32>
    %c0_15 = arith.constant 0 : index
    %c0_16 = arith.constant 0 : index
    %29 = vector.load %arg4[%c0_15, %c0_16] : memref<1x32xf32, #tpu.memory_space<vmem>>, vector<1x32xf32>
    %cst_17 = arith.constant dense<0.000000e+00> : vector<17xf32>
    %30 = vector.multi_reduction <add>, %27, %cst_17 [1] : vector<17x32xf32> to vector<17xf32>
    %31 = vector.shape_cast %30 : vector<17xf32> to vector<17x1xf32>
    %cst_18 = arith.constant 3.200000e+01 : f32
    %32 = vector.broadcast %cst_18 : f32 to vector<17x1xf32>
    %33 = arith.divf %31, %32 : vector<17x1xf32>
    %34 = vector.broadcast %33 : vector<17x1xf32> to vector<17x32xf32>
    %35 = arith.subf %27, %34 : vector<17x32xf32>
    %36 = arith.mulf %35, %35 : vector<17x32xf32>
    %cst_19 = arith.constant dense<0.000000e+00> : vector<17xf32>
    %37 = vector.multi_reduction <add>, %36, %cst_19 [1] : vector<17x32xf32> to vector<17xf32>
    %38 = vector.shape_cast %37 : vector<17xf32> to vector<17x1xf32>
    %cst_20 = arith.constant 3.200000e+01 : f32
    %39 = vector.broadcast %cst_20 : f32 to vector<17x1xf32>
    %40 = arith.divf %38, %39 : vector<17x1xf32>
    %41 = vector.broadcast %33 : vector<17x1xf32> to vector<17x32xf32>
    %42 = arith.subf %27, %41 : vector<17x32xf32>
    %cst_21 = arith.constant 9.99999974E-6 : f32
    %43 = vector.broadcast %cst_21 : f32 to vector<17x1xf32>
    %44 = arith.addf %40, %43 : vector<17x1xf32>
    %45 = math.rsqrt %44 : vector<17x1xf32>
    %46 = vector.broadcast %45 : vector<17x1xf32> to vector<17x32xf32>
    %47 = arith.mulf %42, %46 : vector<17x32xf32>
    %48 = vector.broadcast %28 : vector<1x32xf32> to vector<17x32xf32>
    %49 = arith.mulf %47, %48 : vector<17x32xf32>
    %50 = vector.broadcast %29 : vector<1x32xf32> to vector<17x32xf32>
    %51 = arith.addf %49, %50 : vector<17x32xf32>
    %c0_22 = arith.constant 0 : index
    %c0_23 = arith.constant 0 : index
    %52 = vector.load %arg5[%c0_22, %c0_23] : memref<32x32xf32, #tpu.memory_space<vmem>>, vector<32x32xf32>
    %cst_24 = arith.constant dense<0.000000e+00> : vector<17x32xf32>
    %53 = tpu.matmul %25, %52, %cst_24 {dimension_numbers = #tpu.dot_dimension_numbers<[1], [0], [0], [1], [0, 0, 1, 1], [], []>} : vector<17x32xf32>, vector<32x32xf32>, vector<17x32xf32> -> vector<17x32xf32>
    %c0_25 = arith.constant 0 : index
    %c0_26 = arith.constant 0 : index
    %54 = vector.load %arg6[%c0_25, %c0_26] : memref<1x32xf32, #tpu.memory_space<vmem>>, vector<1x32xf32>
    %55 = vector.broadcast %54 : vector<1x32xf32> to vector<17x32xf32>
    %56 = arith.addf %53, %55 : vector<17x32xf32>
    %cst_27 = arith.constant 0.353553385 : f32
    %57 = vector.broadcast %cst_27 : f32 to vector<17x32xf32>
    %58 = arith.mulf %56, %57 : vector<17x32xf32>
    %c0_28 = arith.constant 0 : index
    %c0_29 = arith.constant 0 : index
    %59 = vector.load %arg7[%c0_28, %c0_29] : memref<32x64xf32, #tpu.memory_space<vmem>>, vector<32x64xf32>
    %cst_30 = arith.constant dense<0.000000e+00> : vector<17x64xf32>
    %60 = tpu.matmul %51, %59, %cst_30 {dimension_numbers = #tpu.dot_dimension_numbers<[1], [0], [0], [1], [0, 0, 1, 1], [], []>} : vector<17x32xf32>, vector<32x64xf32>, vector<17x64xf32> -> vector<17x64xf32>
    %c0_31 = arith.constant 0 : index
    %c0_32 = arith.constant 0 : index
    %61 = vector.load %arg8[%c0_31, %c0_32] : memref<1x64xf32, #tpu.memory_space<vmem>>, vector<1x64xf32>
    %62 = vector.broadcast %61 : vector<1x64xf32> to vector<17x64xf32>
    %63 = arith.addf %60, %62 : vector<17x64xf32>
    %64 = vector.extract_strided_slice %63 {offsets = [0, 0], sizes = [17, 32], strides = [1, 1]} : vector<17x64xf32> to vector<17x32xf32>
    %65 = vector.extract_strided_slice %63 {offsets = [0, 32], sizes = [17, 32], strides = [1, 1]} : vector<17x64xf32> to vector<17x32xf32>
    %66 = vector.extract_strided_slice %58 {offsets = [0, 0], sizes = [17, 8], strides = [1, 1]} : vector<17x32xf32> to vector<17x8xf32>
    %67 = vector.extract_strided_slice %64 {offsets = [0, 0], sizes = [17, 8], strides = [1, 1]} : vector<17x32xf32> to vector<17x8xf32>
    %68 = vector.extract_strided_slice %65 {offsets = [0, 0], sizes = [17, 8], strides = [1, 1]} : vector<17x32xf32> to vector<17x8xf32>
    %cst_33 = arith.constant dense<0.000000e+00> : vector<17x17xf32>
    %69 = tpu.matmul %66, %67, %cst_33 {dimension_numbers = #tpu.dot_dimension_numbers<[1], [1], [0], [0], [0, 0, 1, 0], [], []>} : vector<17x8xf32>, vector<17x8xf32>, vector<17x17xf32> -> vector<17x17xf32>
    %c0_34 = arith.constant 0 : index
    %c0_35 = arith.constant 0 : index
    %c0_36 = arith.constant 0 : index
    %70 = vector.load %arg11[%c0_34, %c0_35, %c0_36] : memref<1x1x17xf32, #tpu.memory_space<vmem>>, vector<1x1x17xf32>
    %71 = vector.shape_cast %70 : vector<1x1x17xf32> to vector<1x17xf32>
    %72 = vector.broadcast %71 : vector<1x17xf32> to vector<17x17xf32>
    %73 = arith.addf %69, %72 : vector<17x17xf32>
    %cst_37 = arith.constant dense<0xFF800000> : vector<17xf32>
    %74 = vector.multi_reduction <maximumf>, %73, %cst_37 [1] : vector<17x17xf32> to vector<17xf32>
    %75 = vector.shape_cast %74 : vector<17xf32> to vector<17x1xf32>
    %76 = vector.broadcast %75 : vector<17x1xf32> to vector<17x17xf32>
    %77 = arith.subf %73, %76 : vector<17x17xf32>
    %78 = math.exp %77 : vector<17x17xf32>
    %cst_38 = arith.constant dense<0.000000e+00> : vector<17xf32>
    %79 = vector.multi_reduction <add>, %78, %cst_38 [1] : vector<17x17xf32> to vector<17xf32>
    %80 = vector.shape_cast %79 : vector<17xf32> to vector<17x1xf32>
    %81 = tpu.reciprocal %80 {approx = true} : vector<17x1xf32> -> vector<17x1xf32>
    %82 = vector.broadcast %81 : vector<17x1xf32> to vector<17x17xf32>
    %83 = arith.mulf %78, %82 : vector<17x17xf32>
    %cst_39 = arith.constant dense<0.000000e+00> : vector<17x8xf32>
    %84 = tpu.matmul %83, %68, %cst_39 {dimension_numbers = #tpu.dot_dimension_numbers<[1], [0], [0], [1], [0, 0, 1, 1], [], []>} : vector<17x17xf32>, vector<17x8xf32>, vector<17x8xf32> -> vector<17x8xf32>
    %85 = vector.extract_strided_slice %58 {offsets = [0, 8], sizes = [17, 8], strides = [1, 1]} : vector<17x32xf32> to vector<17x8xf32>
    %86 = vector.extract_strided_slice %64 {offsets = [0, 8], sizes = [17, 8], strides = [1, 1]} : vector<17x32xf32> to vector<17x8xf32>
    %87 = vector.extract_strided_slice %65 {offsets = [0, 8], sizes = [17, 8], strides = [1, 1]} : vector<17x32xf32> to vector<17x8xf32>
    %cst_40 = arith.constant dense<0.000000e+00> : vector<17x17xf32>
    %88 = tpu.matmul %85, %86, %cst_40 {dimension_numbers = #tpu.dot_dimension_numbers<[1], [1], [0], [0], [0, 0, 1, 0], [], []>} : vector<17x8xf32>, vector<17x8xf32>, vector<17x17xf32> -> vector<17x17xf32>
    %c0_41 = arith.constant 0 : index
    %c0_42 = arith.constant 0 : index
    %c0_43 = arith.constant 0 : index
    %89 = vector.load %arg11[%c0_41, %c0_42, %c0_43] : memref<1x1x17xf32, #tpu.memory_space<vmem>>, vector<1x1x17xf32>
    %90 = vector.shape_cast %89 : vector<1x1x17xf32> to vector<1x17xf32>
    %91 = vector.broadcast %90 : vector<1x17xf32> to vector<17x17xf32>
    %92 = arith.addf %88, %91 : vector<17x17xf32>
    %cst_44 = arith.constant dense<0xFF800000> : vector<17xf32>
    %93 = vector.multi_reduction <maximumf>, %92, %cst_44 [1] : vector<17x17xf32> to vector<17xf32>
    %94 = vector.shape_cast %93 : vector<17xf32> to vector<17x1xf32>
    %95 = vector.broadcast %94 : vector<17x1xf32> to vector<17x17xf32>
    %96 = arith.subf %92, %95 : vector<17x17xf32>
    %97 = math.exp %96 : vector<17x17xf32>
    %cst_45 = arith.constant dense<0.000000e+00> : vector<17xf32>
    %98 = vector.multi_reduction <add>, %97, %cst_45 [1] : vector<17x17xf32> to vector<17xf32>
    %99 = vector.shape_cast %98 : vector<17xf32> to vector<17x1xf32>
    %100 = tpu.reciprocal %99 {approx = true} : vector<17x1xf32> -> vector<17x1xf32>
    %101 = vector.broadcast %100 : vector<17x1xf32> to vector<17x17xf32>
    %102 = arith.mulf %97, %101 : vector<17x17xf32>
    %cst_46 = arith.constant dense<0.000000e+00> : vector<17x8xf32>
    %103 = tpu.matmul %102, %87, %cst_46 {dimension_numbers = #tpu.dot_dimension_numbers<[1], [0], [0], [1], [0, 0, 1, 1], [], []>} : vector<17x17xf32>, vector<17x8xf32>, vector<17x8xf32> -> vector<17x8xf32>
    %104 = vector.extract_strided_slice %58 {offsets = [0, 16], sizes = [17, 8], strides = [1, 1]} : vector<17x32xf32> to vector<17x8xf32>
    %105 = vector.extract_strided_slice %64 {offsets = [0, 16], sizes = [17, 8], strides = [1, 1]} : vector<17x32xf32> to vector<17x8xf32>
    %106 = vector.extract_strided_slice %65 {offsets = [0, 16], sizes = [17, 8], strides = [1, 1]} : vector<17x32xf32> to vector<17x8xf32>
    %cst_47 = arith.constant dense<0.000000e+00> : vector<17x17xf32>
    %107 = tpu.matmul %104, %105, %cst_47 {dimension_numbers = #tpu.dot_dimension_numbers<[1], [1], [0], [0], [0, 0, 1, 0], [], []>} : vector<17x8xf32>, vector<17x8xf32>, vector<17x17xf32> -> vector<17x17xf32>
    %c0_48 = arith.constant 0 : index
    %c0_49 = arith.constant 0 : index
    %c0_50 = arith.constant 0 : index
    %108 = vector.load %arg11[%c0_48, %c0_49, %c0_50] : memref<1x1x17xf32, #tpu.memory_space<vmem>>, vector<1x1x17xf32>
    %109 = vector.shape_cast %108 : vector<1x1x17xf32> to vector<1x17xf32>
    %110 = vector.broadcast %109 : vector<1x17xf32> to vector<17x17xf32>
    %111 = arith.addf %107, %110 : vector<17x17xf32>
    %cst_51 = arith.constant dense<0xFF800000> : vector<17xf32>
    %112 = vector.multi_reduction <maximumf>, %111, %cst_51 [1] : vector<17x17xf32> to vector<17xf32>
    %113 = vector.shape_cast %112 : vector<17xf32> to vector<17x1xf32>
    %114 = vector.broadcast %113 : vector<17x1xf32> to vector<17x17xf32>
    %115 = arith.subf %111, %114 : vector<17x17xf32>
    %116 = math.exp %115 : vector<17x17xf32>
    %cst_52 = arith.constant dense<0.000000e+00> : vector<17xf32>
    %117 = vector.multi_reduction <add>, %116, %cst_52 [1] : vector<17x17xf32> to vector<17xf32>
    %118 = vector.shape_cast %117 : vector<17xf32> to vector<17x1xf32>
    %119 = tpu.reciprocal %118 {approx = true} : vector<17x1xf32> -> vector<17x1xf32>
    %120 = vector.broadcast %119 : vector<17x1xf32> to vector<17x17xf32>
    %121 = arith.mulf %116, %120 : vector<17x17xf32>
    %cst_53 = arith.constant dense<0.000000e+00> : vector<17x8xf32>
    %122 = tpu.matmul %121, %106, %cst_53 {dimension_numbers = #tpu.dot_dimension_numbers<[1], [0], [0], [1], [0, 0, 1, 1], [], []>} : vector<17x17xf32>, vector<17x8xf32>, vector<17x8xf32> -> vector<17x8xf32>
    %123 = vector.extract_strided_slice %58 {offsets = [0, 24], sizes = [17, 8], strides = [1, 1]} : vector<17x32xf32> to vector<17x8xf32>
    %124 = vector.extract_strided_slice %64 {offsets = [0, 24], sizes = [17, 8], strides = [1, 1]} : vector<17x32xf32> to vector<17x8xf32>
    %125 = vector.extract_strided_slice %65 {offsets = [0, 24], sizes = [17, 8], strides = [1, 1]} : vector<17x32xf32> to vector<17x8xf32>
    %cst_54 = arith.constant dense<0.000000e+00> : vector<17x17xf32>
    %126 = tpu.matmul %123, %124, %cst_54 {dimension_numbers = #tpu.dot_dimension_numbers<[1], [1], [0], [0], [0, 0, 1, 0], [], []>} : vector<17x8xf32>, vector<17x8xf32>, vector<17x17xf32> -> vector<17x17xf32>
    %c0_55 = arith.constant 0 : index
    %c0_56 = arith.constant 0 : index
    %c0_57 = arith.constant 0 : index
    %127 = vector.load %arg11[%c0_55, %c0_56, %c0_57] : memref<1x1x17xf32, #tpu.memory_space<vmem>>, vector<1x1x17xf32>
    %128 = vector.shape_cast %127 : vector<1x1x17xf32> to vector<1x17xf32>
    %129 = vector.broadcast %128 : vector<1x17xf32> to vector<17x17xf32>
    %130 = arith.addf %126, %129 : vector<17x17xf32>
    %cst_58 = arith.constant dense<0xFF800000> : vector<17xf32>
    %131 = vector.multi_reduction <maximumf>, %130, %cst_58 [1] : vector<17x17xf32> to vector<17xf32>
    %132 = vector.shape_cast %131 : vector<17xf32> to vector<17x1xf32>
    %133 = vector.broadcast %132 : vector<17x1xf32> to vector<17x17xf32>
    %134 = arith.subf %130, %133 : vector<17x17xf32>
    %135 = math.exp %134 : vector<17x17xf32>
    %cst_59 = arith.constant dense<0.000000e+00> : vector<17xf32>
    %136 = vector.multi_reduction <add>, %135, %cst_59 [1] : vector<17x17xf32> to vector<17xf32>
    %137 = vector.shape_cast %136 : vector<17xf32> to vector<17x1xf32>
    %138 = tpu.reciprocal %137 {approx = true} : vector<17x1xf32> -> vector<17x1xf32>
    %139 = vector.broadcast %138 : vector<17x1xf32> to vector<17x17xf32>
    %140 = arith.mulf %135, %139 : vector<17x17xf32>
    %cst_60 = arith.constant dense<0.000000e+00> : vector<17x8xf32>
    %141 = tpu.matmul %140, %125, %cst_60 {dimension_numbers = #tpu.dot_dimension_numbers<[1], [0], [0], [1], [0, 0, 1, 1], [], []>} : vector<17x17xf32>, vector<17x8xf32>, vector<17x8xf32> -> vector<17x8xf32>
    %142 = tpu.concatenate %84, %103, %122, %141 in 1 : vector<17x8xf32>, vector<17x8xf32>, vector<17x8xf32>, vector<17x8xf32> -> vector<17x32xf32>
    %c0_61 = arith.constant 0 : index
    %c0_62 = arith.constant 0 : index
    %143 = vector.load %arg9[%c0_61, %c0_62] : memref<32x32xf32, #tpu.memory_space<vmem>>, vector<32x32xf32>
    %cst_63 = arith.constant dense<0.000000e+00> : vector<17x32xf32>
    %144 = tpu.matmul %142, %143, %cst_63 {dimension_numbers = #tpu.dot_dimension_numbers<[1], [0], [0], [1], [0, 0, 1, 1], [], []>} : vector<17x32xf32>, vector<32x32xf32>, vector<17x32xf32> -> vector<17x32xf32>
    %c0_64 = arith.constant 0 : index
    %c0_65 = arith.constant 0 : index
    %145 = vector.load %arg10[%c0_64, %c0_65] : memref<1x32xf32, #tpu.memory_space<vmem>>, vector<1x32xf32>
    %146 = vector.broadcast %145 : vector<1x32xf32> to vector<17x32xf32>
    %147 = arith.addf %144, %146 : vector<17x32xf32>
    %148 = arith.addf %1, %147 : vector<17x32xf32>
    %c0_66 = arith.constant 0 : index
    %c0_67 = arith.constant 0 : index
    %c0_68 = arith.constant 0 : index
    %149 = vector.load %arg12[%c0_66, %c0_67, %c0_68] : memref<1x17x32xf32, #tpu.memory_space<vmem>>, vector<1x17x32xf32>
    %150 = vector.shape_cast %149 : vector<1x17x32xf32> to vector<17x32xf32>
    %151 = vector.shape_cast %148 : vector<17x32xf32> to vector<1x17x32xf32>
    tpu.vector_store %arg12[%c0_66, %c0_67, %c0_68], %151 {strides = array<i32>} : memref<1x17x32xf32, #tpu.memory_space<vmem>>, vector<1x17x32xf32>,
    return
  }
  func.func @transform_0(%arg0: i32) -> (i32, i32, i32) {
    %c0_i32 = arith.constant 0 : i32
    %c0_i32_0 = arith.constant 0 : i32
    %c0_i32_1 = arith.constant 0 : i32
    return %arg0, %c0_i32, %c0_i32_0 : i32, i32, i32
  }
  func.func @transform_1(%arg0: i32) -> (i32, i32, i32) {
    %c0_i32 = arith.constant 0 : i32
    %c0_i32_0 = arith.constant 0 : i32
    %c0_i32_1 = arith.constant 0 : i32
    return %arg0, %c0_i32, %c0_i32_0 : i32, i32, i32
  }
  func.func @transform_2(%arg0: i32) -> (i32, i32) {
    %c0_i32 = arith.constant 0 : i32
    %c0_i32_0 = arith.constant 0 : i32
    %c0_i32_1 = arith.constant 0 : i32
    return %c0_i32, %c0_i32_0 : i32, i32
  }
  func.func @transform_3(%arg0: i32) -> (i32, i32) {
    %c0_i32 = arith.constant 0 : i32
    %c0_i32_0 = arith.constant 0 : i32
    %c0_i32_1 = arith.constant 0 : i32
    return %c0_i32, %c0_i32_0 : i32, i32
  }
  func.func @transform_4(%arg0: i32) -> (i32, i32) {
    %c0_i32 = arith.constant 0 : i32
    %c0_i32_0 = arith.constant 0 : i32
    %c0_i32_1 = arith.constant 0 : i32
    return %c0_i32, %c0_i32_0 : i32, i32
  }
  func.func @transform_5(%arg0: i32) -> (i32, i32) {
    %c0_i32 = arith.constant 0 : i32
    %c0_i32_0 = arith.constant 0 : i32
    %c0_i32_1 = arith.constant 0 : i32
    return %c0_i32, %c0_i32_0 : i32, i32
  }
  func.func @transform_6(%arg0: i32) -> (i32, i32) {
    %c0_i32 = arith.constant 0 : i32
    %c0_i32_0 = arith.constant 0 : i32
    %c0_i32_1 = arith.constant 0 : i32
    return %c0_i32, %c0_i32_0 : i32, i32
  }
  func.func @transform_7(%arg0: i32) -> (i32, i32) {
    %c0_i32 = arith.constant 0 : i32
    %c0_i32_0 = arith.constant 0 : i32
    %c0_i32_1 = arith.constant 0 : i32
    return %c0_i32, %c0_i32_0 : i32, i32
  }
  func.func @transform_8(%arg0: i32) -> (i32, i32) {
    %c0_i32 = arith.constant 0 : i32
    %c0_i32_0 = arith.constant 0 : i32
    %c0_i32_1 = arith.constant 0 : i32
    return %c0_i32, %c0_i32_0 : i32, i32
  }
  func.func @transform_9(%arg0: i32) -> (i32, i32) {
    %c0_i32 = arith.constant 0 : i32
    %c0_i32_0 = arith.constant 0 : i32
    %c0_i32_1 = arith.constant 0 : i32
    return %c0_i32, %c0_i32_0 : i32, i32
  }
  func.func @transform_10(%arg0: i32) -> (i32, i32, i32) {
    %c0_i32 = arith.constant 0 : i32
    %c0_i32_0 = arith.constant 0 : i32
    %c0_i32_1 = arith.constant 0 : i32
    return %arg0, %c0_i32, %c0_i32_0 : i32, i32, i32
  }
  func.func @transform_11(%arg0: i32) -> (i32, i32, i32) {
    %c0_i32 = arith.constant 0 : i32
    %c0_i32_0 = arith.constant 0 : i32
    %c0_i32_1 = arith.constant 0 : i32
    return %arg0, %c0_i32, %c0_i32_0 : i32, i32, i32
  }
}

module attributes {stable_mosaic.version = 11 : i64} {
  func.func @_fused_attn_kernel(%arg0: i32, %arg1: memref<1x8x32xf32, #tpu.memory_space<vmem>>, %arg2: memref<1x17x32xf32, #tpu.memory_space<vmem>>, %arg3: memref<1x32xf32, #tpu.memory_space<vmem>>, %arg4: memref<1x32xf32, #tpu.memory_space<vmem>>, %arg5: memref<32x32xf32, #tpu.memory_space<vmem>>, %arg6: memref<1x32xf32, #tpu.memory_space<vmem>>, %arg7: memref<32x64xf32, #tpu.memory_space<vmem>>, %arg8: memref<1x64xf32, #tpu.memory_space<vmem>>, %arg9: memref<32x32xf32, #tpu.memory_space<vmem>>, %arg10: memref<1x32xf32, #tpu.memory_space<vmem>>, %arg11: memref<1x1x17xf32, #tpu.memory_space<vmem>>, %arg12: memref<1x8x32xf32, #tpu.memory_space<vmem>>, %arg13: memref<1x8x17xf32, #tpu.memory_space<vmem>>) attributes {dimension_semantics = [#tpu.dimension_semantics<parallel>], iteration_bounds = array<i64: 2>, scalar_prefetch = 0 : i64, scratch_operands = 0 : i64, tpu.core_type = #tpu.core_type<tc>, window_params = [{transform_indices = @transform_0, window_bounds = array<i64: 1, 8, 32>}, {transform_indices = @transform_1, window_bounds = array<i64: 1, 17, 32>}, {pipeline_mode = #tpu.pipeline_mode<synchronous>, transform_indices = @transform_2, window_bounds = array<i64: 1, 32>}, {pipeline_mode = #tpu.pipeline_mode<synchronous>, transform_indices = @transform_3, window_bounds = array<i64: 1, 32>}, {pipeline_mode = #tpu.pipeline_mode<synchronous>, transform_indices = @transform_4, window_bounds = array<i64: 32, 32>}, {pipeline_mode = #tpu.pipeline_mode<synchronous>, transform_indices = @transform_5, window_bounds = array<i64: 1, 32>}, {pipeline_mode = #tpu.pipeline_mode<synchronous>, transform_indices = @transform_6, window_bounds = array<i64: 32, 64>}, {pipeline_mode = #tpu.pipeline_mode<synchronous>, transform_indices = @transform_7, window_bounds = array<i64: 1, 64>}, {pipeline_mode = #tpu.pipeline_mode<synchronous>, transform_indices = @transform_8, window_bounds = array<i64: 32, 32>}, {pipeline_mode = #tpu.pipeline_mode<synchronous>, transform_indices = @transform_9, window_bounds = array<i64: 1, 32>}, {transform_indices = @transform_10, window_bounds = array<i64: 1, 1, 17>}, {transform_indices = @transform_11, window_bounds = array<i64: 1, 8, 32>}, {transform_indices = @transform_12, window_bounds = array<i64: 1, 8, 17>}]} {
    %c0 = arith.constant 0 : index
    %c0_0 = arith.constant 0 : index
    %c0_1 = arith.constant 0 : index
    %0 = vector.load %arg1[%c0, %c0_0, %c0_1] : memref<1x8x32xf32, #tpu.memory_space<vmem>>, vector<1x8x32xf32>
    %1 = vector.shape_cast %0 : vector<1x8x32xf32> to vector<8x32xf32>
    %c0_2 = arith.constant 0 : index
    %c0_3 = arith.constant 0 : index
    %2 = vector.load %arg3[%c0_2, %c0_3] : memref<1x32xf32, #tpu.memory_space<vmem>>, vector<1x32xf32>
    %c0_4 = arith.constant 0 : index
    %c0_5 = arith.constant 0 : index
    %3 = vector.load %arg4[%c0_4, %c0_5] : memref<1x32xf32, #tpu.memory_space<vmem>>, vector<1x32xf32>
    %cst = arith.constant dense<0.000000e+00> : vector<8xf32>
    %4 = vector.multi_reduction <add>, %1, %cst [1] : vector<8x32xf32> to vector<8xf32>
    %5 = vector.shape_cast %4 : vector<8xf32> to vector<8x1xf32>
    %cst_6 = arith.constant 3.200000e+01 : f32
    %6 = vector.broadcast %cst_6 : f32 to vector<8x1xf32>
    %7 = arith.divf %5, %6 : vector<8x1xf32>
    %8 = vector.broadcast %7 : vector<8x1xf32> to vector<8x32xf32>
    %9 = arith.subf %1, %8 : vector<8x32xf32>
    %10 = arith.mulf %9, %9 : vector<8x32xf32>
    %cst_7 = arith.constant dense<0.000000e+00> : vector<8xf32>
    %11 = vector.multi_reduction <add>, %10, %cst_7 [1] : vector<8x32xf32> to vector<8xf32>
    %12 = vector.shape_cast %11 : vector<8xf32> to vector<8x1xf32>
    %cst_8 = arith.constant 3.200000e+01 : f32
    %13 = vector.broadcast %cst_8 : f32 to vector<8x1xf32>
    %14 = arith.divf %12, %13 : vector<8x1xf32>
    %15 = vector.broadcast %7 : vector<8x1xf32> to vector<8x32xf32>
    %16 = arith.subf %1, %15 : vector<8x32xf32>
    %cst_9 = arith.constant 9.99999974E-6 : f32
    %17 = vector.broadcast %cst_9 : f32 to vector<8x1xf32>
    %18 = arith.addf %14, %17 : vector<8x1xf32>
    %19 = math.rsqrt %18 : vector<8x1xf32>
    %20 = vector.broadcast %19 : vector<8x1xf32> to vector<8x32xf32>
    %21 = arith.mulf %16, %20 : vector<8x32xf32>
    %22 = vector.broadcast %2 : vector<1x32xf32> to vector<8x32xf32>
    %23 = arith.mulf %21, %22 : vector<8x32xf32>
    %24 = vector.broadcast %3 : vector<1x32xf32> to vector<8x32xf32>
    %25 = arith.addf %23, %24 : vector<8x32xf32>
    %c0_10 = arith.constant 0 : index
    %c0_11 = arith.constant 0 : index
    %c0_12 = arith.constant 0 : index
    %26 = vector.load %arg2[%c0_10, %c0_11, %c0_12] : memref<1x17x32xf32, #tpu.memory_space<vmem>>, vector<1x17x32xf32>
    %27 = vector.shape_cast %26 : vector<1x17x32xf32> to vector<17x32xf32>
    %c0_13 = arith.constant 0 : index
    %c0_14 = arith.constant 0 : index
    %28 = vector.load %arg3[%c0_13, %c0_14] : memref<1x32xf32, #tpu.memory_space<vmem>>, vector<1x32xf32>
    %c0_15 = arith.constant 0 : index
    %c0_16 = arith.constant 0 : index
    %29 = vector.load %arg4[%c0_15, %c0_16] : memref<1x32xf32, #tpu.memory_space<vmem>>, vector<1x32xf32>
    %cst_17 = arith.constant dense<0.000000e+00> : vector<17xf32>
    %30 = vector.multi_reduction <add>, %27, %cst_17 [1] : vector<17x32xf32> to vector<17xf32>
    %31 = vector.shape_cast %30 : vector<17xf32> to vector<17x1xf32>
    %cst_18 = arith.constant 3.200000e+01 : f32
    %32 = vector.broadcast %cst_18 : f32 to vector<17x1xf32>
    %33 = arith.divf %31, %32 : vector<17x1xf32>
    %34 = vector.broadcast %33 : vector<17x1xf32> to vector<17x32xf32>
    %35 = arith.subf %27, %34 : vector<17x32xf32>
    %36 = arith.mulf %35, %35 : vector<17x32xf32>
    %cst_19 = arith.constant dense<0.000000e+00> : vector<17xf32>
    %37 = vector.multi_reduction <add>, %36, %cst_19 [1] : vector<17x32xf32> to vector<17xf32>
    %38 = vector.shape_cast %37 : vector<17xf32> to vector<17x1xf32>
    %cst_20 = arith.constant 3.200000e+01 : f32
    %39 = vector.broadcast %cst_20 : f32 to vector<17x1xf32>
    %40 = arith.divf %38, %39 : vector<17x1xf32>
    %41 = vector.broadcast %33 : vector<17x1xf32> to vector<17x32xf32>
    %42 = arith.subf %27, %41 : vector<17x32xf32>
    %cst_21 = arith.constant 9.99999974E-6 : f32
    %43 = vector.broadcast %cst_21 : f32 to vector<17x1xf32>
    %44 = arith.addf %40, %43 : vector<17x1xf32>
    %45 = math.rsqrt %44 : vector<17x1xf32>
    %46 = vector.broadcast %45 : vector<17x1xf32> to vector<17x32xf32>
    %47 = arith.mulf %42, %46 : vector<17x32xf32>
    %48 = vector.broadcast %28 : vector<1x32xf32> to vector<17x32xf32>
    %49 = arith.mulf %47, %48 : vector<17x32xf32>
    %50 = vector.broadcast %29 : vector<1x32xf32> to vector<17x32xf32>
    %51 = arith.addf %49, %50 : vector<17x32xf32>
    %c0_22 = arith.constant 0 : index
    %c0_23 = arith.constant 0 : index
    %52 = vector.load %arg5[%c0_22, %c0_23] : memref<32x32xf32, #tpu.memory_space<vmem>>, vector<32x32xf32>
    %cst_24 = arith.constant dense<0.000000e+00> : vector<8x32xf32>
    %53 = tpu.matmul %25, %52, %cst_24 {dimension_numbers = #tpu.dot_dimension_numbers<[1], [0], [0], [1], [0, 0, 1, 1], [], []>} : vector<8x32xf32>, vector<32x32xf32>, vector<8x32xf32> -> vector<8x32xf32>
    %c0_25 = arith.constant 0 : index
    %c0_26 = arith.constant 0 : index
    %54 = vector.load %arg6[%c0_25, %c0_26] : memref<1x32xf32, #tpu.memory_space<vmem>>, vector<1x32xf32>
    %55 = vector.broadcast %54 : vector<1x32xf32> to vector<8x32xf32>
    %56 = arith.addf %53, %55 : vector<8x32xf32>
    %cst_27 = arith.constant 0.353553385 : f32
    %57 = vector.broadcast %cst_27 : f32 to vector<8x32xf32>
    %58 = arith.mulf %56, %57 : vector<8x32xf32>
    %c0_28 = arith.constant 0 : index
    %c0_29 = arith.constant 0 : index
    %59 = vector.load %arg7[%c0_28, %c0_29] : memref<32x64xf32, #tpu.memory_space<vmem>>, vector<32x64xf32>
    %cst_30 = arith.constant dense<0.000000e+00> : vector<17x64xf32>
    %60 = tpu.matmul %51, %59, %cst_30 {dimension_numbers = #tpu.dot_dimension_numbers<[1], [0], [0], [1], [0, 0, 1, 1], [], []>} : vector<17x32xf32>, vector<32x64xf32>, vector<17x64xf32> -> vector<17x64xf32>
    %c0_31 = arith.constant 0 : index
    %c0_32 = arith.constant 0 : index
    %61 = vector.load %arg8[%c0_31, %c0_32] : memref<1x64xf32, #tpu.memory_space<vmem>>, vector<1x64xf32>
    %62 = vector.broadcast %61 : vector<1x64xf32> to vector<17x64xf32>
    %63 = arith.addf %60, %62 : vector<17x64xf32>
    %64 = vector.extract_strided_slice %63 {offsets = [0, 0], sizes = [17, 32], strides = [1, 1]} : vector<17x64xf32> to vector<17x32xf32>
    %65 = vector.extract_strided_slice %63 {offsets = [0, 32], sizes = [17, 32], strides = [1, 1]} : vector<17x64xf32> to vector<17x32xf32>
    %66 = vector.extract_strided_slice %58 {offsets = [0, 0], sizes = [8, 8], strides = [1, 1]} : vector<8x32xf32> to vector<8x8xf32>
    %67 = vector.extract_strided_slice %64 {offsets = [0, 0], sizes = [17, 8], strides = [1, 1]} : vector<17x32xf32> to vector<17x8xf32>
    %68 = vector.extract_strided_slice %65 {offsets = [0, 0], sizes = [17, 8], strides = [1, 1]} : vector<17x32xf32> to vector<17x8xf32>
    %cst_33 = arith.constant dense<0.000000e+00> : vector<8x17xf32>
    %69 = tpu.matmul %66, %67, %cst_33 {dimension_numbers = #tpu.dot_dimension_numbers<[1], [1], [0], [0], [0, 0, 1, 0], [], []>} : vector<8x8xf32>, vector<17x8xf32>, vector<8x17xf32> -> vector<8x17xf32>
    %c0_34 = arith.constant 0 : index
    %c0_35 = arith.constant 0 : index
    %c0_36 = arith.constant 0 : index
    %70 = vector.load %arg11[%c0_34, %c0_35, %c0_36] : memref<1x1x17xf32, #tpu.memory_space<vmem>>, vector<1x1x17xf32>
    %71 = vector.shape_cast %70 : vector<1x1x17xf32> to vector<1x17xf32>
    %72 = vector.broadcast %71 : vector<1x17xf32> to vector<8x17xf32>
    %73 = arith.addf %69, %72 : vector<8x17xf32>
    %cst_37 = arith.constant dense<0xFF800000> : vector<8xf32>
    %74 = vector.multi_reduction <maximumf>, %73, %cst_37 [1] : vector<8x17xf32> to vector<8xf32>
    %75 = vector.shape_cast %74 : vector<8xf32> to vector<8x1xf32>
    %76 = vector.broadcast %75 : vector<8x1xf32> to vector<8x17xf32>
    %77 = arith.subf %73, %76 : vector<8x17xf32>
    %78 = math.exp %77 : vector<8x17xf32>
    %cst_38 = arith.constant dense<0.000000e+00> : vector<8xf32>
    %79 = vector.multi_reduction <add>, %78, %cst_38 [1] : vector<8x17xf32> to vector<8xf32>
    %80 = vector.shape_cast %79 : vector<8xf32> to vector<8x1xf32>
    %81 = tpu.reciprocal %80 {approx = true} : vector<8x1xf32> -> vector<8x1xf32>
    %82 = vector.broadcast %81 : vector<8x1xf32> to vector<8x17xf32>
    %83 = arith.mulf %78, %82 : vector<8x17xf32>
    %cst_39 = arith.constant dense<0.000000e+00> : vector<8x8xf32>
    %84 = tpu.matmul %83, %68, %cst_39 {dimension_numbers = #tpu.dot_dimension_numbers<[1], [0], [0], [1], [0, 0, 1, 1], [], []>} : vector<8x17xf32>, vector<17x8xf32>, vector<8x8xf32> -> vector<8x8xf32>
    %85 = vector.extract_strided_slice %58 {offsets = [0, 8], sizes = [8, 8], strides = [1, 1]} : vector<8x32xf32> to vector<8x8xf32>
    %86 = vector.extract_strided_slice %64 {offsets = [0, 8], sizes = [17, 8], strides = [1, 1]} : vector<17x32xf32> to vector<17x8xf32>
    %87 = vector.extract_strided_slice %65 {offsets = [0, 8], sizes = [17, 8], strides = [1, 1]} : vector<17x32xf32> to vector<17x8xf32>
    %cst_40 = arith.constant dense<0.000000e+00> : vector<8x17xf32>
    %88 = tpu.matmul %85, %86, %cst_40 {dimension_numbers = #tpu.dot_dimension_numbers<[1], [1], [0], [0], [0, 0, 1, 0], [], []>} : vector<8x8xf32>, vector<17x8xf32>, vector<8x17xf32> -> vector<8x17xf32>
    %c0_41 = arith.constant 0 : index
    %c0_42 = arith.constant 0 : index
    %c0_43 = arith.constant 0 : index
    %89 = vector.load %arg11[%c0_41, %c0_42, %c0_43] : memref<1x1x17xf32, #tpu.memory_space<vmem>>, vector<1x1x17xf32>
    %90 = vector.shape_cast %89 : vector<1x1x17xf32> to vector<1x17xf32>
    %91 = vector.broadcast %90 : vector<1x17xf32> to vector<8x17xf32>
    %92 = arith.addf %88, %91 : vector<8x17xf32>
    %cst_44 = arith.constant dense<0xFF800000> : vector<8xf32>
    %93 = vector.multi_reduction <maximumf>, %92, %cst_44 [1] : vector<8x17xf32> to vector<8xf32>
    %94 = vector.shape_cast %93 : vector<8xf32> to vector<8x1xf32>
    %95 = vector.broadcast %94 : vector<8x1xf32> to vector<8x17xf32>
    %96 = arith.subf %92, %95 : vector<8x17xf32>
    %97 = math.exp %96 : vector<8x17xf32>
    %cst_45 = arith.constant dense<0.000000e+00> : vector<8xf32>
    %98 = vector.multi_reduction <add>, %97, %cst_45 [1] : vector<8x17xf32> to vector<8xf32>
    %99 = vector.shape_cast %98 : vector<8xf32> to vector<8x1xf32>
    %100 = tpu.reciprocal %99 {approx = true} : vector<8x1xf32> -> vector<8x1xf32>
    %101 = vector.broadcast %100 : vector<8x1xf32> to vector<8x17xf32>
    %102 = arith.mulf %97, %101 : vector<8x17xf32>
    %103 = arith.addf %83, %102 : vector<8x17xf32>
    %cst_46 = arith.constant dense<0.000000e+00> : vector<8x8xf32>
    %104 = tpu.matmul %102, %87, %cst_46 {dimension_numbers = #tpu.dot_dimension_numbers<[1], [0], [0], [1], [0, 0, 1, 1], [], []>} : vector<8x17xf32>, vector<17x8xf32>, vector<8x8xf32> -> vector<8x8xf32>
    %105 = vector.extract_strided_slice %58 {offsets = [0, 16], sizes = [8, 8], strides = [1, 1]} : vector<8x32xf32> to vector<8x8xf32>
    %106 = vector.extract_strided_slice %64 {offsets = [0, 16], sizes = [17, 8], strides = [1, 1]} : vector<17x32xf32> to vector<17x8xf32>
    %107 = vector.extract_strided_slice %65 {offsets = [0, 16], sizes = [17, 8], strides = [1, 1]} : vector<17x32xf32> to vector<17x8xf32>
    %cst_47 = arith.constant dense<0.000000e+00> : vector<8x17xf32>
    %108 = tpu.matmul %105, %106, %cst_47 {dimension_numbers = #tpu.dot_dimension_numbers<[1], [1], [0], [0], [0, 0, 1, 0], [], []>} : vector<8x8xf32>, vector<17x8xf32>, vector<8x17xf32> -> vector<8x17xf32>
    %c0_48 = arith.constant 0 : index
    %c0_49 = arith.constant 0 : index
    %c0_50 = arith.constant 0 : index
    %109 = vector.load %arg11[%c0_48, %c0_49, %c0_50] : memref<1x1x17xf32, #tpu.memory_space<vmem>>, vector<1x1x17xf32>
    %110 = vector.shape_cast %109 : vector<1x1x17xf32> to vector<1x17xf32>
    %111 = vector.broadcast %110 : vector<1x17xf32> to vector<8x17xf32>
    %112 = arith.addf %108, %111 : vector<8x17xf32>
    %cst_51 = arith.constant dense<0xFF800000> : vector<8xf32>
    %113 = vector.multi_reduction <maximumf>, %112, %cst_51 [1] : vector<8x17xf32> to vector<8xf32>
    %114 = vector.shape_cast %113 : vector<8xf32> to vector<8x1xf32>
    %115 = vector.broadcast %114 : vector<8x1xf32> to vector<8x17xf32>
    %116 = arith.subf %112, %115 : vector<8x17xf32>
    %117 = math.exp %116 : vector<8x17xf32>
    %cst_52 = arith.constant dense<0.000000e+00> : vector<8xf32>
    %118 = vector.multi_reduction <add>, %117, %cst_52 [1] : vector<8x17xf32> to vector<8xf32>
    %119 = vector.shape_cast %118 : vector<8xf32> to vector<8x1xf32>
    %120 = tpu.reciprocal %119 {approx = true} : vector<8x1xf32> -> vector<8x1xf32>
    %121 = vector.broadcast %120 : vector<8x1xf32> to vector<8x17xf32>
    %122 = arith.mulf %117, %121 : vector<8x17xf32>
    %123 = arith.addf %103, %122 : vector<8x17xf32>
    %cst_53 = arith.constant dense<0.000000e+00> : vector<8x8xf32>
    %124 = tpu.matmul %122, %107, %cst_53 {dimension_numbers = #tpu.dot_dimension_numbers<[1], [0], [0], [1], [0, 0, 1, 1], [], []>} : vector<8x17xf32>, vector<17x8xf32>, vector<8x8xf32> -> vector<8x8xf32>
    %125 = vector.extract_strided_slice %58 {offsets = [0, 24], sizes = [8, 8], strides = [1, 1]} : vector<8x32xf32> to vector<8x8xf32>
    %126 = vector.extract_strided_slice %64 {offsets = [0, 24], sizes = [17, 8], strides = [1, 1]} : vector<17x32xf32> to vector<17x8xf32>
    %127 = vector.extract_strided_slice %65 {offsets = [0, 24], sizes = [17, 8], strides = [1, 1]} : vector<17x32xf32> to vector<17x8xf32>
    %cst_54 = arith.constant dense<0.000000e+00> : vector<8x17xf32>
    %128 = tpu.matmul %125, %126, %cst_54 {dimension_numbers = #tpu.dot_dimension_numbers<[1], [1], [0], [0], [0, 0, 1, 0], [], []>} : vector<8x8xf32>, vector<17x8xf32>, vector<8x17xf32> -> vector<8x17xf32>
    %c0_55 = arith.constant 0 : index
    %c0_56 = arith.constant 0 : index
    %c0_57 = arith.constant 0 : index
    %129 = vector.load %arg11[%c0_55, %c0_56, %c0_57] : memref<1x1x17xf32, #tpu.memory_space<vmem>>, vector<1x1x17xf32>
    %130 = vector.shape_cast %129 : vector<1x1x17xf32> to vector<1x17xf32>
    %131 = vector.broadcast %130 : vector<1x17xf32> to vector<8x17xf32>
    %132 = arith.addf %128, %131 : vector<8x17xf32>
    %cst_58 = arith.constant dense<0xFF800000> : vector<8xf32>
    %133 = vector.multi_reduction <maximumf>, %132, %cst_58 [1] : vector<8x17xf32> to vector<8xf32>
    %134 = vector.shape_cast %133 : vector<8xf32> to vector<8x1xf32>
    %135 = vector.broadcast %134 : vector<8x1xf32> to vector<8x17xf32>
    %136 = arith.subf %132, %135 : vector<8x17xf32>
    %137 = math.exp %136 : vector<8x17xf32>
    %cst_59 = arith.constant dense<0.000000e+00> : vector<8xf32>
    %138 = vector.multi_reduction <add>, %137, %cst_59 [1] : vector<8x17xf32> to vector<8xf32>
    %139 = vector.shape_cast %138 : vector<8xf32> to vector<8x1xf32>
    %140 = tpu.reciprocal %139 {approx = true} : vector<8x1xf32> -> vector<8x1xf32>
    %141 = vector.broadcast %140 : vector<8x1xf32> to vector<8x17xf32>
    %142 = arith.mulf %137, %141 : vector<8x17xf32>
    %143 = arith.addf %123, %142 : vector<8x17xf32>
    %cst_60 = arith.constant dense<0.000000e+00> : vector<8x8xf32>
    %144 = tpu.matmul %142, %127, %cst_60 {dimension_numbers = #tpu.dot_dimension_numbers<[1], [0], [0], [1], [0, 0, 1, 1], [], []>} : vector<8x17xf32>, vector<17x8xf32>, vector<8x8xf32> -> vector<8x8xf32>
    %145 = tpu.concatenate %84, %104, %124, %144 in 1 : vector<8x8xf32>, vector<8x8xf32>, vector<8x8xf32>, vector<8x8xf32> -> vector<8x32xf32>
    %c0_61 = arith.constant 0 : index
    %c0_62 = arith.constant 0 : index
    %146 = vector.load %arg9[%c0_61, %c0_62] : memref<32x32xf32, #tpu.memory_space<vmem>>, vector<32x32xf32>
    %cst_63 = arith.constant dense<0.000000e+00> : vector<8x32xf32>
    %147 = tpu.matmul %145, %146, %cst_63 {dimension_numbers = #tpu.dot_dimension_numbers<[1], [0], [0], [1], [0, 0, 1, 1], [], []>} : vector<8x32xf32>, vector<32x32xf32>, vector<8x32xf32> -> vector<8x32xf32>
    %c0_64 = arith.constant 0 : index
    %c0_65 = arith.constant 0 : index
    %148 = vector.load %arg10[%c0_64, %c0_65] : memref<1x32xf32, #tpu.memory_space<vmem>>, vector<1x32xf32>
    %149 = vector.broadcast %148 : vector<1x32xf32> to vector<8x32xf32>
    %150 = arith.addf %147, %149 : vector<8x32xf32>
    %151 = arith.addf %1, %150 : vector<8x32xf32>
    %c0_66 = arith.constant 0 : index
    %c0_67 = arith.constant 0 : index
    %c0_68 = arith.constant 0 : index
    %152 = vector.load %arg12[%c0_66, %c0_67, %c0_68] : memref<1x8x32xf32, #tpu.memory_space<vmem>>, vector<1x8x32xf32>
    %153 = vector.shape_cast %152 : vector<1x8x32xf32> to vector<8x32xf32>
    %154 = vector.shape_cast %151 : vector<8x32xf32> to vector<1x8x32xf32>
    tpu.vector_store %arg12[%c0_66, %c0_67, %c0_68], %154 {strides = array<i32>} : memref<1x8x32xf32, #tpu.memory_space<vmem>>, vector<1x8x32xf32>,
    %cst_69 = arith.constant 2.500000e-01 : f32
    %155 = vector.broadcast %cst_69 : f32 to vector<8x17xf32>
    %156 = arith.mulf %143, %155 : vector<8x17xf32>
    %c0_70 = arith.constant 0 : index
    %c0_71 = arith.constant 0 : index
    %c0_72 = arith.constant 0 : index
    %157 = vector.load %arg13[%c0_70, %c0_71, %c0_72] : memref<1x8x17xf32, #tpu.memory_space<vmem>>, vector<1x8x17xf32>
    %158 = vector.shape_cast %157 : vector<1x8x17xf32> to vector<8x17xf32>
    %159 = vector.shape_cast %156 : vector<8x17xf32> to vector<1x8x17xf32>
    tpu.vector_store %arg13[%c0_70, %c0_71, %c0_72], %159 {strides = array<i32>} : memref<1x8x17xf32, #tpu.memory_space<vmem>>, vector<1x8x17xf32>,
    return
  }
  func.func @transform_0(%arg0: i32) -> (i32, i32, i32) {
    %c0_i32 = arith.constant 0 : i32
    %c0_i32_0 = arith.constant 0 : i32
    %c0_i32_1 = arith.constant 0 : i32
    return %arg0, %c0_i32, %c0_i32_0 : i32, i32, i32
  }
  func.func @transform_1(%arg0: i32) -> (i32, i32, i32) {
    %c0_i32 = arith.constant 0 : i32
    %c0_i32_0 = arith.constant 0 : i32
    %c0_i32_1 = arith.constant 0 : i32
    return %arg0, %c0_i32, %c0_i32_0 : i32, i32, i32
  }
  func.func @transform_2(%arg0: i32) -> (i32, i32) {
    %c0_i32 = arith.constant 0 : i32
    %c0_i32_0 = arith.constant 0 : i32
    %c0_i32_1 = arith.constant 0 : i32
    return %c0_i32, %c0_i32_0 : i32, i32
  }
  func.func @transform_3(%arg0: i32) -> (i32, i32) {
    %c0_i32 = arith.constant 0 : i32
    %c0_i32_0 = arith.constant 0 : i32
    %c0_i32_1 = arith.constant 0 : i32
    return %c0_i32, %c0_i32_0 : i32, i32
  }
  func.func @transform_4(%arg0: i32) -> (i32, i32) {
    %c0_i32 = arith.constant 0 : i32
    %c0_i32_0 = arith.constant 0 : i32
    %c0_i32_1 = arith.constant 0 : i32
    return %c0_i32, %c0_i32_0 : i32, i32
  }
  func.func @transform_5(%arg0: i32) -> (i32, i32) {
    %c0_i32 = arith.constant 0 : i32
    %c0_i32_0 = arith.constant 0 : i32
    %c0_i32_1 = arith.constant 0 : i32
    return %c0_i32, %c0_i32_0 : i32, i32
  }
  func.func @transform_6(%arg0: i32) -> (i32, i32) {
    %c0_i32 = arith.constant 0 : i32
    %c0_i32_0 = arith.constant 0 : i32
    %c0_i32_1 = arith.constant 0 : i32
    return %c0_i32, %c0_i32_0 : i32, i32
  }
  func.func @transform_7(%arg0: i32) -> (i32, i32) {
    %c0_i32 = arith.constant 0 : i32
    %c0_i32_0 = arith.constant 0 : i32
    %c0_i32_1 = arith.constant 0 : i32
    return %c0_i32, %c0_i32_0 : i32, i32
  }
  func.func @transform_8(%arg0: i32) -> (i32, i32) {
    %c0_i32 = arith.constant 0 : i32
    %c0_i32_0 = arith.constant 0 : i32
    %c0_i32_1 = arith.constant 0 : i32
    return %c0_i32, %c0_i32_0 : i32, i32
  }
  func.func @transform_9(%arg0: i32) -> (i32, i32) {
    %c0_i32 = arith.constant 0 : i32
    %c0_i32_0 = arith.constant 0 : i32
    %c0_i32_1 = arith.constant 0 : i32
    return %c0_i32, %c0_i32_0 : i32, i32
  }
  func.func @transform_10(%arg0: i32) -> (i32, i32, i32) {
    %c0_i32 = arith.constant 0 : i32
    %c0_i32_0 = arith.constant 0 : i32
    %c0_i32_1 = arith.constant 0 : i32
    return %arg0, %c0_i32, %c0_i32_0 : i32, i32, i32
  }
  func.func @transform_11(%arg0: i32) -> (i32, i32, i32) {
    %c0_i32 = arith.constant 0 : i32
    %c0_i32_0 = arith.constant 0 : i32
    %c0_i32_1 = arith.constant 0 : i32
    return %arg0, %c0_i32, %c0_i32_0 : i32, i32, i32
  }
  func.func @transform_12(%arg0: i32) -> (i32, i32, i32) {
    %c0_i32 = arith.constant 0 : i32
    %c0_i32_0 = arith.constant 0 : i32
    %c0_i32_1 = arith.constant 0 : i32
    return %arg0, %c0_i32, %c0_i32_0 : i32, i32, i32
  }
}

module attributes {stable_mosaic.version = 11 : i64} {
  func.func @_fused_mlp_kernel(%arg0: i32, %arg1: memref<1x8x32xf32, #tpu.memory_space<vmem>>, %arg2: memref<1x32xf32, #tpu.memory_space<vmem>>, %arg3: memref<1x32xf32, #tpu.memory_space<vmem>>, %arg4: memref<32x128xf32, #tpu.memory_space<vmem>>, %arg5: memref<1x128xf32, #tpu.memory_space<vmem>>, %arg6: memref<128x32xf32, #tpu.memory_space<vmem>>, %arg7: memref<1x32xf32, #tpu.memory_space<vmem>>, %arg8: memref<1x8x32xf32, #tpu.memory_space<vmem>>) attributes {dimension_semantics = [#tpu.dimension_semantics<parallel>], iteration_bounds = array<i64: 2>, scalar_prefetch = 0 : i64, scratch_operands = 0 : i64, tpu.core_type = #tpu.core_type<tc>, window_params = [{transform_indices = @transform_0, window_bounds = array<i64: 1, 8, 32>}, {pipeline_mode = #tpu.pipeline_mode<synchronous>, transform_indices = @transform_1, window_bounds = array<i64: 1, 32>}, {pipeline_mode = #tpu.pipeline_mode<synchronous>, transform_indices = @transform_2, window_bounds = array<i64: 1, 32>}, {pipeline_mode = #tpu.pipeline_mode<synchronous>, transform_indices = @transform_3, window_bounds = array<i64: 32, 128>}, {pipeline_mode = #tpu.pipeline_mode<synchronous>, transform_indices = @transform_4, window_bounds = array<i64: 1, 128>}, {pipeline_mode = #tpu.pipeline_mode<synchronous>, transform_indices = @transform_5, window_bounds = array<i64: 128, 32>}, {pipeline_mode = #tpu.pipeline_mode<synchronous>, transform_indices = @transform_6, window_bounds = array<i64: 1, 32>}, {transform_indices = @transform_7, window_bounds = array<i64: 1, 8, 32>}]} {
    %c0 = arith.constant 0 : index
    %c0_0 = arith.constant 0 : index
    %c0_1 = arith.constant 0 : index
    %0 = vector.load %arg1[%c0, %c0_0, %c0_1] : memref<1x8x32xf32, #tpu.memory_space<vmem>>, vector<1x8x32xf32>
    %1 = vector.shape_cast %0 : vector<1x8x32xf32> to vector<8x32xf32>
    %c0_2 = arith.constant 0 : index
    %c0_3 = arith.constant 0 : index
    %2 = vector.load %arg2[%c0_2, %c0_3] : memref<1x32xf32, #tpu.memory_space<vmem>>, vector<1x32xf32>
    %c0_4 = arith.constant 0 : index
    %c0_5 = arith.constant 0 : index
    %3 = vector.load %arg3[%c0_4, %c0_5] : memref<1x32xf32, #tpu.memory_space<vmem>>, vector<1x32xf32>
    %cst = arith.constant dense<0.000000e+00> : vector<8xf32>
    %4 = vector.multi_reduction <add>, %1, %cst [1] : vector<8x32xf32> to vector<8xf32>
    %5 = vector.shape_cast %4 : vector<8xf32> to vector<8x1xf32>
    %cst_6 = arith.constant 3.200000e+01 : f32
    %6 = vector.broadcast %cst_6 : f32 to vector<8x1xf32>
    %7 = arith.divf %5, %6 : vector<8x1xf32>
    %8 = vector.broadcast %7 : vector<8x1xf32> to vector<8x32xf32>
    %9 = arith.subf %1, %8 : vector<8x32xf32>
    %10 = arith.mulf %9, %9 : vector<8x32xf32>
    %cst_7 = arith.constant dense<0.000000e+00> : vector<8xf32>
    %11 = vector.multi_reduction <add>, %10, %cst_7 [1] : vector<8x32xf32> to vector<8xf32>
    %12 = vector.shape_cast %11 : vector<8xf32> to vector<8x1xf32>
    %cst_8 = arith.constant 3.200000e+01 : f32
    %13 = vector.broadcast %cst_8 : f32 to vector<8x1xf32>
    %14 = arith.divf %12, %13 : vector<8x1xf32>
    %15 = vector.broadcast %7 : vector<8x1xf32> to vector<8x32xf32>
    %16 = arith.subf %1, %15 : vector<8x32xf32>
    %cst_9 = arith.constant 9.99999974E-6 : f32
    %17 = vector.broadcast %cst_9 : f32 to vector<8x1xf32>
    %18 = arith.addf %14, %17 : vector<8x1xf32>
    %19 = math.rsqrt %18 : vector<8x1xf32>
    %20 = vector.broadcast %19 : vector<8x1xf32> to vector<8x32xf32>
    %21 = arith.mulf %16, %20 : vector<8x32xf32>
    %22 = vector.broadcast %2 : vector<1x32xf32> to vector<8x32xf32>
    %23 = arith.mulf %21, %22 : vector<8x32xf32>
    %24 = vector.broadcast %3 : vector<1x32xf32> to vector<8x32xf32>
    %25 = arith.addf %23, %24 : vector<8x32xf32>
    %c0_10 = arith.constant 0 : index
    %c0_11 = arith.constant 0 : index
    %26 = vector.load %arg4[%c0_10, %c0_11] : memref<32x128xf32, #tpu.memory_space<vmem>>, vector<32x128xf32>
    %cst_12 = arith.constant dense<0.000000e+00> : vector<8x128xf32>
    %27 = tpu.matmul %25, %26, %cst_12 {dimension_numbers = #tpu.dot_dimension_numbers<[1], [0], [0], [1], [0, 0, 1, 1], [], []>} : vector<8x32xf32>, vector<32x128xf32>, vector<8x128xf32> -> vector<8x128xf32>
    %c0_13 = arith.constant 0 : index
    %c0_14 = arith.constant 0 : index
    %28 = vector.load %arg5[%c0_13, %c0_14] : memref<1x128xf32, #tpu.memory_space<vmem>>, vector<1x128xf32>
    %29 = vector.broadcast %28 : vector<1x128xf32> to vector<8x128xf32>
    %30 = arith.addf %27, %29 : vector<8x128xf32>
    %cst_15 = arith.constant 1.702000e+00 : f32
    %31 = vector.broadcast %cst_15 : f32 to vector<8x128xf32>
    %32 = arith.mulf %31, %30 : vector<8x128xf32>
    %33 = arith.negf %32 : vector<8x128xf32>
    %34 = math.exp %33 : vector<8x128xf32>
    %cst_16 = arith.constant 1.000000e+00 : f32
    %35 = vector.broadcast %cst_16 : f32 to vector<8x128xf32>
    %36 = arith.addf %35, %34 : vector<8x128xf32>
    %37 = arith.divf %35, %36 : vector<8x128xf32>
    %38 = arith.mulf %30, %37 : vector<8x128xf32>
    %c0_17 = arith.constant 0 : index
    %c0_18 = arith.constant 0 : index
    %39 = vector.load %arg6[%c0_17, %c0_18] : memref<128x32xf32, #tpu.memory_space<vmem>>, vector<128x32xf32>
    %cst_19 = arith.constant dense<0.000000e+00> : vector<8x32xf32>
    %40 = tpu.matmul %38, %39, %cst_19 {dimension_numbers = #tpu.dot_dimension_numbers<[1], [0], [0], [1], [0, 0, 1, 1], [], []>} : vector<8x128xf32>, vector<128x32xf32>, vector<8x32xf32> -> vector<8x32xf32>
    %c0_20 = arith.constant 0 : index
    %c0_21 = arith.constant 0 : index
    %41 = vector.load %arg7[%c0_20, %c0_21] : memref<1x32xf32, #tpu.memory_space<vmem>>, vector<1x32xf32>
    %42 = vector.broadcast %41 : vector<1x32xf32> to vector<8x32xf32>
    %43 = arith.addf %40, %42 : vector<8x32xf32>
    %44 = arith.addf %1, %43 : vector<8x32xf32>
    %c0_22 = arith.constant 0 : index
    %c0_23 = arith.constant 0 : index
    %c0_24 = arith.constant 0 : index
    %45 = vector.load %arg8[%c0_22, %c0_23, %c0_24] : memref<1x8x32xf32, #tpu.memory_space<vmem>>, vector<1x8x32xf32>
    %46 = vector.shape_cast %45 : vector<1x8x32xf32> to vector<8x32xf32>
    %47 = vector.shape_cast %44 : vector<8x32xf32> to vector<1x8x32xf32>
    tpu.vector_store %arg8[%c0_22, %c0_23, %c0_24], %47 {strides = array<i32>} : memref<1x8x32xf32, #tpu.memory_space<vmem>>, vector<1x8x32xf32>,
    return
  }
  func.func @transform_0(%arg0: i32) -> (i32, i32, i32) {
    %c0_i32 = arith.constant 0 : i32
    %c0_i32_0 = arith.constant 0 : i32
    %c0_i32_1 = arith.constant 0 : i32
    return %arg0, %c0_i32, %c0_i32_0 : i32, i32, i32
  }
  func.func @transform_1(%arg0: i32) -> (i32, i32) {
    %c0_i32 = arith.constant 0 : i32
    %c0_i32_0 = arith.constant 0 : i32
    %c0_i32_1 = arith.constant 0 : i32
    return %c0_i32, %c0_i32_0 : i32, i32
  }
  func.func @transform_2(%arg0: i32) -> (i32, i32) {
    %c0_i32 = arith.constant 0 : i32
    %c0_i32_0 = arith.constant 0 : i32
    %c0_i32_1 = arith.constant 0 : i32
    return %c0_i32, %c0_i32_0 : i32, i32
  }
  func.func @transform_3(%arg0: i32) -> (i32, i32) {
    %c0_i32 = arith.constant 0 : i32
    %c0_i32_0 = arith.constant 0 : i32
    %c0_i32_1 = arith.constant 0 : i32
    return %c0_i32, %c0_i32_0 : i32, i32
  }
  func.func @transform_4(%arg0: i32) -> (i32, i32) {
    %c0_i32 = arith.constant 0 : i32
    %c0_i32_0 = arith.constant 0 : i32
    %c0_i32_1 = arith.constant 0 : i32
    return %c0_i32, %c0_i32_0 : i32, i32
  }
  func.func @transform_5(%arg0: i32) -> (i32, i32) {
    %c0_i32 = arith.constant 0 : i32
    %c0_i32_0 = arith.constant 0 : i32
    %c0_i32_1 = arith.constant 0 : i32
    return %c0_i32, %c0_i32_0 : i32, i32
  }
  func.func @transform_6(%arg0: i32) -> (i32, i32) {
    %c0_i32 = arith.constant 0 : i32
    %c0_i32_0 = arith.constant 0 : i32
    %c0_i32_1 = arith.constant 0 : i32
    return %c0_i32, %c0_i32_0 : i32, i32
  }
  func.func @transform_7(%arg0: i32) -> (i32, i32, i32) {
    %c0_i32 = arith.constant 0 : i32
    %c0_i32_0 = arith.constant 0 : i32
    %c0_i32_1 = arith.constant 0 : i32
    return %arg0, %c0_i32, %c0_i32_0 : i32, i32, i32
  }
}

module attributes {stable_mosaic.version = 11 : i64} {
  func.func @_fused_mlp_kernel(%arg0: i32, %arg1: memref<1x17x32xf32, #tpu.memory_space<vmem>>, %arg2: memref<1x32xf32, #tpu.memory_space<vmem>>, %arg3: memref<1x32xf32, #tpu.memory_space<vmem>>, %arg4: memref<32x128xf32, #tpu.memory_space<vmem>>, %arg5: memref<1x128xf32, #tpu.memory_space<vmem>>, %arg6: memref<128x32xf32, #tpu.memory_space<vmem>>, %arg7: memref<1x32xf32, #tpu.memory_space<vmem>>, %arg8: memref<1x17x32xf32, #tpu.memory_space<vmem>>) attributes {dimension_semantics = [#tpu.dimension_semantics<parallel>], iteration_bounds = array<i64: 2>, scalar_prefetch = 0 : i64, scratch_operands = 0 : i64, tpu.core_type = #tpu.core_type<tc>, window_params = [{transform_indices = @transform_0, window_bounds = array<i64: 1, 17, 32>}, {pipeline_mode = #tpu.pipeline_mode<synchronous>, transform_indices = @transform_1, window_bounds = array<i64: 1, 32>}, {pipeline_mode = #tpu.pipeline_mode<synchronous>, transform_indices = @transform_2, window_bounds = array<i64: 1, 32>}, {pipeline_mode = #tpu.pipeline_mode<synchronous>, transform_indices = @transform_3, window_bounds = array<i64: 32, 128>}, {pipeline_mode = #tpu.pipeline_mode<synchronous>, transform_indices = @transform_4, window_bounds = array<i64: 1, 128>}, {pipeline_mode = #tpu.pipeline_mode<synchronous>, transform_indices = @transform_5, window_bounds = array<i64: 128, 32>}, {pipeline_mode = #tpu.pipeline_mode<synchronous>, transform_indices = @transform_6, window_bounds = array<i64: 1, 32>}, {transform_indices = @transform_7, window_bounds = array<i64: 1, 17, 32>}]} {
    %c0 = arith.constant 0 : index
    %c0_0 = arith.constant 0 : index
    %c0_1 = arith.constant 0 : index
    %0 = vector.load %arg1[%c0, %c0_0, %c0_1] : memref<1x17x32xf32, #tpu.memory_space<vmem>>, vector<1x17x32xf32>
    %1 = vector.shape_cast %0 : vector<1x17x32xf32> to vector<17x32xf32>
    %c0_2 = arith.constant 0 : index
    %c0_3 = arith.constant 0 : index
    %2 = vector.load %arg2[%c0_2, %c0_3] : memref<1x32xf32, #tpu.memory_space<vmem>>, vector<1x32xf32>
    %c0_4 = arith.constant 0 : index
    %c0_5 = arith.constant 0 : index
    %3 = vector.load %arg3[%c0_4, %c0_5] : memref<1x32xf32, #tpu.memory_space<vmem>>, vector<1x32xf32>
    %cst = arith.constant dense<0.000000e+00> : vector<17xf32>
    %4 = vector.multi_reduction <add>, %1, %cst [1] : vector<17x32xf32> to vector<17xf32>
    %5 = vector.shape_cast %4 : vector<17xf32> to vector<17x1xf32>
    %cst_6 = arith.constant 3.200000e+01 : f32
    %6 = vector.broadcast %cst_6 : f32 to vector<17x1xf32>
    %7 = arith.divf %5, %6 : vector<17x1xf32>
    %8 = vector.broadcast %7 : vector<17x1xf32> to vector<17x32xf32>
    %9 = arith.subf %1, %8 : vector<17x32xf32>
    %10 = arith.mulf %9, %9 : vector<17x32xf32>
    %cst_7 = arith.constant dense<0.000000e+00> : vector<17xf32>
    %11 = vector.multi_reduction <add>, %10, %cst_7 [1] : vector<17x32xf32> to vector<17xf32>
    %12 = vector.shape_cast %11 : vector<17xf32> to vector<17x1xf32>
    %cst_8 = arith.constant 3.200000e+01 : f32
    %13 = vector.broadcast %cst_8 : f32 to vector<17x1xf32>
    %14 = arith.divf %12, %13 : vector<17x1xf32>
    %15 = vector.broadcast %7 : vector<17x1xf32> to vector<17x32xf32>
    %16 = arith.subf %1, %15 : vector<17x32xf32>
    %cst_9 = arith.constant 9.99999974E-6 : f32
    %17 = vector.broadcast %cst_9 : f32 to vector<17x1xf32>
    %18 = arith.addf %14, %17 : vector<17x1xf32>
    %19 = math.rsqrt %18 : vector<17x1xf32>
    %20 = vector.broadcast %19 : vector<17x1xf32> to vector<17x32xf32>
    %21 = arith.mulf %16, %20 : vector<17x32xf32>
    %22 = vector.broadcast %2 : vector<1x32xf32> to vector<17x32xf32>
    %23 = arith.mulf %21, %22 : vector<17x32xf32>
    %24 = vector.broadcast %3 : vector<1x32xf32> to vector<17x32xf32>
    %25 = arith.addf %23, %24 : vector<17x32xf32>
    %c0_10 = arith.constant 0 : index
    %c0_11 = arith.constant 0 : index
    %26 = vector.load %arg4[%c0_10, %c0_11] : memref<32x128xf32, #tpu.memory_space<vmem>>, vector<32x128xf32>
    %cst_12 = arith.constant dense<0.000000e+00> : vector<17x128xf32>
    %27 = tpu.matmul %25, %26, %cst_12 {dimension_numbers = #tpu.dot_dimension_numbers<[1], [0], [0], [1], [0, 0, 1, 1], [], []>} : vector<17x32xf32>, vector<32x128xf32>, vector<17x128xf32> -> vector<17x128xf32>
    %c0_13 = arith.constant 0 : index
    %c0_14 = arith.constant 0 : index
    %28 = vector.load %arg5[%c0_13, %c0_14] : memref<1x128xf32, #tpu.memory_space<vmem>>, vector<1x128xf32>
    %29 = vector.broadcast %28 : vector<1x128xf32> to vector<17x128xf32>
    %30 = arith.addf %27, %29 : vector<17x128xf32>
    %cst_15 = arith.constant 1.702000e+00 : f32
    %31 = vector.broadcast %cst_15 : f32 to vector<17x128xf32>
    %32 = arith.mulf %31, %30 : vector<17x128xf32>
    %33 = arith.negf %32 : vector<17x128xf32>
    %34 = math.exp %33 : vector<17x128xf32>
    %cst_16 = arith.constant 1.000000e+00 : f32
    %35 = vector.broadcast %cst_16 : f32 to vector<17x128xf32>
    %36 = arith.addf %35, %34 : vector<17x128xf32>
    %37 = arith.divf %35, %36 : vector<17x128xf32>
    %38 = arith.mulf %30, %37 : vector<17x128xf32>
    %c0_17 = arith.constant 0 : index
    %c0_18 = arith.constant 0 : index
    %39 = vector.load %arg6[%c0_17, %c0_18] : memref<128x32xf32, #tpu.memory_space<vmem>>, vector<128x32xf32>
    %cst_19 = arith.constant dense<0.000000e+00> : vector<17x32xf32>
    %40 = tpu.matmul %38, %39, %cst_19 {dimension_numbers = #tpu.dot_dimension_numbers<[1], [0], [0], [1], [0, 0, 1, 1], [], []>} : vector<17x128xf32>, vector<128x32xf32>, vector<17x32xf32> -> vector<17x32xf32>
    %c0_20 = arith.constant 0 : index
    %c0_21 = arith.constant 0 : index
    %41 = vector.load %arg7[%c0_20, %c0_21] : memref<1x32xf32, #tpu.memory_space<vmem>>, vector<1x32xf32>
    %42 = vector.broadcast %41 : vector<1x32xf32> to vector<17x32xf32>
    %43 = arith.addf %40, %42 : vector<17x32xf32>
    %44 = arith.addf %1, %43 : vector<17x32xf32>
    %c0_22 = arith.constant 0 : index
    %c0_23 = arith.constant 0 : index
    %c0_24 = arith.constant 0 : index
    %45 = vector.load %arg8[%c0_22, %c0_23, %c0_24] : memref<1x17x32xf32, #tpu.memory_space<vmem>>, vector<1x17x32xf32>
    %46 = vector.shape_cast %45 : vector<1x17x32xf32> to vector<17x32xf32>
    %47 = vector.shape_cast %44 : vector<17x32xf32> to vector<1x17x32xf32>
    tpu.vector_store %arg8[%c0_22, %c0_23, %c0_24], %47 {strides = array<i32>} : memref<1x17x32xf32, #tpu.memory_space<vmem>>, vector<1x17x32xf32>,
    return
  }
  func.func @transform_0(%arg0: i32) -> (i32, i32, i32) {
    %c0_i32 = arith.constant 0 : i32
    %c0_i32_0 = arith.constant 0 : i32
    %c0_i32_1 = arith.constant 0 : i32
    return %arg0, %c0_i32, %c0_i32_0 : i32, i32, i32
  }
  func.func @transform_1(%arg0: i32) -> (i32, i32) {
    %c0_i32 = arith.constant 0 : i32
    %c0_i32_0 = arith.constant 0 : i32
    %c0_i32_1 = arith.constant 0 : i32
    return %c0_i32, %c0_i32_0 : i32, i32
  }
  func.func @transform_2(%arg0: i32) -> (i32, i32) {
    %c0_i32 = arith.constant 0 : i32
    %c0_i32_0 = arith.constant 0 : i32
    %c0_i32_1 = arith.constant 0 : i32
    return %c0_i32, %c0_i32_0 : i32, i32
  }
  func.func @transform_3(%arg0: i32) -> (i32, i32) {
    %c0_i32 = arith.constant 0 : i32
    %c0_i32_0 = arith.constant 0 : i32
    %c0_i32_1 = arith.constant 0 : i32
    return %c0_i32, %c0_i32_0 : i32, i32
  }
  func.func @transform_4(%arg0: i32) -> (i32, i32) {
    %c0_i32 = arith.constant 0 : i32
    %c0_i32_0 = arith.constant 0 : i32
    %c0_i32_1 = arith.constant 0 : i32
    return %c0_i32, %c0_i32_0 : i32, i32
  }
  func.func @transform_5(%arg0: i32) -> (i32, i32) {
    %c0_i32 = arith.constant 0 : i32
    %c0_i32_0 = arith.constant 0 : i32
    %c0_i32_1 = arith.constant 0 : i32
    return %c0_i32, %c0_i32_0 : i32, i32
  }
  func.func @transform_6(%arg0: i32) -> (i32, i32) {
    %c0_i32 = arith.constant 0 : i32
    %c0_i32_0 = arith.constant 0 : i32
    %c0_i32_1 = arith.constant 0 : i32
    return %c0_i32, %c0_i32_0 : i32, i32
  }
  func.func @transform_7(%arg0: i32) -> (i32, i32, i32) {
    %c0_i32 = arith.constant 0 : i32
    %c0_i32_0 = arith.constant 0 : i32
    %c0_i32_1 = arith.constant 0 : i32
    return %arg0, %c0_i32, %c0_i32_0 : i32, i32, i32
  }
}

module attributes {stable_mosaic.version = 11 : i64} {
  func.func @_fused_attn_kernel(%arg0: i32, %arg1: memref<1x9x32xf32, #tpu.memory_space<vmem>>, %arg2: memref<1x9x32xf32, #tpu.memory_space<vmem>>, %arg3: memref<1x32xf32, #tpu.memory_space<vmem>>, %arg4: memref<1x32xf32, #tpu.memory_space<vmem>>, %arg5: memref<32x32xf32, #tpu.memory_space<vmem>>, %arg6: memref<1x32xf32, #tpu.memory_space<vmem>>, %arg7: memref<32x64xf32, #tpu.memory_space<vmem>>, %arg8: memref<1x64xf32, #tpu.memory_space<vmem>>, %arg9: memref<32x32xf32, #tpu.memory_space<vmem>>, %arg10: memref<1x32xf32, #tpu.memory_space<vmem>>, %arg11: memref<1x9x32xf32, #tpu.memory_space<vmem>>) attributes {dimension_semantics = [#tpu.dimension_semantics<parallel>], iteration_bounds = array<i64: 2>, scalar_prefetch = 0 : i64, scratch_operands = 0 : i64, tpu.core_type = #tpu.core_type<tc>, window_params = [{transform_indices = @transform_0, window_bounds = array<i64: 1, 9, 32>}, {transform_indices = @transform_1, window_bounds = array<i64: 1, 9, 32>}, {pipeline_mode = #tpu.pipeline_mode<synchronous>, transform_indices = @transform_2, window_bounds = array<i64: 1, 32>}, {pipeline_mode = #tpu.pipeline_mode<synchronous>, transform_indices = @transform_3, window_bounds = array<i64: 1, 32>}, {pipeline_mode = #tpu.pipeline_mode<synchronous>, transform_indices = @transform_4, window_bounds = array<i64: 32, 32>}, {pipeline_mode = #tpu.pipeline_mode<synchronous>, transform_indices = @transform_5, window_bounds = array<i64: 1, 32>}, {pipeline_mode = #tpu.pipeline_mode<synchronous>, transform_indices = @transform_6, window_bounds = array<i64: 32, 64>}, {pipeline_mode = #tpu.pipeline_mode<synchronous>, transform_indices = @transform_7, window_bounds = array<i64: 1, 64>}, {pipeline_mode = #tpu.pipeline_mode<synchronous>, transform_indices = @transform_8, window_bounds = array<i64: 32, 32>}, {pipeline_mode = #tpu.pipeline_mode<synchronous>, transform_indices = @transform_9, window_bounds = array<i64: 1, 32>}, {transform_indices = @transform_10, window_bounds = array<i64: 1, 9, 32>}]} {
    %c0 = arith.constant 0 : index
    %c0_0 = arith.constant 0 : index
    %c0_1 = arith.constant 0 : index
    %0 = vector.load %arg1[%c0, %c0_0, %c0_1] : memref<1x9x32xf32, #tpu.memory_space<vmem>>, vector<1x9x32xf32>
    %1 = vector.shape_cast %0 : vector<1x9x32xf32> to vector<9x32xf32>
    %c0_2 = arith.constant 0 : index
    %c0_3 = arith.constant 0 : index
    %2 = vector.load %arg3[%c0_2, %c0_3] : memref<1x32xf32, #tpu.memory_space<vmem>>, vector<1x32xf32>
    %c0_4 = arith.constant 0 : index
    %c0_5 = arith.constant 0 : index
    %3 = vector.load %arg4[%c0_4, %c0_5] : memref<1x32xf32, #tpu.memory_space<vmem>>, vector<1x32xf32>
    %cst = arith.constant dense<0.000000e+00> : vector<9xf32>
    %4 = vector.multi_reduction <add>, %1, %cst [1] : vector<9x32xf32> to vector<9xf32>
    %5 = vector.shape_cast %4 : vector<9xf32> to vector<9x1xf32>
    %cst_6 = arith.constant 3.200000e+01 : f32
    %6 = vector.broadcast %cst_6 : f32 to vector<9x1xf32>
    %7 = arith.divf %5, %6 : vector<9x1xf32>
    %8 = vector.broadcast %7 : vector<9x1xf32> to vector<9x32xf32>
    %9 = arith.subf %1, %8 : vector<9x32xf32>
    %10 = arith.mulf %9, %9 : vector<9x32xf32>
    %cst_7 = arith.constant dense<0.000000e+00> : vector<9xf32>
    %11 = vector.multi_reduction <add>, %10, %cst_7 [1] : vector<9x32xf32> to vector<9xf32>
    %12 = vector.shape_cast %11 : vector<9xf32> to vector<9x1xf32>
    %cst_8 = arith.constant 3.200000e+01 : f32
    %13 = vector.broadcast %cst_8 : f32 to vector<9x1xf32>
    %14 = arith.divf %12, %13 : vector<9x1xf32>
    %15 = vector.broadcast %7 : vector<9x1xf32> to vector<9x32xf32>
    %16 = arith.subf %1, %15 : vector<9x32xf32>
    %cst_9 = arith.constant 9.99999974E-6 : f32
    %17 = vector.broadcast %cst_9 : f32 to vector<9x1xf32>
    %18 = arith.addf %14, %17 : vector<9x1xf32>
    %19 = math.rsqrt %18 : vector<9x1xf32>
    %20 = vector.broadcast %19 : vector<9x1xf32> to vector<9x32xf32>
    %21 = arith.mulf %16, %20 : vector<9x32xf32>
    %22 = vector.broadcast %2 : vector<1x32xf32> to vector<9x32xf32>
    %23 = arith.mulf %21, %22 : vector<9x32xf32>
    %24 = vector.broadcast %3 : vector<1x32xf32> to vector<9x32xf32>
    %25 = arith.addf %23, %24 : vector<9x32xf32>
    %c0_10 = arith.constant 0 : index
    %c0_11 = arith.constant 0 : index
    %c0_12 = arith.constant 0 : index
    %26 = vector.load %arg2[%c0_10, %c0_11, %c0_12] : memref<1x9x32xf32, #tpu.memory_space<vmem>>, vector<1x9x32xf32>
    %27 = vector.shape_cast %26 : vector<1x9x32xf32> to vector<9x32xf32>
    %c0_13 = arith.constant 0 : index
    %c0_14 = arith.constant 0 : index
    %28 = vector.load %arg3[%c0_13, %c0_14] : memref<1x32xf32, #tpu.memory_space<vmem>>, vector<1x32xf32>
    %c0_15 = arith.constant 0 : index
    %c0_16 = arith.constant 0 : index
    %29 = vector.load %arg4[%c0_15, %c0_16] : memref<1x32xf32, #tpu.memory_space<vmem>>, vector<1x32xf32>
    %cst_17 = arith.constant dense<0.000000e+00> : vector<9xf32>
    %30 = vector.multi_reduction <add>, %27, %cst_17 [1] : vector<9x32xf32> to vector<9xf32>
    %31 = vector.shape_cast %30 : vector<9xf32> to vector<9x1xf32>
    %cst_18 = arith.constant 3.200000e+01 : f32
    %32 = vector.broadcast %cst_18 : f32 to vector<9x1xf32>
    %33 = arith.divf %31, %32 : vector<9x1xf32>
    %34 = vector.broadcast %33 : vector<9x1xf32> to vector<9x32xf32>
    %35 = arith.subf %27, %34 : vector<9x32xf32>
    %36 = arith.mulf %35, %35 : vector<9x32xf32>
    %cst_19 = arith.constant dense<0.000000e+00> : vector<9xf32>
    %37 = vector.multi_reduction <add>, %36, %cst_19 [1] : vector<9x32xf32> to vector<9xf32>
    %38 = vector.shape_cast %37 : vector<9xf32> to vector<9x1xf32>
    %cst_20 = arith.constant 3.200000e+01 : f32
    %39 = vector.broadcast %cst_20 : f32 to vector<9x1xf32>
    %40 = arith.divf %38, %39 : vector<9x1xf32>
    %41 = vector.broadcast %33 : vector<9x1xf32> to vector<9x32xf32>
    %42 = arith.subf %27, %41 : vector<9x32xf32>
    %cst_21 = arith.constant 9.99999974E-6 : f32
    %43 = vector.broadcast %cst_21 : f32 to vector<9x1xf32>
    %44 = arith.addf %40, %43 : vector<9x1xf32>
    %45 = math.rsqrt %44 : vector<9x1xf32>
    %46 = vector.broadcast %45 : vector<9x1xf32> to vector<9x32xf32>
    %47 = arith.mulf %42, %46 : vector<9x32xf32>
    %48 = vector.broadcast %28 : vector<1x32xf32> to vector<9x32xf32>
    %49 = arith.mulf %47, %48 : vector<9x32xf32>
    %50 = vector.broadcast %29 : vector<1x32xf32> to vector<9x32xf32>
    %51 = arith.addf %49, %50 : vector<9x32xf32>
    %c0_22 = arith.constant 0 : index
    %c0_23 = arith.constant 0 : index
    %52 = vector.load %arg5[%c0_22, %c0_23] : memref<32x32xf32, #tpu.memory_space<vmem>>, vector<32x32xf32>
    %cst_24 = arith.constant dense<0.000000e+00> : vector<9x32xf32>
    %53 = tpu.matmul %25, %52, %cst_24 {dimension_numbers = #tpu.dot_dimension_numbers<[1], [0], [0], [1], [0, 0, 1, 1], [], []>} : vector<9x32xf32>, vector<32x32xf32>, vector<9x32xf32> -> vector<9x32xf32>
    %c0_25 = arith.constant 0 : index
    %c0_26 = arith.constant 0 : index
    %54 = vector.load %arg6[%c0_25, %c0_26] : memref<1x32xf32, #tpu.memory_space<vmem>>, vector<1x32xf32>
    %55 = vector.broadcast %54 : vector<1x32xf32> to vector<9x32xf32>
    %56 = arith.addf %53, %55 : vector<9x32xf32>
    %cst_27 = arith.constant 0.353553385 : f32
    %57 = vector.broadcast %cst_27 : f32 to vector<9x32xf32>
    %58 = arith.mulf %56, %57 : vector<9x32xf32>
    %c0_28 = arith.constant 0 : index
    %c0_29 = arith.constant 0 : index
    %59 = vector.load %arg7[%c0_28, %c0_29] : memref<32x64xf32, #tpu.memory_space<vmem>>, vector<32x64xf32>
    %cst_30 = arith.constant dense<0.000000e+00> : vector<9x64xf32>
    %60 = tpu.matmul %51, %59, %cst_30 {dimension_numbers = #tpu.dot_dimension_numbers<[1], [0], [0], [1], [0, 0, 1, 1], [], []>} : vector<9x32xf32>, vector<32x64xf32>, vector<9x64xf32> -> vector<9x64xf32>
    %c0_31 = arith.constant 0 : index
    %c0_32 = arith.constant 0 : index
    %61 = vector.load %arg8[%c0_31, %c0_32] : memref<1x64xf32, #tpu.memory_space<vmem>>, vector<1x64xf32>
    %62 = vector.broadcast %61 : vector<1x64xf32> to vector<9x64xf32>
    %63 = arith.addf %60, %62 : vector<9x64xf32>
    %64 = vector.extract_strided_slice %63 {offsets = [0, 0], sizes = [9, 32], strides = [1, 1]} : vector<9x64xf32> to vector<9x32xf32>
    %65 = vector.extract_strided_slice %63 {offsets = [0, 32], sizes = [9, 32], strides = [1, 1]} : vector<9x64xf32> to vector<9x32xf32>
    %66 = vector.extract_strided_slice %58 {offsets = [0, 0], sizes = [9, 8], strides = [1, 1]} : vector<9x32xf32> to vector<9x8xf32>
    %67 = vector.extract_strided_slice %64 {offsets = [0, 0], sizes = [9, 8], strides = [1, 1]} : vector<9x32xf32> to vector<9x8xf32>
    %68 = vector.extract_strided_slice %65 {offsets = [0, 0], sizes = [9, 8], strides = [1, 1]} : vector<9x32xf32> to vector<9x8xf32>
    %cst_33 = arith.constant dense<0.000000e+00> : vector<9x9xf32>
    %69 = tpu.matmul %66, %67, %cst_33 {dimension_numbers = #tpu.dot_dimension_numbers<[1], [1], [0], [0], [0, 0, 1, 0], [], []>} : vector<9x8xf32>, vector<9x8xf32>, vector<9x9xf32> -> vector<9x9xf32>
    %cst_34 = arith.constant dense<0xFF800000> : vector<9xf32>
    %70 = vector.multi_reduction <maximumf>, %69, %cst_34 [1] : vector<9x9xf32> to vector<9xf32>
    %71 = vector.shape_cast %70 : vector<9xf32> to vector<9x1xf32>
    %72 = vector.broadcast %71 : vector<9x1xf32> to vector<9x9xf32>
    %73 = arith.subf %69, %72 : vector<9x9xf32>
    %74 = math.exp %73 : vector<9x9xf32>
    %cst_35 = arith.constant dense<0.000000e+00> : vector<9xf32>
    %75 = vector.multi_reduction <add>, %74, %cst_35 [1] : vector<9x9xf32> to vector<9xf32>
    %76 = vector.shape_cast %75 : vector<9xf32> to vector<9x1xf32>
    %77 = tpu.reciprocal %76 {approx = true} : vector<9x1xf32> -> vector<9x1xf32>
    %78 = vector.broadcast %77 : vector<9x1xf32> to vector<9x9xf32>
    %79 = arith.mulf %74, %78 : vector<9x9xf32>
    %cst_36 = arith.constant dense<0.000000e+00> : vector<9x8xf32>
    %80 = tpu.matmul %79, %68, %cst_36 {dimension_numbers = #tpu.dot_dimension_numbers<[1], [0], [0], [1], [0, 0, 1, 1], [], []>} : vector<9x9xf32>, vector<9x8xf32>, vector<9x8xf32> -> vector<9x8xf32>
    %81 = vector.extract_strided_slice %58 {offsets = [0, 8], sizes = [9, 8], strides = [1, 1]} : vector<9x32xf32> to vector<9x8xf32>
    %82 = vector.extract_strided_slice %64 {offsets = [0, 8], sizes = [9, 8], strides = [1, 1]} : vector<9x32xf32> to vector<9x8xf32>
    %83 = vector.extract_strided_slice %65 {offsets = [0, 8], sizes = [9, 8], strides = [1, 1]} : vector<9x32xf32> to vector<9x8xf32>
    %cst_37 = arith.constant dense<0.000000e+00> : vector<9x9xf32>
    %84 = tpu.matmul %81, %82, %cst_37 {dimension_numbers = #tpu.dot_dimension_numbers<[1], [1], [0], [0], [0, 0, 1, 0], [], []>} : vector<9x8xf32>, vector<9x8xf32>, vector<9x9xf32> -> vector<9x9xf32>
    %cst_38 = arith.constant dense<0xFF800000> : vector<9xf32>
    %85 = vector.multi_reduction <maximumf>, %84, %cst_38 [1] : vector<9x9xf32> to vector<9xf32>
    %86 = vector.shape_cast %85 : vector<9xf32> to vector<9x1xf32>
    %87 = vector.broadcast %86 : vector<9x1xf32> to vector<9x9xf32>
    %88 = arith.subf %84, %87 : vector<9x9xf32>
    %89 = math.exp %88 : vector<9x9xf32>
    %cst_39 = arith.constant dense<0.000000e+00> : vector<9xf32>
    %90 = vector.multi_reduction <add>, %89, %cst_39 [1] : vector<9x9xf32> to vector<9xf32>
    %91 = vector.shape_cast %90 : vector<9xf32> to vector<9x1xf32>
    %92 = tpu.reciprocal %91 {approx = true} : vector<9x1xf32> -> vector<9x1xf32>
    %93 = vector.broadcast %92 : vector<9x1xf32> to vector<9x9xf32>
    %94 = arith.mulf %89, %93 : vector<9x9xf32>
    %cst_40 = arith.constant dense<0.000000e+00> : vector<9x8xf32>
    %95 = tpu.matmul %94, %83, %cst_40 {dimension_numbers = #tpu.dot_dimension_numbers<[1], [0], [0], [1], [0, 0, 1, 1], [], []>} : vector<9x9xf32>, vector<9x8xf32>, vector<9x8xf32> -> vector<9x8xf32>
    %96 = vector.extract_strided_slice %58 {offsets = [0, 16], sizes = [9, 8], strides = [1, 1]} : vector<9x32xf32> to vector<9x8xf32>
    %97 = vector.extract_strided_slice %64 {offsets = [0, 16], sizes = [9, 8], strides = [1, 1]} : vector<9x32xf32> to vector<9x8xf32>
    %98 = vector.extract_strided_slice %65 {offsets = [0, 16], sizes = [9, 8], strides = [1, 1]} : vector<9x32xf32> to vector<9x8xf32>
    %cst_41 = arith.constant dense<0.000000e+00> : vector<9x9xf32>
    %99 = tpu.matmul %96, %97, %cst_41 {dimension_numbers = #tpu.dot_dimension_numbers<[1], [1], [0], [0], [0, 0, 1, 0], [], []>} : vector<9x8xf32>, vector<9x8xf32>, vector<9x9xf32> -> vector<9x9xf32>
    %cst_42 = arith.constant dense<0xFF800000> : vector<9xf32>
    %100 = vector.multi_reduction <maximumf>, %99, %cst_42 [1] : vector<9x9xf32> to vector<9xf32>
    %101 = vector.shape_cast %100 : vector<9xf32> to vector<9x1xf32>
    %102 = vector.broadcast %101 : vector<9x1xf32> to vector<9x9xf32>
    %103 = arith.subf %99, %102 : vector<9x9xf32>
    %104 = math.exp %103 : vector<9x9xf32>
    %cst_43 = arith.constant dense<0.000000e+00> : vector<9xf32>
    %105 = vector.multi_reduction <add>, %104, %cst_43 [1] : vector<9x9xf32> to vector<9xf32>
    %106 = vector.shape_cast %105 : vector<9xf32> to vector<9x1xf32>
    %107 = tpu.reciprocal %106 {approx = true} : vector<9x1xf32> -> vector<9x1xf32>
    %108 = vector.broadcast %107 : vector<9x1xf32> to vector<9x9xf32>
    %109 = arith.mulf %104, %108 : vector<9x9xf32>
    %cst_44 = arith.constant dense<0.000000e+00> : vector<9x8xf32>
    %110 = tpu.matmul %109, %98, %cst_44 {dimension_numbers = #tpu.dot_dimension_numbers<[1], [0], [0], [1], [0, 0, 1, 1], [], []>} : vector<9x9xf32>, vector<9x8xf32>, vector<9x8xf32> -> vector<9x8xf32>
    %111 = vector.extract_strided_slice %58 {offsets = [0, 24], sizes = [9, 8], strides = [1, 1]} : vector<9x32xf32> to vector<9x8xf32>
    %112 = vector.extract_strided_slice %64 {offsets = [0, 24], sizes = [9, 8], strides = [1, 1]} : vector<9x32xf32> to vector<9x8xf32>
    %113 = vector.extract_strided_slice %65 {offsets = [0, 24], sizes = [9, 8], strides = [1, 1]} : vector<9x32xf32> to vector<9x8xf32>
    %cst_45 = arith.constant dense<0.000000e+00> : vector<9x9xf32>
    %114 = tpu.matmul %111, %112, %cst_45 {dimension_numbers = #tpu.dot_dimension_numbers<[1], [1], [0], [0], [0, 0, 1, 0], [], []>} : vector<9x8xf32>, vector<9x8xf32>, vector<9x9xf32> -> vector<9x9xf32>
    %cst_46 = arith.constant dense<0xFF800000> : vector<9xf32>
    %115 = vector.multi_reduction <maximumf>, %114, %cst_46 [1] : vector<9x9xf32> to vector<9xf32>
    %116 = vector.shape_cast %115 : vector<9xf32> to vector<9x1xf32>
    %117 = vector.broadcast %116 : vector<9x1xf32> to vector<9x9xf32>
    %118 = arith.subf %114, %117 : vector<9x9xf32>
    %119 = math.exp %118 : vector<9x9xf32>
    %cst_47 = arith.constant dense<0.000000e+00> : vector<9xf32>
    %120 = vector.multi_reduction <add>, %119, %cst_47 [1] : vector<9x9xf32> to vector<9xf32>
    %121 = vector.shape_cast %120 : vector<9xf32> to vector<9x1xf32>
    %122 = tpu.reciprocal %121 {approx = true} : vector<9x1xf32> -> vector<9x1xf32>
    %123 = vector.broadcast %122 : vector<9x1xf32> to vector<9x9xf32>
    %124 = arith.mulf %119, %123 : vector<9x9xf32>
    %cst_48 = arith.constant dense<0.000000e+00> : vector<9x8xf32>
    %125 = tpu.matmul %124, %113, %cst_48 {dimension_numbers = #tpu.dot_dimension_numbers<[1], [0], [0], [1], [0, 0, 1, 1], [], []>} : vector<9x9xf32>, vector<9x8xf32>, vector<9x8xf32> -> vector<9x8xf32>
    %126 = tpu.concatenate %80, %95, %110, %125 in 1 : vector<9x8xf32>, vector<9x8xf32>, vector<9x8xf32>, vector<9x8xf32> -> vector<9x32xf32>
    %c0_49 = arith.constant 0 : index
    %c0_50 = arith.constant 0 : index
    %127 = vector.load %arg9[%c0_49, %c0_50] : memref<32x32xf32, #tpu.memory_space<vmem>>, vector<32x32xf32>
    %cst_51 = arith.constant dense<0.000000e+00> : vector<9x32xf32>
    %128 = tpu.matmul %126, %127, %cst_51 {dimension_numbers = #tpu.dot_dimension_numbers<[1], [0], [0], [1], [0, 0, 1, 1], [], []>} : vector<9x32xf32>, vector<32x32xf32>, vector<9x32xf32> -> vector<9x32xf32>
    %c0_52 = arith.constant 0 : index
    %c0_53 = arith.constant 0 : index
    %129 = vector.load %arg10[%c0_52, %c0_53] : memref<1x32xf32, #tpu.memory_space<vmem>>, vector<1x32xf32>
    %130 = vector.broadcast %129 : vector<1x32xf32> to vector<9x32xf32>
    %131 = arith.addf %128, %130 : vector<9x32xf32>
    %132 = arith.addf %1, %131 : vector<9x32xf32>
    %c0_54 = arith.constant 0 : index
    %c0_55 = arith.constant 0 : index
    %c0_56 = arith.constant 0 : index
    %133 = vector.load %arg11[%c0_54, %c0_55, %c0_56] : memref<1x9x32xf32, #tpu.memory_space<vmem>>, vector<1x9x32xf32>
    %134 = vector.shape_cast %133 : vector<1x9x32xf32> to vector<9x32xf32>
    %135 = vector.shape_cast %132 : vector<9x32xf32> to vector<1x9x32xf32>
    tpu.vector_store %arg11[%c0_54, %c0_55, %c0_56], %135 {strides = array<i32>} : memref<1x9x32xf32, #tpu.memory_space<vmem>>, vector<1x9x32xf32>,
    return
  }
  func.func @transform_0(%arg0: i32) -> (i32, i32, i32) {
    %c0_i32 = arith.constant 0 : i32
    %c0_i32_0 = arith.constant 0 : i32
    %c0_i32_1 = arith.constant 0 : i32
    return %arg0, %c0_i32, %c0_i32_0 : i32, i32, i32
  }
  func.func @transform_1(%arg0: i32) -> (i32, i32, i32) {
    %c0_i32 = arith.constant 0 : i32
    %c0_i32_0 = arith.constant 0 : i32
    %c0_i32_1 = arith.constant 0 : i32
    return %arg0, %c0_i32, %c0_i32_0 : i32, i32, i32
  }
  func.func @transform_2(%arg0: i32) -> (i32, i32) {
    %c0_i32 = arith.constant 0 : i32
    %c0_i32_0 = arith.constant 0 : i32
    %c0_i32_1 = arith.constant 0 : i32
    return %c0_i32, %c0_i32_0 : i32, i32
  }
  func.func @transform_3(%arg0: i32) -> (i32, i32) {
    %c0_i32 = arith.constant 0 : i32
    %c0_i32_0 = arith.constant 0 : i32
    %c0_i32_1 = arith.constant 0 : i32
    return %c0_i32, %c0_i32_0 : i32, i32
  }
  func.func @transform_4(%arg0: i32) -> (i32, i32) {
    %c0_i32 = arith.constant 0 : i32
    %c0_i32_0 = arith.constant 0 : i32
    %c0_i32_1 = arith.constant 0 : i32
    return %c0_i32, %c0_i32_0 : i32, i32
  }
  func.func @transform_5(%arg0: i32) -> (i32, i32) {
    %c0_i32 = arith.constant 0 : i32
    %c0_i32_0 = arith.constant 0 : i32
    %c0_i32_1 = arith.constant 0 : i32
    return %c0_i32, %c0_i32_0 : i32, i32
  }
  func.func @transform_6(%arg0: i32) -> (i32, i32) {
    %c0_i32 = arith.constant 0 : i32
    %c0_i32_0 = arith.constant 0 : i32
    %c0_i32_1 = arith.constant 0 : i32
    return %c0_i32, %c0_i32_0 : i32, i32
  }
  func.func @transform_7(%arg0: i32) -> (i32, i32) {
    %c0_i32 = arith.constant 0 : i32
    %c0_i32_0 = arith.constant 0 : i32
    %c0_i32_1 = arith.constant 0 : i32
    return %c0_i32, %c0_i32_0 : i32, i32
  }
  func.func @transform_8(%arg0: i32) -> (i32, i32) {
    %c0_i32 = arith.constant 0 : i32
    %c0_i32_0 = arith.constant 0 : i32
    %c0_i32_1 = arith.constant 0 : i32
    return %c0_i32, %c0_i32_0 : i32, i32
  }
  func.func @transform_9(%arg0: i32) -> (i32, i32) {
    %c0_i32 = arith.constant 0 : i32
    %c0_i32_0 = arith.constant 0 : i32
    %c0_i32_1 = arith.constant 0 : i32
    return %c0_i32, %c0_i32_0 : i32, i32
  }
  func.func @transform_10(%arg0: i32) -> (i32, i32, i32) {
    %c0_i32 = arith.constant 0 : i32
    %c0_i32_0 = arith.constant 0 : i32
    %c0_i32_1 = arith.constant 0 : i32
    return %arg0, %c0_i32, %c0_i32_0 : i32, i32, i32
  }
}

</mosaic_0001>

<bundles_post_ra>
// kernel: hoi_transformer_forward.11
= control target key start
LH: loop header
LB: loop body
LE: loop exit
PB: predicated region body
PF: predicated region fallthrough
CT: control target
= control target key end

     0   :  { %s727_s24 = smov 0   ;;  %s832_s0 = inlined_call_operand.vmem [shape: f32[2,8,32], index: 0, kind: input, shape index: {}]   ;;  %s833_s1 = inlined_call_operand.vmem [shape: f32[1,32], index: 1, kind: input, shape index: {}]   ;;  %s834_s2 = inlined_call_operand.vmem [shape: f32[1,32], index: 2, kind: input, shape index: {}]   ;;  %s835_s3 = inlined_call_operand.vmem [shape: f32[32,128], index: 3, kind: input, shape index: {}]   ;;  %s836_s4 = inlined_call_operand.vmem [shape: f32[1,128], index: 4, kind: input, shape index: {}]   ;;  %s837_s5 = inlined_call_operand.vmem [shape: f32[128,32], index: 5, kind: input, shape index: {}]   ;;  %s838_s6 = inlined_call_operand.vmem [shape: f32[1,32], index: 6, kind: input, shape index: {}]   ;;  %s839_s7 = inlined_call_operand.vmem [shape: f32[2,8,32], index: 7, kind: output, shape index: {}]  }
   0x1 LB: > { %s546_s25 = sadd.s32 4294967295, %s682_s24   ;;  %p550_p0 = scmp.ge.s32.totalorder %s682_s24, 1  ;;  %s682_s24 = sphi %s727_s24, %s17_s24  }
   0x2   : > { %p236_p1 = scmp.lt.s32.totalorder %s682_s24, 3 }
   0x4   : > { %p237_p2 = pnand %p550_p0, %p236_p1 }
   0x5   : > { %p266_p3 = scmp.lt.s32.totalorder (!%p237_p2), %s546_s25, 1  ;;  %vm277_vm0 = vcmask (!%p237_p2), 261120   ;;  %v306_v7 = vld [vmem:[%s835_s3] sm:$0xff] (!%p237_p2)  ;;  %v307_v8 = vld [vmem:[%s835_s3 + $0x8] sm:$0xff] (!%p237_p2)  ;;  %v308_v9 = vld [vmem:[%s835_s3 + $0x10] sm:$0xff] (!%p237_p2)  ;;  %v684_v10 = vmov (!%p237_p2), 0.0|0.0  }
   0x6   : > { %240 = sbr.rel (%p237_p2) target bundleno = 791 (0x317), region = 48  ;;  %629 = vmatprep.subr.bf16.mxu0 (!%p237_p2), %v684_v10  ;;  %v630_v11 = vpack.c.bf16 (!%p237_p2), %v307_v8, %v306_v7  ;;  %v309_v12 = vld [vmem:[%s835_s3 + $0x18] sm:$0xff] (!%p237_p2)  ;;  %vm685_vm1 = vmmov (!%p237_p2), 0   ;;  %v686_v13 = vmov (!%p237_p2), 0.0   ;;  %635 = vmatprep.subr.bf16.mxu1 (!%p237_p2), %v684_v10  ;;  %v553_v19 = vld [vmem:[%s833_s1] ss:$0 sm:$0xff] (!%p237_p2) }
   0x7   : > { %591 = vmatprep.mubr.msk.f32.mxu0 (!%p237_p2), %vm685_vm1, %v686_v13  ;;  %626 = vmatprep.mubr.msk.f32.mxu1 (!%p237_p2), %vm685_vm1, %v686_v13  ;;  %v633_v14 = vpack.c.bf16 (!%p237_p2), %v309_v12, %v308_v9  ;;  %v554_v21 = vld [vmem:[%s834_s2] ss:$0 sm:$0xff] (!%p237_p2)  ;;  %v399_v25 = vld [vmem:[%s837_s5 + $0x8] sm:$0xff] (!%p237_p2)  ;;  %v400_v27 = vld [vmem:[%s837_s5 + $0x10] sm:$0xff] (!%p237_p2) }
   0x8   : > { %631 = vmatpush3.bf16.msra.mxu0 (!%p237_p2), %v630_v11  ;;  %v398_v24 = vld [vmem:[%s837_s5] sm:$0xff] (!%p237_p2)  ;;  %v401_v28 = vld [vmem:[%s837_s5 + $0x18] sm:$0xff] (!%p237_p2)  ;;  %v403_v31 = vld [vmem:[%s837_s5 + $0x28] sm:$0xff] (!%p237_p2) }
   0x9   : > { %632 = vmatprep.subr.bf16.mxu0 (!%p237_p2), %v684_v10  ;;  %v636_v26 = vpack.c.bf16 (!%p237_p2), %v399_v25, %v398_v24  ;;  %v639_v29 = vpack.c.bf16 (!%p237_p2), %v401_v28, %v400_v27  ;;  %v402_v30 = vld [vmem:[%s837_s5 + $0x20] sm:$0xff] (!%p237_p2)  ;;  %v404_v33 = vld [vmem:[%s837_s5 + $0x30] sm:$0xff] (!%p237_p2)  ;;  %v405_v34 = vld [vmem:[%s837_s5 + $0x38] sm:$0xff] (!%p237_p2) }
   0xa   : > { %v642_v32 = vpack.c.bf16 (!%p237_p2), %v403_v31, %v402_v30  ;;  %v645_v35 = vpack.c.bf16 (!%p237_p2), %v405_v34, %v404_v33  ;;  %v406_v36 = vld [vmem:[%s837_s5 + $0x40] sm:$0xff] (!%p237_p2)  ;;  %v407_v37 = vld [vmem:[%s837_s5 + $0x48] sm:$0xff] (!%p237_p2)  ;;  %v408_v39 = vld [vmem:[%s837_s5 + $0x50] sm:$0xff] (!%p237_p2) }
   0xb   : > { %637 = vmatpush3.bf16.msra.mxu1 (!%p237_p2), %v636_v26  ;;  %v648_v38 = vpack.c.bf16 (!%p237_p2), %v407_v37, %v406_v36  ;;  %v409_v40 = vld [vmem:[%s837_s5 + $0x58] sm:$0xff] (!%p237_p2)  ;;  %v410_v42 = vld [vmem:[%s837_s5 + $0x60] sm:$0xff] (!%p237_p2)  ;;  %v411_v43 = vld [vmem:[%s837_s5 + $0x68] sm:$0xff] (!%p237_p2) }
   0xc   : > { %634 = vmatpush3.bf16.msra.mxu0 (!%p237_p2), %v633_v14  ;;  %638 = vmatprep.subr.bf16.mxu1 (!%p237_p2), %v684_v10  ;;  %v651_v41 = vpack.c.bf16 (!%p237_p2), %v409_v40, %v408_v39  ;;  %v654_v44 = vpack.c.bf16 (!%p237_p2), %v411_v43, %v410_v42  ;;  %v412_v45 = vld [vmem:[%s837_s5 + $0x70] sm:$0xff] (!%p237_p2)  ;;  %v413_v46 = vld [vmem:[%s837_s5 + $0x78] sm:$0xff] (!%p237_p2)  ;;  %v555_v48 = vld [vmem:[%s836_s4] ss:$0 sm:$0xff] (!%p237_p2) }
   0xd   : > { %s841_s25 = smov (!%p266_p3, %s546_s25), 1  ;;  %v657_v47 = vpack.c.bf16 %v413_v46, %v412_v45  ;;  %v558_v58 = vld [vmem:[%s838_s6] ss:$0 sm:$0xff] }
   0xe   : > { %s551_s26 = sshll.u32 %s841_s25, 3 }
   0xf   : > { %s269_s29 = scalar_lea.vmem %s832_s0, %s551_s26  ;;  %640 = vmatpush3.bf16.msra.mxu1 %v639_v29  ;;  %s273_s17 = scalar_lea.vmem %s839_s7, %s551_s26 }
  0x10   : > { %v743_v0 = vld [vmem:[%s269_s29] sm:$0xff]  ;;  %641 = vmatprep.subr.bf16.mxu1 %v684_v10 }
  0x11   : > { %v278_v1 = vsel %vm277_vm0, %v743_v0, 0.0 }
  0x12   : > { %279 = vadd.xlane.f32.xlu0 %v278_v1 }
  0x13   : > { %643 = vmatpush3.bf16.msra.mxu1 %v642_v32 }
  0x14   : > { %644 = vmatprep.subr.bf16.mxu1 %v684_v10 }
  0x17   : > { %646 = vmatpush3.bf16.msra.mxu1 %v645_v35 }
  0x18   : > { %647 = vmatprep.subr.bf16.mxu1 %v684_v10 }
  0x1b   : > { %649 = vmatpush3.bf16.msra.mxu1 %v648_v38 }
  0x1c   : > { %650 = vmatprep.subr.bf16.mxu1 %v684_v10 }
  0x1f   : > { %652 = vmatpush3.bf16.msra.mxu1 %v651_v41 }
  0x20   : > { %653 = vmatprep.subr.bf16.mxu1 %v684_v10 }
  0x23   : > { %655 = vmatpush3.bf16.msra.mxu1 %v654_v44 }
  0x24   : > { %656 = vmatprep.subr.bf16.mxu1 %v684_v10 }
  0x27   : > { %658 = vmatpush3.bf16.msra.mxu1 %v657_v47 }
  0x9f   : > { %v280_v2 = vpop.xlane.xlu0 %279 }
  0xa0   : > { %v282_v3 = vmul.f32 0.03125, %v280_v2 }
  0xa2   : > { %v283_v4 = vsub.f32 %v743_v0, %v282_v3 }
  0xa4   : > { %v284_v5 = vmul.f32 %v283_v4, %v283_v4 }
  0xa6   : > { %v285_v6 = vsel %vm277_vm0, %v284_v5, 0.0 }
  0xa7   : > { %286 = vadd.xlane.f32.xlu0 %v285_v6 }
 0x134   : > { %v287_v15 = vpop.xlane.xlu0 %286 }
 0x135   : > { %v288_v16 = vmul.f32 0.03125, %v287_v15 }
 0x137   : > { %v289_v17 = vadd.f32 1e-05, %v288_v16 }
 0x139   : > { %670 = vrsqrt.f32 %v289_v17 }
 0x143   : > { %v671_v18 = vpop.eup %670 }
 0x144   : > { %v291_v20 = vmul.f32 %v671_v18, %v283_v4 }
 0x146   : > { %v298_v22 = vmul.f32 %v553_v19, %v291_v20 }
 0x148   : > { %v305_v23 = vadd.f32 %v554_v21, %v298_v22 }
 0x14a   : > { %592 = vmatmul.mubr.msk.f32.vlgmr.msra.gmra.mrb[0].mxu0 %vm277_vm0, %v305_v23 }
 0x21d   : > { %v386_v49 = vpop.f32.mrb[0].mxu0 }
 0x21e   : > { %v387_v50 = vadd.f32 %v555_v48, %v386_v49  ;;  %v593_v51 = vpop.f32.mrb[1].mxu0 }
 0x220   : > { %v557_v52 = vmul.f32 -1.702, %v387_v50 }
 0x222   : > { %v392_v53 = vmul.f32 1.442695, %v557_v52 }
 0x224   : > { %672 = vpow2.f32 %v392_v53 }
 0x22e   : > { %v673_v54 = vpop.eup %672 }
 0x22f   : > { %v394_v55 = vadd.f32 1.0, %v673_v54 }
 0x231   : > { %674 = vrcp.f32 %v394_v55 }
 0x23b   : > { %v675_v56 = vpop.eup %674 }
 0x23c   : > { %v397_v57 = vmul.f32 %v675_v56, %v387_v50 }
 0x23e   : > { %627 = vmatmul.mubr.f32.vlgmr.msra.gmra.mrb[0].mxu1 %v397_v57 }
 0x311   : > { %v487_v59 = vpop.f32.mrb[0].mxu1 }
 0x312   : > { %v488_v60 = vadd.f32 %v558_v58, %v487_v59  ;;  %v628_v61 = vpop.f32.mrb[1].mxu1 }
 0x314   : > { %v491_v62 = vadd.f32 %v488_v60, %v743_v0 }
 0x316   : > { %492 = vst.msk [vmem:[%s273_s17] sm:$0xff] %vm277_vm0, %v491_v62 }
 0x317 PF: > { %s17_s24 = sadd.s32 1, %s682_s24  }
 0x318   : > { %p14_p4 = scmp.ge.s32.totalorder %s17_s24, 4  }
 0x31a   :  { %16 = sbr.rel (!%p14_p4) target bundleno = 1 (0x1), region = 78 }

// kernel: hoi_transformer_forward.13
= control target key start
LH: loop header
LB: loop body
LE: loop exit
PB: predicated region body
PF: predicated region fallthrough
CT: control target
= control target key end

     0   :  { %s846_s24 = smov 0   ;;  %s991_s0 = inlined_call_operand.vmem [shape: f32[2,17,32], index: 0, kind: input, shape index: {}]   ;;  %s992_s1 = inlined_call_operand.vmem [shape: f32[1,32], index: 1, kind: input, shape index: {}]   ;;  %s993_s2 = inlined_call_operand.vmem [shape: f32[1,32], index: 2, kind: input, shape index: {}]   ;;  %s994_s3 = inlined_call_operand.vmem [shape: f32[32,128], index: 3, kind: input, shape index: {}]   ;;  %s995_s4 = inlined_call_operand.vmem [shape: f32[1,128], index: 4, kind: input, shape index: {}]   ;;  %s996_s5 = inlined_call_operand.vmem [shape: f32[128,32], index: 5, kind: input, shape index: {}]   ;;  %s997_s6 = inlined_call_operand.vmem [shape: f32[1,32], index: 6, kind: input, shape index: {}]   ;;  %s998_s7 = inlined_call_operand.vmem [shape: f32[2,17,32], index: 7, kind: output, shape index: {}]  }
   0x1 LB: > { %s632_s25 = sadd.s32 4294967295, %s801_s24   ;;  %p636_p0 = scmp.ge.s32.totalorder %s801_s24, 1  ;;  %s801_s24 = sphi %s846_s24, %s17_s24  }
   0x2   : > { %p237_p1 = scmp.lt.s32.totalorder %s801_s24, 3 }
   0x4   : > { %p238_p2 = pnand %p636_p0, %p237_p1 }
   0x5   : > { %p269_p3 = scmp.lt.s32.totalorder (!%p238_p2), %s632_s25, 1  ;;  %vm284_vm0 = vcmask (!%p238_p2), 261120   ;;  %vm291_vm1 = vcmask (!%p238_p2), 253952   ;;  %v344_v21 = vld [vmem:[%s994_s3] sm:$0xff] (!%p238_p2)  ;;  %v345_v22 = vld [vmem:[%s994_s3 + $0x8] sm:$0xff] (!%p238_p2)  ;;  %v346_v23 = vld [vmem:[%s994_s3 + $0x10] sm:$0xff] (!%p238_p2) }
   0x6   : > { %241 = sbr.rel (%p238_p2) target bundleno = 801 (0x321), region = 48  ;;  %v803_v24 = vmov (!%p238_p2), 0.0|0.0   ;;  %v736_v25 = vpack.c.bf16 (!%p238_p2), %v345_v22, %v344_v21  ;;  %v347_v26 = vld [vmem:[%s994_s3 + $0x18] sm:$0xff] (!%p238_p2)  ;;  %vm804_vm2 = vmmov (!%p238_p2), 0   ;;  %v805_v27 = vmov (!%p238_p2), 0.0   ;;  %v468_v52 = vld [vmem:[%s996_s5] sm:$0xff] (!%p238_p2) }
   0x7   : > { %735 = vmatprep.subr.bf16.mxu0 (!%p238_p2), %v803_v24  ;;  %685 = vmatprep.mubr.msk.f32.mxu0 (!%p238_p2), %vm804_vm2, %v805_v27  ;;  %v739_v28 = vpack.c.bf16 (!%p238_p2), %v347_v26, %v346_v23  ;;  %v639_v39 = vld [vmem:[%s992_s1] ss:$0 sm:$0xff] (!%p238_p2)  ;;  %v469_v53 = vld [vmem:[%s996_s5 + $0x8] sm:$0xff] (!%p238_p2)  ;;  %v470_v55 = vld [vmem:[%s996_s5 + $0x10] sm:$0xff] (!%p238_p2) }
   0x8   : > { %741 = vmatprep.subr.bf16.mxu1 (!%p238_p2), %v803_v24  ;;  %726 = vmatprep.mubr.msk.f32.mxu1 (!%p238_p2), %vm804_vm2, %v805_v27  ;;  %v640_v41 = vld [vmem:[%s993_s2] ss:$0 sm:$0xff] (!%p238_p2)  ;;  %v742_v54 = vpack.c.bf16 (!%p238_p2), %v469_v53, %v468_v52  ;;  %v471_v56 = vld [vmem:[%s996_s5 + $0x18] sm:$0xff] (!%p238_p2)  ;;  %v473_v59 = vld [vmem:[%s996_s5 + $0x28] sm:$0xff] (!%p238_p2) }
   0x9   : > { %737 = vmatpush3.bf16.msra.mxu0 (!%p238_p2), %v736_v25  ;;  %v745_v57 = vpack.c.bf16 (!%p238_p2), %v471_v56, %v470_v55  ;;  %v472_v58 = vld [vmem:[%s996_s5 + $0x20] sm:$0xff] (!%p238_p2)  ;;  %v474_v61 = vld [vmem:[%s996_s5 + $0x30] sm:$0xff] (!%p238_p2)  ;;  %v475_v62 = vld [vmem:[%s996_s5 + $0x38] sm:$0xff] (!%p238_p2) }
   0xa   : > { %738 = vmatprep.subr.bf16.mxu0 (!%p238_p2), %v803_v24  ;;  %743 = vmatpush3.bf16.msra.mxu1 (!%p238_p2), %v742_v54  ;;  %v748_v60 = vpack.c.bf16 (!%p238_p2), %v473_v59, %v472_v58  ;;  %v751_v63 = vpack.c.bf16 (!%p238_p2), %v475_v62, %v474_v61 }
   0xb   : > { %744 = vmatprep.subr.bf16.mxu1 (!%p238_p2), %v803_v24 }
   0xd   : > { %s1000_s25 = smov (!%p269_p3, %s632_s25), 1  ;;  %740 = vmatpush3.bf16.msra.mxu0 %v739_v28 }
   0xe   : > { %s765_s26 = smul.u32 24, %s1000_s25  ;;  %746 = vmatpush3.bf16.msra.mxu1 %v745_v57 }
   0xf   : > { %747 = vmatprep.subr.bf16.mxu1 %v803_v24 }
  0x10   : > { %s273_s29 = scalar_lea.vmem %s991_s0, %s765_s26  ;;  %s278_s17 = scalar_lea.vmem %s998_s7, %s765_s26 }
  0x11   : > { %v862_v0 = vld [vmem:[%s273_s29] sm:$0xff]  ;;  %v864_v1 = vld [vmem:[%s273_s29 + $0x10] sm:$0x1]  ;;  %v866_v2 = vld [vmem:[%s273_s29 + $0x8] sm:$0xff] }
  0x12   : > { %v285_v3 = vsel %vm284_vm0, %v862_v0, 0.0  ;;  %v292_v4 = vsel %vm291_vm1, %v864_v1, 0.0  ;;  %v288_v5 = vsel %vm284_vm0, %v866_v2, 0.0  ;;  %749 = vmatpush3.bf16.msra.mxu1 %v748_v60 }
  0x13   : > { %286 = vadd.xlane.f32.xlu0 %v285_v3  ;;  %293 = vadd.xlane.f32.xlu1 %v292_v4  ;;  %v476_v3 = vld [vmem:[%s996_s5 + $0x40] sm:$0xff]  ;;  %v477_v4 = vld [vmem:[%s996_s5 + $0x48] sm:$0xff] }
  0x14   : > { %750 = vmatprep.subr.bf16.mxu1 %v803_v24 }
  0x16   : > { %752 = vmatpush3.bf16.msra.mxu1 %v751_v63 }
  0x17   : > { %289 = vadd.xlane.f32.xlu0 %v288_v5  ;;  %753 = vmatprep.subr.bf16.mxu1 %v803_v24  ;;  %v754_v5 = vpack.c.bf16 %v477_v4, %v476_v3 }
  0x1a   : > { %755 = vmatpush3.bf16.msra.mxu1 %v754_v5 }
  0x1b   : > { %756 = vmatprep.subr.bf16.mxu1 %v803_v24 }
  0xa0   : > { %v287_v6 = vpop.xlane.xlu0 %286  ;;  %v294_v7 = vpop.xlane.xlu1 %293 }
  0xa1   : > { %v296_v8 = vmul.f32 0.03125, %v287_v6  ;;  %v298_v9 = vmul.f32 0.03125, %v294_v7  ;;  %v478_v6 = vld [vmem:[%s996_s5 + $0x50] sm:$0xff]  ;;  %v479_v7 = vld [vmem:[%s996_s5 + $0x58] sm:$0xff] }
  0xa3   : > { %v299_v10 = vsub.f32 %v862_v0, %v296_v8  ;;  %v301_v11 = vsub.f32 %v864_v1, %v298_v9  ;;  %v757_v8 = vpack.c.bf16 %v479_v7, %v478_v6  ;;  %v480_v9 = vld [vmem:[%s996_s5 + $0x60] sm:$0xff] }
  0xa4   : > { %v290_v12 = vpop.xlane.xlu0 %289 }
  0xa5   : > { %v297_v13 = vmul.f32 0.03125, %v290_v12  ;;  %v302_v14 = vmul.f32 %v299_v10, %v299_v10  ;;  %v304_v15 = vmul.f32 %v301_v11, %v301_v11  ;;  %758 = vmatpush3.bf16.msra.mxu1 %v757_v8  ;;  %v482_v12 = vld [vmem:[%s996_s5 + $0x70] sm:$0xff] }
  0xa6   : > { %759 = vmatprep.subr.bf16.mxu1 %v803_v24 }
  0xa7   : > { %v300_v16 = vsub.f32 %v866_v2, %v297_v13  ;;  %v305_v17 = vsel %vm284_vm0, %v302_v14, 0.0  ;;  %v311_v18 = vsel %vm291_vm1, %v304_v15, 0.0  ;;  %v483_v13 = vld [vmem:[%s996_s5 + $0x78] sm:$0xff]  ;;  %v641_v15 = vld [vmem:[%s995_s4] ss:$0 sm:$0xff] }
  0xa8   : > { %306 = vadd.xlane.f32.xlu1 %v305_v17  ;;  %v763_v14 = vpack.c.bf16 %v483_v13, %v482_v12 }
  0xa9   : > { %v303_v19 = vmul.f32 %v300_v16, %v300_v16 }
  0xab   : > { %v308_v20 = vsel %vm284_vm0, %v303_v19, 0.0 }
  0xac   : > { %312 = vadd.xlane.f32.xlu1 %v311_v18  ;;  %309 = vadd.xlane.f32.xlu0 %v308_v20 }
 0x135   : > { %v307_v29 = vpop.xlane.xlu1 %306 }
 0x136   : > { %v314_v30 = vmul.f32 0.03125, %v307_v29 }
 0x138   : > { %v317_v31 = vadd.f32 1e-05, %v314_v30 }
 0x139   : > { %v313_v32 = vpop.xlane.xlu1 %312  ;;  %v310_v33 = vpop.xlane.xlu0 %309 }
 0x13a   : > { %777 = vrsqrt.f32 %v317_v31  ;;  %v316_v34 = vmul.f32 0.03125, %v313_v32  ;;  %v315_v35 = vmul.f32 0.03125, %v310_v33 }
 0x13c   : > { %v319_v36 = vadd.f32 1e-05, %v316_v34  ;;  %v318_v37 = vadd.f32 1e-05, %v315_v35 }
 0x13e   : > { %779 = vrsqrt.f32 %v319_v36 }
 0x13f   : > { %781 = vrsqrt.f32 %v318_v37 }
 0x144   : > { %v778_v38 = vpop.eup %777 }
 0x145   : > { %v323_v40 = vmul.f32 %v778_v38, %v299_v10  ;;  %v481_v10 = vld [vmem:[%s996_s5 + $0x68] sm:$0xff] }
 0x147   : > { %v332_v42 = vmul.f32 %v639_v39, %v323_v40 }
 0x148   : > { %v780_v43 = vpop.eup %779 }
 0x149   : > { %v782_v44 = vpop.eup %781  ;;  %v341_v45 = vadd.f32 %v640_v41, %v332_v42  ;;  %v325_v47 = vmul.f32 %v780_v43, %v301_v11  ;;  %v760_v11 = vpack.c.bf16 %v481_v10, %v480_v9 }
 0x14a   : > { %v324_v46 = vmul.f32 %v782_v44, %v300_v16  ;;  %v648_v44 = vld [vmem:[%s997_s6] ss:$0 sm:$0xff] }
 0x14b   : > { %686 = vmatmul.mubr.msk.f32.vlgmr.msra.gmra.mrb[0].mxu0 %vm284_vm0, %v341_v45  ;;  %v334_v50 = vmul.f32 %v639_v39, %v325_v47  ;;  %761 = vmatpush3.bf16.msra.mxu1 %v760_v11 }
 0x14c   : > { %688 = vmatprep.mubr.msk.f32.mxu0 %vm804_vm2, %v805_v27  ;;  %v333_v48 = vmul.f32 %v639_v39, %v324_v46  ;;  %762 = vmatprep.subr.bf16.mxu1 %v803_v24 }
 0x14d   : > { %v343_v51 = vadd.f32 %v640_v41, %v334_v50 }
 0x14e   : > { %v342_v49 = vadd.f32 %v640_v41, %v333_v48 }
 0x14f   : > { %764 = vmatpush3.bf16.msra.mxu1 %v763_v14 }
 0x150   : > { %689 = vmatmul.mubr.msk.f32.gmra.mrb[2].mxu0 %vm284_vm0, %v342_v49 }
 0x151   : > { %691 = vmatprep.mubr.msk.f32.mxu0 %vm804_vm2, %v805_v27 }
 0x154   : > { %692 = vmatmul.mubr.msk.f32.gmra.mrb[4].mxu0 %vm284_vm0, %v343_v51 }
 0x21e   : > { %v430_v16 = vpop.f32.mrb[0].mxu0 }
 0x21f   : > { %v431_v17 = vadd.f32 %v641_v15, %v430_v16  ;;  %v687_v18 = vpop.f32.mrb[1].mxu0 }
 0x221   : > { %v645_v19 = vmul.f32 -1.702, %v431_v17 }
 0x223   : > { %v450_v20 = vmul.f32 1.442695, %v645_v19  ;;  %v435_v21 = vpop.f32.mrb[2].mxu0 }
 0x224   : > { %v436_v22 = vadd.f32 %v641_v15, %v435_v21  ;;  %v690_v23 = vpop.f32.mrb[3].mxu0 }
 0x225   : > { %783 = vpow2.f32 %v450_v20 }
 0x226   : > { %v646_v24 = vmul.f32 -1.702, %v436_v22 }
 0x227   : > { %v440_v25 = vpop.f32.mrb[4].mxu0 }
 0x228   : > { %v452_v26 = vmul.f32 1.442695, %v646_v24  ;;  %v441_v28 = vadd.f32 %v641_v15, %v440_v25  ;;  %v693_v29 = vpop.f32.mrb[5].mxu0 }
 0x22a   : > { %785 = vpow2.f32 %v452_v26  ;;  %v647_v30 = vmul.f32 -1.702, %v441_v28 }
 0x22c   : > { %v454_v31 = vmul.f32 1.442695, %v647_v30 }
 0x22e   : > { %787 = vpow2.f32 %v454_v31 }
 0x22f   : > { %v784_v32 = vpop.eup %783 }
 0x230   : > { %v456_v33 = vadd.f32 1.0, %v784_v32 }
 0x232   : > { %789 = vrcp.f32 %v456_v33 }
 0x234   : > { %v786_v34 = vpop.eup %785 }
 0x235   : > { %v457_v35 = vadd.f32 1.0, %v786_v34 }
 0x237   : > { %791 = vrcp.f32 %v457_v35 }
 0x238   : > { %v788_v36 = vpop.eup %787 }
 0x239   : > { %v458_v37 = vadd.f32 1.0, %v788_v36 }
 0x23b   : > { %793 = vrcp.f32 %v458_v37 }
 0x23c   : > { %v790_v38 = vpop.eup %789 }
 0x23d   : > { %v465_v39 = vmul.f32 %v790_v38, %v431_v17 }
 0x23f   : > { %727 = vmatmul.mubr.f32.vlgmr.msra.gmra.mrb[0].mxu1 %v465_v39 }
 0x240   : > { %729 = vmatprep.mubr.msk.f32.mxu1 %vm804_vm2, %v805_v27 }
 0x241   : > { %v792_v40 = vpop.eup %791 }
 0x242   : > { %v466_v41 = vmul.f32 %v792_v40, %v436_v22 }
 0x244   : > { %730 = vmatmul.mubr.f32.gmra.mrb[2].mxu1 %v466_v41 }
 0x245   : > { %v794_v42 = vpop.eup %793  ;;  %732 = vmatprep.mubr.msk.f32.mxu1 %vm804_vm2, %v805_v27 }
 0x246   : > { %v467_v43 = vmul.f32 %v794_v42, %v441_v28 }
 0x248   : > { %733 = vmatmul.mubr.f32.gmra.mrb[4].mxu1 %v467_v43 }
 0x312   : > { %v557_v45 = vpop.f32.mrb[0].mxu1 }
 0x313   : > { %v558_v46 = vadd.f32 %v648_v44, %v557_v45  ;;  %v728_v47 = vpop.f32.mrb[1].mxu1 }
 0x315   : > { %v571_v48 = vadd.f32 %v558_v46, %v862_v0 }
 0x317   : > { %574 = vst.msk [vmem:[%s278_s17] sm:$0xff] %vm284_vm0, %v571_v48  ;;  %v562_v49 = vpop.f32.mrb[2].mxu1 }
 0x318   : > { %v563_v27 = vadd.f32 %v648_v44, %v562_v49  ;;  %v731_v50 = vpop.f32.mrb[3].mxu1 }
 0x31a   : > { %v572_v51 = vadd.f32 %v563_v27, %v866_v2 }
 0x31b   : > { %v567_v52 = vpop.f32.mrb[4].mxu1 }
 0x31c   : > { %575 = vst.msk [vmem:[%s278_s17 + $0x8] sm:$0xff] %vm284_vm0, %v572_v51  ;;  %v568_v53 = vadd.f32 %v648_v44, %v567_v52  ;;  %v734_v54 = vpop.f32.mrb[5].mxu1 }
 0x31e   : > { %v573_v55 = vadd.f32 %v568_v53, %v864_v1 }
 0x320   : > { %576 = vst.msk [vmem:[%s278_s17 + $0x10] sm:$0x1] %vm291_vm1, %v573_v55 }
 0x321 PF: > { %s17_s24 = sadd.s32 1, %s801_s24  }
 0x322   : > { %p14_p4 = scmp.ge.s32.totalorder %s17_s24, 4  }
 0x324   :  { %16 = sbr.rel (!%p14_p4) target bundleno = 1 (0x1), region = 78 }

// kernel: hoi_transformer_forward.10
= control target key start
LH: loop header
LB: loop body
LE: loop exit
PB: predicated region body
PF: predicated region fallthrough
CT: control target
= control target key end

     0   :  { %s2525_s0 = inlined_call_operand.vmem [shape: f32[2,8,32], index: 0, kind: input, shape index: {}]   ;;  %s2526_s1 = inlined_call_operand.vmem [shape: f32[2,17,32], index: 1, kind: input, shape index: {}]   ;;  %s2527_s2 = inlined_call_operand.vmem [shape: f32[1,32], index: 2, kind: input, shape index: {}]   ;;  %s2528_s3 = inlined_call_operand.vmem [shape: f32[1,32], index: 3, kind: input, shape index: {}]   ;;  %s2529_s4 = inlined_call_operand.vmem [shape: f32[32,32], index: 4, kind: input, shape index: {}]   ;;  %s2530_s5 = inlined_call_operand.vmem [shape: f32[1,32], index: 5, kind: input, shape index: {}]   ;;  %s2531_s6 = inlined_call_operand.vmem [shape: f32[32,64], index: 6, kind: input, shape index: {}]   ;;  %s2532_s7 = inlined_call_operand.vmem [shape: f32[1,64], index: 7, kind: input, shape index: {}]   ;;  %s2533_s8 = inlined_call_operand.vmem [shape: f32[32,32], index: 8, kind: input, shape index: {}]   ;;  %s2534_s9 = inlined_call_operand.vmem [shape: f32[1,32], index: 9, kind: input, shape index: {}]   ;;  %s2535_s10 = inlined_call_operand.vmem [shape: f32[2,1,17], index: 10, kind: input, shape index: {}]   ;;  %s2536_s11 = inlined_call_operand.vmem [shape: f32[2,8,32], index: 11, kind: output, shape index: {0}]   ;;  %s2537_s12 = inlined_call_operand.hbm [shape: f32[2,8,17], index: 12, kind: output, shape index: {1}]  }
   0x1   :  { %2540 = sst [smem:[#allocation5_spill]] %s2525_s0 }
   0x2   :  { %2541 = sst [smem:[#allocation6_spill]] %s2526_s1 }
   0x3   :  { %2542 = sst [smem:[#allocation7_spill]] %s2527_s2 }
   0x4   :  { %2543 = sst [smem:[#allocation8_spill]] %s2528_s3 }
   0x5   :  { %18 = vsyncpa [#allocation3], 0 }
   0x6   :  { %20 = vsyncpa [#allocation3 + $0x1], 0  ;;  %s2187_s21 = smov 0   ;;  %s2189_s22 = smov 0  }
   0x7   :  { %s2191_s23 = smov 0   ;;  %s2193_s24 = smov 0  }
   0x8 LB: > { %s2208_s25 = sadd.s32 4294967295, %s2106_s24   ;;  %s1679_s26 = sadd.s32 4294967294, %s2106_s24   ;;  %s2106_s24 = sphi %s2193_s24, %s2557_s24   ;;  %s2102_s23 = sphi %s2191_s23, %s2556_s23   ;;  %s2098_s22 = sphi %s2189_s22, %s2555_s22   ;;  %s2094_s21 = sphi %s2187_s21, %s2554_s21  }
   0x9   : > { %s2212_s27 = sadd.s32 1, %s2106_s24   ;;  %s305_s28 = sadd.s32 1, %s2102_s23 }
   0xa   : > { %s302_s29 = ssub.s32 %s2106_s24, %s2212_s27  ;;  %p315_p0 = scmp.ne.s32.totalorder %s2102_s23, %s2098_s22 }
   0xb   : > { %p303_p1 = scmp.eq.s32.totalorder %s302_s29, 0  ;;  %p316_p2 = scmp.eq.s32.totalorder %s2208_s25, 1 }
   0xc   : > { %p321_p3 = scmp.ne.s32.totalorder %s2098_s22, %s2094_s21  ;;  %p322_p4 = scmp.eq.s32.totalorder %s1679_s26, 1 }
   0xd   : > { %s2223_s30 = scalar_select %p303_p1, %s2102_s23, %s305_s28  }
   0xe   : > { %p2225_p5 = por %p316_p2, %p315_p0  ;;  %p2229_p6 = por %p322_p4, %p321_p3 }
   0xf   : > { %p1682_p7 = scmp.ge.s32.totalorder %s2106_s24, 1  ;;  %p385_p8 = scmp.lt.s32.totalorder %s2106_s24, 3 }
  0x11   : > { %p386_p9 = pnand %p1682_p7, %p385_p8 }
  0x12   : > { %p438_p10 = scmp.lt.s32.totalorder (!%p386_p9), %s2208_s25, 1  ;;  %vm457_vm0 = vcmask (!%p386_p9), 261120   ;;  %vm495_vm1 = vcmask (!%p386_p9), 253952   ;;  %s2546_s0 = sld [smem:[#allocation5_spill]] (!%p386_p9)  ;;  %v620_v28 = vld [vmem:[%s2531_s6] sm:$0xff] (!%p386_p9)  ;;  %v621_v29 = vld [vmem:[%s2531_s6 + $0x8] sm:$0xff] (!%p386_p9) }
  0x13   : > { %389 = sbr.rel (%p386_p9) target bundleno = 2852 (0xb24), region = 64  ;;  %s2547_s1 = sld [smem:[#allocation6_spill]] (!%p386_p9)  ;;  %v622_v30 = vld [vmem:[%s2531_s6 + $0x10] sm:$0xff] (!%p386_p9)  ;;  %v2108_v31 = vmov (!%p386_p9), 0.0|0.0   ;;  %v1893_v32 = vpack.c.bf16 (!%p386_p9), %v621_v29, %v620_v28  ;;  %v623_v33 = vld [vmem:[%s2531_s6 + $0x18] sm:$0xff] (!%p386_p9)  ;;  %vm2109_vm2 = vmmov (!%p386_p9), 0  }
  0x14   : > { %1892 = vmatprep.subr.bf16.mxu1 (!%p386_p9), %v2108_v31  ;;  %v2110_v34 = vmov (!%p386_p9), 0.0   ;;  %1886 = vmatprep.subr.bf16.mxu0 (!%p386_p9), %v2108_v31  ;;  %v1896_v35 = vpack.c.bf16 (!%p386_p9), %v623_v33, %v622_v30  ;;  %v535_v36 = vld [vmem:[%s2529_s4] sm:$0xff] (!%p386_p9)  ;;  %v536_v37 = vld [vmem:[%s2529_s4 + $0x8] sm:$0xff] (!%p386_p9)  ;;  %v537_v39 = vld [vmem:[%s2529_s4 + $0x10] sm:$0xff] (!%p386_p9)  ;;  %s2548_s2 = sld [smem:[#allocation7_spill]] (!%p386_p9)  ;;  %s2549_s3 = sld [smem:[#allocation8_spill]] (!%p386_p9) }
  0x15   : > { %1794 = vmatprep.mubr.msk.f32.mxu1 (!%p386_p9), %vm2109_vm2, %v2110_v34  ;;  %1783 = vmatprep.mubr.msk.f32.mxu0 (!%p386_p9), %vm2109_vm2, %v2110_v34  ;;  %v1887_v38 = vpack.c.bf16 (!%p386_p9), %v536_v37, %v535_v36  ;;  %v538_v40 = vld [vmem:[%s2529_s4 + $0x18] sm:$0xff] (!%p386_p9)  ;;  %vm727_vm3 = vcmask (!%p386_p9), 64512   ;;  %vm810_vm5 = vcmask (!%p386_p9), 138240   ;;  %s2113_s26 = smov (!%p386_p9), 88   ;;  %s2114_s28 = smov (!%p386_p9), 112   ;;  %vm833_vm6 = vcmask (!%p386_p9), 1040384  }
  0x16   : > { %1894 = vmatpush3.bf16.msra.mxu1 (!%p386_p9), %v1893_v32  ;;  %v1890_v41 = vpack.c.bf16 (!%p386_p9), %v538_v40, %v537_v39  ;;  %vm2341_vm4 = vmpackc.low (!%p386_p9), %vm727_vm3, %vm727_vm3  ;;  %s2117_s18 = smov (!%p386_p9), 72   ;;  %vm1462_vm7 = vcmask (!%p386_p9), 130048   ;;  %vm1464_vm8 = vcmask (!%p386_p9), 195584  }
  0x17   : > { %1895 = vmatprep.subr.bf16.mxu1 (!%p386_p9), %v2108_v31  ;;  %1888 = vmatpush3.bf16.msra.mxu0 (!%p386_p9), %v1887_v38 }
  0x18   : > { %1889 = vmatprep.subr.bf16.mxu0 (!%p386_p9), %v2108_v31 }
  0x1a   : > { %s2237_s15 = scalar_select %p438_p10, %s2208_s25, 1  ;;  %1897 = vmatpush3.bf16.msra.mxu1 %v1896_v35  ;;  %v1687_v55 = vld [vmem:[%s2548_s2] ss:$0 sm:$0xff] }
  0x1b   : > { %1902 = vmatprep.subr.bf16.mxu1 %v2108_v31  ;;  %1891 = vmatpush3.bf16.msra.mxu0 %v1890_v41  ;;  %v1688_v57 = vld [vmem:[%s2549_s3] ss:$0 sm:$0xff] }
  0x1c   : > { %s1932_s16 = smul.u32 24, %s2237_s15  ;;  %s2538_s17 = sshll.u32 %s2237_s15, 3  ;;  %1898 = vmatprep.subr.bf16.mxu0 %v2108_v31 }
  0x1d   : > { %s441_s20 = scalar_lea.vmem %s2546_s0, %s2538_s17  ;;  %s449_s19 = scalar_lea.vmem %s2535_s10, %s2237_s15 }
  0x1e   : > { %s446_s29 = scalar_lea.vmem %s2547_s1, %s1932_s16  ;;  %v2249_v0 = vld [vmem:[%s441_s20] sm:$0xff]  ;;  %s2111_s16 = smov 120  }
  0x1f   : > { %v486_v1 = vld [vmem:[%s446_s29] sm:$0xff]  ;;  %v488_v2 = vld [vmem:[%s446_s29 + $0x10] sm:$0x1]  ;;  %v487_v3 = vld [vmem:[%s446_s29 + $0x8] sm:$0xff]  ;;  %v458_v7 = vsel %vm457_vm0, %v2249_v0, 0.0  ;;  %s2112_s20 = smov 96  }
  0x20   : > { %v489_v4 = vsel %vm457_vm0, %v486_v1, 0.0  ;;  %v496_v5 = vsel %vm495_vm1, %v488_v2, 0.0  ;;  %v492_v6 = vsel %vm457_vm0, %v487_v3, 0.0  ;;  %v2376_v35 = vld [vmem:[%s449_s19] ss:$0 sm:$0xff]  ;;  %s2115_s29 = smov 80  }
  0x21   : > { %490 = vadd.xlane.f32.xlu0 %v489_v4  ;;  %497 = vadd.xlane.f32.xlu1 %v496_v5  ;;  %s2118_s17 = smov 8   ;;  %s2119_s19 = smov 16  }
  0x22   : > { %s1723_s0 = sshll.u32 %s2208_s25, 7 }
  0x25   : > { %493 = vadd.xlane.f32.xlu0 %v492_v6  ;;  %459 = vadd.xlane.f32.xlu1 %v458_v7 }
  0xae   : > { %v491_v8 = vpop.xlane.xlu0 %490  ;;  %v498_v9 = vpop.xlane.xlu1 %497 }
  0xaf   : > { %v499_v10 = vmul.f32 0.03125, %v491_v8  ;;  %v501_v11 = vmul.f32 0.03125, %v498_v9 }
  0xb1   : > { %v2256_v12 = vsub.f32 %v486_v1, %v499_v10  ;;  %v2258_v13 = vsub.f32 %v488_v2, %v501_v11  ;;  %v1691_v11 = vld [vmem:[%s2532_s7] ss:$0 sm:$0xff] }
  0xb2   : > { %v494_v14 = vpop.xlane.xlu0 %493  ;;  %v460_v15 = vpop.xlane.xlu1 %459 }
  0xb3   : > { %v500_v16 = vmul.f32 0.03125, %v494_v14  ;;  %v505_v17 = vmul.f32 %v2256_v12, %v2256_v12  ;;  %v462_v18 = vmul.f32 0.03125, %v460_v15  ;;  %v507_v19 = vmul.f32 %v2258_v13, %v2258_v13 }
  0xb5   : > { %v2264_v20 = vsub.f32 %v487_v3, %v500_v16  ;;  %v508_v21 = vsel %vm457_vm0, %v505_v17, 0.0  ;;  %v2268_v22 = vsub.f32 %v2249_v0, %v462_v18  ;;  %v514_v23 = vsel %vm495_vm1, %v507_v19, 0.0  ;;  %v1689_v16 = vld [vmem:[%s2530_s5] ss:$0 sm:$0xff] }
  0xb6   : > { %509 = vadd.xlane.f32.xlu0 %v508_v21 }
  0xb7   : > { %v506_v24 = vmul.f32 %v2264_v20, %v2264_v20  ;;  %v464_v25 = vmul.f32 %v2268_v22, %v2268_v22 }
  0xb9   : > { %v511_v26 = vsel %vm457_vm0, %v506_v24, 0.0  ;;  %v465_v27 = vsel %vm457_vm0, %v464_v25, 0.0 }
  0xba   : > { %515 = vadd.xlane.f32.xlu0 %v514_v23  ;;  %512 = vadd.xlane.f32.xlu1 %v511_v26 }
  0xbe   : > { %466 = vadd.xlane.f32.xlu1 %v465_v27 }
 0x143   : > { %v510_v42 = vpop.xlane.xlu0 %509 }
 0x144   : > { %v517_v43 = vmul.f32 0.03125, %v510_v42 }
 0x146   : > { %v520_v44 = vadd.f32 1e-05, %v517_v43 }
 0x147   : > { %v516_v45 = vpop.xlane.xlu0 %515  ;;  %v513_v46 = vpop.xlane.xlu1 %512 }
 0x148   : > { %2020 = vrsqrt.f32 %v520_v44  ;;  %v519_v47 = vmul.f32 0.03125, %v516_v45  ;;  %v518_v48 = vmul.f32 0.03125, %v513_v46 }
 0x14a   : > { %v522_v49 = vadd.f32 1e-05, %v519_v47  ;;  %v521_v50 = vadd.f32 1e-05, %v518_v48 }
 0x14b   : > { %v467_v51 = vpop.xlane.xlu1 %466 }
 0x14c   : > { %2022 = vrsqrt.f32 %v522_v49  ;;  %v468_v52 = vmul.f32 0.03125, %v467_v51 }
 0x14d   : > { %2024 = vrsqrt.f32 %v521_v50 }
 0x14e   : > { %v469_v53 = vadd.f32 1e-05, %v468_v52 }
 0x150   : > { %2026 = vrsqrt.f32 %v469_v53 }
 0x152   : > { %v2021_v54 = vpop.eup %2020 }
 0x153   : > { %v526_v56 = vmul.f32 %v2021_v54, %v2256_v12 }
 0x155   : > { %v529_v58 = vmul.f32 %v1687_v55, %v526_v56 }
 0x156   : > { %v2023_v59 = vpop.eup %2022 }
 0x157   : > { %v2025_v60 = vpop.eup %2024  ;;  %v532_v61 = vadd.f32 %v1688_v57, %v529_v58  ;;  %v528_v63 = vmul.f32 %v2023_v59, %v2258_v13 }
 0x158   : > { %v527_v62 = vmul.f32 %v2025_v60, %v2264_v20 }
 0x159   : > { %1795 = vmatmul.mubr.msk.f32.vlgmr.msra.gmra.mrb[0].mxu1 %vm457_vm0, %v532_v61  ;;  %v531_v5 = vmul.f32 %v1687_v55, %v528_v63 }
 0x15a   : > { %v2027_v1 = vpop.eup %2026  ;;  %1797 = vmatprep.mubr.msk.f32.mxu1 %vm2109_vm2, %v2110_v34  ;;  %v530_v2 = vmul.f32 %v1687_v55, %v527_v62 }
 0x15b   : > { %v471_v3 = vmul.f32 %v2027_v1, %v2268_v22  ;;  %v534_v8 = vadd.f32 %v1688_v57, %v531_v5 }
 0x15c   : > { %v533_v4 = vadd.f32 %v1688_v57, %v530_v2 }
 0x15d   : > { %v478_v6 = vmul.f32 %v1687_v55, %v471_v3 }
 0x15e   : > { %1798 = vmatmul.mubr.msk.f32.gmra.mrb[2].mxu1 %vm457_vm0, %v533_v4 }
 0x15f   : > { %1800 = vmatprep.mubr.msk.f32.mxu1 %vm2109_vm2, %v2110_v34  ;;  %v485_v7 = vadd.f32 %v1688_v57, %v478_v6 }
 0x161   : > { %1784 = vmatmul.mubr.msk.f32.vlgmr.msra.gmra.mrb[0].mxu0 %vm457_vm0, %v485_v7 }
 0x162   : > { %1801 = vmatmul.mubr.msk.f32.gmra.mrb[4].mxu1 %vm457_vm0, %v534_v8  ;;  %1809 = vmatprep.mubr.msk.f32.mxu0 %vm2109_vm2, %v2110_v34 }
 0x163   : > { %1818 = vmatprep.mubr.msk.f32.mxu1 %vm2109_vm2, %v2110_v34 }
 0x22c   : > { %v706_v9 = vpop.f32.mrb[0].mxu1 }
 0x22d   : > { %v1796_v10 = vpop.f32.mrb[1].mxu1  ;;  %v707_v13 = vadd.f32 %v1691_v11, %v706_v9 }
 0x231   : > { %v711_v12 = vpop.f32.mrb[2].mxu1 }
 0x232   : > { %v712_v14 = vadd.f32 %v1691_v11, %v711_v12  ;;  %v1799_v15 = vpop.f32.mrb[3].mxu1 }
 0x234   : > { %v615_v18 = vpop.f32.mrb[0].mxu0  ;;  %v2345_v19 = vpack.i.bf16 %v712_v14, %v707_v13  ;;  %v1899_v20 = vpack.c.bf16 %v712_v14, %v707_v13 }
 0x235   : > { %v716_v21 = vpop.f32.mrb[4].mxu1  ;;  %v1785_v22 = vpop.f32.mrb[1].mxu0  ;;  %v616_v23 = vadd.f32 %v1689_v16, %v615_v18 }
 0x236   : > { %v2347_v24 = vadd.f32 %v1691_v11, %v716_v21  ;;  %1986 = vrot.lane.b32.xlu0 %v2345_v19, %s2111_s16  ;;  %v1802_v25 = vpop.f32.mrb[5].mxu1  ;;  %1901 = vmatpush3.bf16.xpose.msk.msra.mxu0 %vm2341_vm4, %v1899_v20 }
 0x237   : > { %1807 = vmatprep.subr.mxu0 %v2110_v34  ;;  %v2354_v26 = vmul.f32 0.35355338, %v616_v23 }
 0x238   : > { %912 = vrot.lane.b32.xlu1 %v2347_v24, %s2111_s16 }
 0x23c   : > { %906 = vrot.lane.b32.xlu1 %v2354_v26, %s2111_s16  ;;  %s2116_s16 = smov 104  }
 0x23e   : > { %1808 = vmatpush3.xpose.msk.msra.mxu0 %vm727_vm3, %v2347_v24 }
 0x23f   : > { %1905 = vmatprep.subr.bf16.mxu0 %v2108_v31 }
 0x241   : > { %1810 = vmatmul.mubr.msk.f32.vlgmr.msra.gmra.mrb[2].mxu0 %vm727_vm3, %v2354_v26 }
 0x242   : > { %1827 = vmatprep.mubr.msk.f32.mxu0 %vm2109_vm2, %v2110_v34 }
 0x2a8   : > { %v1987_v27 = vpop.permute.xlu0 %1986 }
 0x2a9   : > { %v1989_v28 = vunpack.i.h.bf16 %v1987_v27  ;;  %v1988_v29 = vunpack.i.l.bf16 %v1987_v27 }
 0x2aa   : > { %v913_v32 = vpop.permute.xlu1 %912 }
 0x2ab   : > { %v1906_v30 = vpack.c.bf16 %v1989_v28, %v1988_v29 }
 0x2ad   : > { %1908 = vmatpush3.bf16.xpose.msk.msra.mxu0 %vm2341_vm4, %v1906_v30 }
 0x2ae   : > { %1825 = vmatprep.subr.mxu0 %v2110_v34  ;;  %v907_v33 = vpop.permute.xlu1 %906 }
 0x2b5   : > { %1826 = vmatpush3.xpose.msk.msra.mxu0 %vm727_vm3, %v913_v32 }
 0x2b6   : > { %1916 = vmatprep.subr.bf16.mxu0 %v2108_v31 }
 0x2b8   : > { %1828 = vmatmul.mubr.msk.f32.vlgmr.msra.gmra.mrb[4].mxu0 %vm727_vm3, %v907_v33 }
 0x2b9   : > { %1854 = vmatprep.mubr.msk.f32.mxu0 %vm2109_vm2, %v2110_v34 }
 0x314   : > { %v806_v36 = vpop.f32.mrb[2].mxu0 }
 0x315   : > { %v807_v37 = vadd.f32 %v2376_v35, %v806_v36  ;;  %v1811_v38 = vpop.f32.mrb[3].mxu0 }
 0x317   : > { %v811_v39 = vsel %vm810_vm5, %v807_v37, -inf }
 0x318   : > { %812 = vmax.xlane.f32.xlu1 %v811_v39 }
 0x329   : > { %1991 = vrot.lane.b32.xlu1 %v2345_v19, %s2112_s20 }
 0x32d   : > { %1996 = vrot.lane.b32.xlu1 %v2345_v19, %s2113_s26 }
 0x331   : > { %1008 = vrot.lane.b32.xlu1 %v2347_v24, %s2113_s26 }
 0x335   : > { %2001 = vrot.lane.b32.xlu1 %v2345_v19, %s2114_s28 }
 0x339   : > { %1087 = vrot.lane.b32.xlu1 %v2354_v26, %s2114_s28 }
 0x33d   : > { %1189 = vrot.lane.b32.xlu1 %v2347_v24, %s2115_s29 }
 0x38b   : > { %v988_v40 = vpop.f32.mrb[4].mxu0 }
 0x38c   : > { %v989_v41 = vadd.f32 %v2376_v35, %v988_v40  ;;  %v1829_v42 = vpop.f32.mrb[5].mxu0 }
 0x38e   : > { %v992_v43 = vsel %vm810_vm5, %v989_v41, -inf }
 0x38f   : > { %993 = vmax.xlane.f32.xlu0 %v992_v43 }
 0x3a5   : > { %v813_v44 = vpop.xlane.xlu1 %812 }
 0x3a6   : > { %v814_v45 = vsub.f32 %v807_v37, %v813_v44 }
 0x3a8   : > { %v815_v46 = vmul.f32 1.442695, %v814_v45 }
 0x3a9   : > { %v1992_v47 = vpop.permute.xlu1 %1991 }
 0x3aa   : > { %2028 = vpow2.f32 %v815_v46  ;;  %v1994_v48 = vunpack.i.h.bf16 %v1992_v47  ;;  %v1993_v49 = vunpack.i.l.bf16 %v1992_v47 }
 0x3ac   : > { %v1903_v50 = vpack.c.bf16 %v1994_v48, %v1993_v49 }
 0x3ad   : > { %v1997_v59 = vpop.permute.xlu1 %1996 }
 0x3ae   : > { %1904 = vmatpush3.bf16.msra.mxu1 %v1903_v50  ;;  %v1999_v62 = vunpack.i.h.bf16 %v1997_v59  ;;  %v1998_v63 = vunpack.i.l.bf16 %v1997_v59 }
 0x3af   : > { %1816 = vmatprep.subr.mxu1 %v2110_v34 }
 0x3b0   : > { %v1910_v4 = vpack.c.bf16 %v1999_v62, %v1998_v63 }
 0x3b1   : > { %v1009_v1 = vpop.permute.xlu1 %1008 }
 0x3b4   : > { %v2029_v51 = vpop.eup %2028 }
 0x3b5   : > { %v817_v52 = vsel %vm810_vm5, %v2029_v51, 0.0  ;;  %v2002_v5 = vpop.permute.xlu1 %2001 }
 0x3b6   : > { %818 = vadd.xlane.f32.xlu0 %v817_v52  ;;  %v2004_v7 = vunpack.i.h.bf16 %v2002_v5  ;;  %v2003_v8 = vunpack.i.l.bf16 %v2002_v5 }
 0x3b8   : > { %v1913_v11 = vpack.c.bf16 %v2004_v7, %v2003_v8 }
 0x3b9   : > { %v1088_v13 = vpop.permute.xlu1 %1087 }
 0x3bd   : > { %v1190_v36 = vpop.permute.xlu1 %1189 }
 0x41c   : > { %v994_v53 = vpop.xlane.xlu0 %993 }
 0x41d   : > { %v995_v54 = vsub.f32 %v989_v41, %v994_v53 }
 0x41f   : > { %v996_v55 = vmul.f32 1.442695, %v995_v54 }
 0x421   : > { %2030 = vpow2.f32 %v996_v55 }
 0x42b   : > { %v2031_v56 = vpop.eup %2030 }
 0x42c   : > { %v998_v57 = vsel %vm810_vm5, %v2031_v56, 0.0 }
 0x42d   : > { %999 = vadd.xlane.f32.xlu0 %v998_v57 }
 0x443   : > { %826 = vrot.lane.b32.xlu0 %v2347_v24, %s2112_s20  ;;  %v819_v58 = vpop.xlane.xlu0 %818  ;;  %s2539_s20 = sand.u32 1, %s2098_s22  }
 0x444   : > { %2032 = vrcp.f32 %v819_v58  ;;  %s2448_s26 = sshll.u32 %s2539_s20, 3 }
 0x447   : > { %1093 = vrot.lane.b32.xlu0 %v2347_v24, %s2114_s28  ;;  %s437_s28 = scalar_lea.vmem [#allocation2], %s2448_s26  ;;  %s2120_s26 = smov 24  }
 0x448   : > { %s1575_s1 = sshll.u32 %s437_s28, 4  ;;  %s1576_s1 = int_to_ptr.vmem [resolvable:$true] %s1575_s1 }
 0x44e   : > { %v2033_v61 = vpop.eup %2032 }
 0x44f   : > { %v821_v2 = vmul.f32 %v2033_v61, %v2029_v51 }
 0x4ba   : > { %v1000_v60 = vpop.xlane.xlu0 %999 }
 0x4bb   : > { %2034 = vrcp.f32 %v1000_v60 }
 0x4be   : > { %v827_v3 = vpop.permute.xlu0 %826 }
 0x4bf   : > { %1817 = vmatpush3.msk.msra.mxu1 %vm833_vm6, %v827_v3  ;;  %v1467_v3 = vld [vmem:[%s2533_s8 + $0x8] sm:$0xff] }
 0x4c0   : > { %1819 = vmatmul.mubr.msk.f32.vlgmr.msra.gmra.mrb[6].mxu1 %vm810_vm5, %v821_v2  ;;  %1909 = vmatprep.subr.bf16.mxu1 %v2108_v31 }
 0x4c1   : > { %1911 = vmatpush3.bf16.msra.mxu1 %v1910_v4  ;;  %1836 = vmatprep.mubr.msk.f32.mxu1 %vm2109_vm2, %v2110_v34  ;;  %v1468_v4 = vld [vmem:[%s2533_s8 + $0x10] sm:$0xff] }
 0x4c2   : > { %1834 = vmatprep.subr.mxu1 %v2110_v34  ;;  %v1094_v12 = vpop.permute.xlu0 %1093 }
 0x4c5   : > { %v2035_v6 = vpop.eup %2034  ;;  %1835 = vmatpush3.msk.msra.mxu1 %vm833_vm6, %v1009_v1 }
 0x4c6   : > { %v1002_v9 = vmul.f32 %v2035_v6, %v2031_v56  ;;  %1912 = vmatprep.subr.bf16.mxu1 %v2108_v31 }
 0x4c8   : > { %1837 = vmatmul.mubr.msk.f32.vlgmr.msra.gmra.mrb[8].mxu1 %vm810_vm5, %v1002_v9  ;;  %v1003_v10 = vadd.f32 %v1002_v9, %v821_v2  ;;  %v1466_v2 = vld [vmem:[%s2533_s8] sm:$0xff] }
 0x4c9   : > { %1845 = vmatprep.mubr.msk.f32.mxu1 %vm2109_vm2, %v2110_v34  ;;  %v1927_v5 = vpack.c.bf16 %v1467_v3, %v1466_v2 }
 0x4cc   : > { %1915 = vmatpush3.bf16.xpose.msk.msra.mxu1 %vm2341_vm4, %v1913_v11 }
 0x4cd   : > { %1843 = vmatprep.subr.mxu1 %v2110_v34 }
 0x4d4   : > { %1844 = vmatpush3.xpose.msk.msra.mxu1 %vm727_vm3, %v1094_v12 }
 0x4d5   : > { %1923 = vmatprep.subr.bf16.mxu1 %v2108_v31 }
 0x4d7   : > { %1846 = vmatmul.mubr.msk.f32.vlgmr.msra.gmra.mrb[10].mxu1 %vm727_vm3, %v1088_v13 }
 0x4d8   : > { %1872 = vmatprep.mubr.msk.f32.mxu1 %vm2109_vm2, %v2110_v34 }
 0x593   : > { %v2418_v14 = vpop.f32.mrb[6].mxu1 }
 0x594   : > { %v1820_v15 = vpop.f32.mrb[7].mxu1 }
 0x59b   : > { %v1083_v16 = vpop.f32.mrb[8].mxu1 }
 0x59c   : > { %v1838_v18 = vpop.f32.mrb[9].mxu1 }
 0x5aa   : > { %v1169_v20 = vpop.f32.mrb[10].mxu1 }
 0x5ab   : > { %v1170_v21 = vadd.f32 %v2376_v35, %v1169_v20  ;;  %v1847_v22 = vpop.f32.mrb[11].mxu1 }
 0x5ad   : > { %v1173_v23 = vsel %vm810_vm5, %v1170_v21, -inf }
 0x5ae   : > { %1174 = vmax.xlane.f32.xlu0 %v1173_v23 }
 0x5c4   : > { %2006 = vrot.lane.b32.xlu0 %v2345_v19, %s2115_s29 }
 0x5c8   : > { %2011 = vrot.lane.b32.xlu0 %v2345_v19, %s2116_s16 }
 0x5cc   : > { %1268 = vrot.lane.b32.xlu0 %v2354_v26, %s2116_s16 }
 0x63b   : > { %v1175_v25 = vpop.xlane.xlu0 %1174 }
 0x63c   : > { %v1176_v27 = vsub.f32 %v1170_v21, %v1175_v25 }
 0x63e   : > { %v1177_v28 = vmul.f32 1.442695, %v1176_v27 }
 0x63f   : > { %v2007_v29 = vpop.permute.xlu0 %2006 }
 0x640   : > { %2036 = vpow2.f32 %v1177_v28  ;;  %v2009_v30 = vunpack.i.h.bf16 %v2007_v29  ;;  %v2008_v32 = vunpack.i.l.bf16 %v2007_v29 }
 0x642   : > { %v1917_v33 = vpack.c.bf16 %v2009_v30, %v2008_v32 }
 0x643   : > { %v2012_v39 = vpop.permute.xlu0 %2011 }
 0x644   : > { %1918 = vmatpush3.bf16.msra.mxu0 %v1917_v33  ;;  %v2014_v40 = vunpack.i.h.bf16 %v2012_v39  ;;  %v2013_v41 = vunpack.i.l.bf16 %v2012_v39 }
 0x645   : > { %1852 = vmatprep.subr.mxu0 %v2110_v34 }
 0x646   : > { %v1920_v44 = vpack.c.bf16 %v2014_v40, %v2013_v41 }
 0x647   : > { %v1269_v47 = vpop.permute.xlu0 %1268 }
 0x648   : > { %1853 = vmatpush3.msk.msra.mxu0 %vm833_vm6, %v1190_v36 }
 0x649   : > { %1919 = vmatprep.subr.bf16.mxu0 %v2108_v31 }
 0x64a   : > { %v2037_v37 = vpop.eup %2036 }
 0x64b   : > { %v1179_v38 = vsel %vm810_vm5, %v2037_v37, 0.0 }
 0x64c   : > { %1180 = vadd.xlane.f32.xlu1 %v1179_v38 }
 0x65d   : > { %1274 = vrot.lane.b32.xlu1 %v2347_v24, %s2116_s16  ;;  %s2477_s16 = scalar_lea.hbm %s2537_s12, %s1723_s0 }
 0x6d9   : > { %v1181_v26 = vpop.xlane.xlu1 %1180 }
 0x6da   : > { %2038 = vrcp.f32 %v1181_v26 }
 0x6dd   : > { %v1275_v46 = vpop.permute.xlu1 %1274 }
 0x6e4   : > { %v2039_v42 = vpop.eup %2038 }
 0x6e5   : > { %v1183_v43 = vmul.f32 %v2039_v42, %v2037_v37 }
 0x6e7   : > { %1855 = vmatmul.mubr.msk.f32.vlgmr.msra.gmra.mrb[6].mxu0 %vm810_vm5, %v1183_v43  ;;  %v1184_v45 = vadd.f32 %v1183_v43, %v1003_v10 }
 0x6e8   : > { %1922 = vmatpush3.bf16.xpose.msk.msra.mxu0 %vm2341_vm4, %v1920_v44  ;;  %1863 = vmatprep.mubr.msk.f32.mxu0 %vm2109_vm2, %v2110_v34 }
 0x6e9   : > { %1861 = vmatprep.subr.mxu0 %v2110_v34 }
 0x6f0   : > { %1862 = vmatpush3.xpose.msk.msra.mxu0 %vm727_vm3, %v1275_v46 }
 0x6f3   : > { %1864 = vmatmul.mubr.msk.f32.vlgmr.msra.gmra.mrb[8].mxu0 %vm727_vm3, %v1269_v47 }
 0x7ba   : > { %v1264_v48 = vpop.f32.mrb[6].mxu0 }
 0x7bb   : > { %v1856_v49 = vpop.f32.mrb[7].mxu0 }
 0x7c6   : > { %v1350_v50 = vpop.f32.mrb[8].mxu0 }
 0x7c7   : > { %v1351_v51 = vadd.f32 %v2376_v35, %v1350_v50  ;;  %v1865_v52 = vpop.f32.mrb[9].mxu0 }
 0x7c9   : > { %v1354_v17 = vsel %vm810_vm5, %v1351_v51, -inf }
 0x7ca   : > { %1355 = vmax.xlane.f32.xlu1 %v1354_v17 }
 0x7db   : > { %1370 = vrot.lane.b32.xlu1 %v2347_v24, %s2117_s18 }
 0x7df   : > { %1450 = vrot.lane.b32.xlu1 %v1083_v16, %s2118_s17 }
 0x857   : > { %v1356_v53 = vpop.xlane.xlu1 %1355 }
 0x858   : > { %v1357_v54 = vsub.f32 %v1351_v51, %v1356_v53 }
 0x85a   : > { %v1358_v55 = vmul.f32 1.442695, %v1357_v54 }
 0x85b   : > { %v1371_v62 = vpop.permute.xlu1 %1370 }
 0x85c   : > { %2040 = vpow2.f32 %v1358_v55 }
 0x85f   : > { %v1451_v9 = vpop.permute.xlu1 %1450 }
 0x860   : > { %v1461_v11 = vsel %vm727_vm3, %v2418_v14, %v1451_v9 }
 0x866   : > { %v2041_v56 = vpop.eup %2040 }
 0x867   : > { %v1360_v57 = vsel %vm810_vm5, %v2041_v56, 0.0 }
 0x868   : > { %1361 = vadd.xlane.f32.xlu0 %v1360_v57 }
 0x87e   : > { %2016 = vrot.lane.b32.xlu0 %v2345_v19, %s2117_s18  ;;  %s2552_s18 = sand.u32 1, %s2098_s22  }
 0x87f   : > { %s1559_s17 = scalar_lea.sflag [#allocation3], %s2552_s18 }
 0x882   : > { %1454 = vrot.lane.b32.xlu0 %v1264_v48, %s2119_s19  ;;  %s2044_s19 = scalar_lea.vmem %s1576_s1, 128 }
 0x883   : > { %p2045_p11 = scmp.ne.s32.totalorder %s1576_s1, %s2044_s19 }
 0x885   : > { %p2046_p12 = pnand %p2045_p11, %p2225_p5 }
 0x887   : > { %p2047_p13 = pneg %p2046_p12 }
 0x8f5   : > { %v1362_v35 = vpop.xlane.xlu0 %1361 }
 0x8f6   : > { %2042 = vrcp.f32 %v1362_v35 }
 0x8f9   : > { %v2017_v58 = vpop.permute.xlu0 %2016 }
 0x8fa   : > { %v2019_v24 = vunpack.i.h.bf16 %v2017_v58  ;;  %v2018_v59 = vunpack.i.l.bf16 %v2017_v58 }
 0x8fc   : > { %v1924_v60 = vpack.c.bf16 %v2019_v24, %v2018_v59 }
 0x8fd   : > { %v1455_v10 = vpop.permute.xlu0 %1454 }
 0x8fe   : > { %1925 = vmatpush3.bf16.msra.mxu1 %v1924_v60  ;;  %v1463_v12 = vsel %vm1462_vm7, %v1461_v11, %v1455_v10 }
 0x8ff   : > { %1870 = vmatprep.subr.mxu1 %v2110_v34 }
 0x900   : > { %v2043_v61 = vpop.eup %2042 }
 0x901   : > { %v1364_v63 = vmul.f32 %v2043_v61, %v2041_v56 }
 0x902   : > { %1871 = vmatpush3.msk.msra.mxu1 %vm833_vm6, %v1371_v62 }
 0x903   : > { %1873 = vmatmul.mubr.msk.f32.vlgmr.msra.gmra.mrb[12].mxu1 %vm810_vm5, %v1364_v63  ;;  %1926 = vmatprep.subr.bf16.mxu1 %v2108_v31  ;;  %v1365_v19 = vadd.f32 %v1364_v63, %v1184_v45 }
 0x904   : > { %1883 = vmatprep.mubr.msk.f32.mxu1 %vm2109_vm2, %v2110_v34  ;;  %v1469_v34 = vld [vmem:[%s2533_s8 + $0x18] sm:$0xff]  ;;  %1928 = vmatpush3.bf16.msra.mxu1 %v1927_v5 }
 0x905   : > { %v1552_v1 = vmul.f32 0.25, %v1365_v19  ;;  %v1930_v6 = vpack.c.bf16 %v1469_v34, %v1468_v4  ;;  %1929 = vmatprep.subr.bf16.mxu1 %v2108_v31 }
 0x907   : > { %1553 = vst.msk [vmem:[%s437_s28] sm:$0xff] %vm810_vm5, %v1552_v1 }
 0x908   : > { %1931 = vmatpush3.bf16.msra.mxu1 %v1930_v6 }
 0x9d6   : > { %v1445_v7 = vpop.f32.mrb[12].mxu1 }
 0x9d7   : > { %1458 = vrot.lane.b32.xlu1 %v1445_v7, %s2120_s26  ;;  %v1874_v8 = vpop.f32.mrb[13].mxu1  ;;  %s2121_s26 = smov [#allocation2]  }
 0x9d8   : > { %s2048_s2 = sshll.u32 %s2121_s26, 4  ;;  %s2049_s2 = int_to_ptr.vmem [resolvable:$false] %s2048_s2 }
 0x9d9   : > { %s2050_s3 = scalar_lea.vmem %s2049_s2, 256  ;;  %p2051_p0 = scmp.lt.s32.totalorder %s1576_s1, %s2049_s2 }
 0x9da   : > { %p2052_p1 = scmp.lt.s32.totalorder %s2050_s3, %s2044_s19 }
 0x9dc   : > { %p2053_p2 = por %p2052_p1, %p2051_p0 }
 0x9de   : > { %p2054_p3 = pnand %p2053_p2, %p2047_p13 }
 0xa49   : > { %v1459_v13 = vpop.permute.xlu1 %1458 }
 0xa4a   : > { %v1465_v15 = vsel %vm1464_vm8, %v1463_v12, %v1459_v13 }
 0xa4b   : > { %1884 = vmatmul.mubr.msk.f32.vlgmr.msra.gmra.mrb[14].mxu1 %vm457_vm0, %v1465_v15 }
 0xa4c   : > { %2057 = shalt.err (!%p2054_p3)
}
 0xa4d   : > { %s2058_s25 = scalar_lea.hbm %s2477_s16, 128  ;;  %s2062_s20 = scalar_lea.hbm %s2537_s12, 256 }
 0xa4e   : > { %p2059_p4 = scmp.ne.s32.totalorder %s2477_s16, %s2058_s25  ;;  %p2063_p9 = scmp.lt.u32.totalorder %s2477_s16, %s2537_s12 }
 0xa4f   : > { %p2064_p10 = scmp.lt.u32.totalorder %s2062_s20, %s2058_s25  ;;  %p2066_p12 = scmp.lt.u32.totalorder %s2058_s25, %s2477_s16 }
 0xa50   : > { %p2060_p7 = pnand %p2059_p4, %p2225_p5 }
 0xa51   : > { %p2065_p11 = por %p2064_p10, %p2063_p9 }
 0xa52   : > { %p2061_p8 = pneg %p2060_p7 }
 0xa53   : > { %p2067_p13 = por %p2066_p12, %p2065_p11 }
 0xa55   : > { %p2068_p0 = pnand %p2067_p13, %p2061_p8 }
 0xa57   : > { %2071 = shalt.err (!%p2068_p0)
}
 0xa58   : > { %1933 = dma.vmem_to_hbm [thread:$0]  (%p2225_p5), %s1576_s1, 128, %s2477_s16, %s1559_s17   ;;  %v1720_v31 = vld [vmem:[%s2534_s9] ss:$0 sm:$0xff] }
 0xa59   : > { %s2553_s19 = sshll.u32 %s2237_s15, 3 }
 0xa5a   : > { %s453_s25 = scalar_lea.vmem %s2536_s11, %s2553_s19 }
 0xb1e   : > { %v1546_v14 = vpop.f32.mrb[14].mxu1 }
 0xb1f   : > { %v1547_v16 = vadd.f32 %v1720_v31, %v1546_v14  ;;  %v1885_v18 = vpop.f32.mrb[15].mxu1 }
 0xb21   : > { %v1550_v20 = vadd.f32 %v1547_v16, %v2249_v0 }
 0xb23   : > { %1551 = vst.msk [vmem:[%s453_s25] sm:$0xff] %vm457_vm0, %v1550_v20 }
 0xb24 PF: > { %p1939_p5 = scmp.ge.s32.totalorder %s2106_s24, 2  ;;  %s1594_s13 = sand.u32 1, %s2094_s21  }
 0xb25   : > { %s1595_s1 = scalar_lea.sflag [#allocation3], %s1594_s13 }
 0xb26   : > { %p1936_p1 = pnand %p1939_p5, %p2229_p6 }
 0xb28   : > { %2089 = dma.done.wait (!%p1936_p1), %s1595_s1, 128  }
 0xb29   : > { %2091 = vsyncadd (!%p1936_p1), %s1595_s1, 4294967168  ;;  %p23_p2 = scmp.ge.s32.totalorder %s2212_s27, 4   ;;  %s2554_s21 = smov %s2098_s22 }
 0xb2a   : > { %s2555_s22 = smov %s2102_s23  ;;  %s2556_s23 = smov %s2223_s30 }
 0xb2b   : > { %s2557_s24 = smov %s2212_s27  ;;  %25 = sbr.rel (!%p23_p2) target bundleno = 8 (0x8), region = 117 }
 0xb32   :  { %1600 = vsyncpa [#allocation3], 1 }
 0xb33   :  { %1602 = vsyncpa [#allocation3 + $0x1], 1 }

// kernel: hoi_transformer_forward.12
= control target key start
LH: loop header
LB: loop body
LE: loop exit
PB: predicated region body
PF: predicated region fallthrough
CT: control target
= control target key end

     0   :  { %s2471_s17 = smov 0   ;;  %s2926_s0 = inlined_call_operand.vmem [shape: f32[2,17,32], index: 0, kind: input, shape index: {}, may-alias: {0,1}]   ;;  %s2927_s1 = inlined_call_operand.vmem [shape: f32[2,17,32], index: 1, kind: input, shape index: {}, may-alias: {0,1}]   ;;  %s2928_s2 = inlined_call_operand.vmem [shape: f32[1,32], index: 2, kind: input, shape index: {}]   ;;  %s2929_s3 = inlined_call_operand.vmem [shape: f32[1,32], index: 3, kind: input, shape index: {}]   ;;  %s2930_s4 = inlined_call_operand.vmem [shape: f32[32,32], index: 4, kind: input, shape index: {}]   ;;  %s2931_s5 = inlined_call_operand.vmem [shape: f32[1,32], index: 5, kind: input, shape index: {}]   ;;  %s2932_s6 = inlined_call_operand.vmem [shape: f32[32,64], index: 6, kind: input, shape index: {}]   ;;  %s2933_s7 = inlined_call_operand.vmem [shape: f32[1,64], index: 7, kind: input, shape index: {}]   ;;  %s2934_s8 = inlined_call_operand.vmem [shape: f32[32,32], index: 8, kind: input, shape index: {}]   ;;  %s2935_s9 = inlined_call_operand.vmem [shape: f32[1,32], index: 9, kind: input, shape index: {}]   ;;  %s2936_s10 = inlined_call_operand.vmem [shape: f32[2,1,17], index: 10, kind: input, shape index: {}]   ;;  %s2937_s11 = inlined_call_operand.vmem [shape: f32[2,17,32], index: 11, kind: output, shape index: {}]  }
   0x1 LB: > { %s1915_s18 = sadd.s32 4294967295, %s2396_s17   ;;  %p1919_p0 = scmp.ge.s32.totalorder %s2396_s17, 1  ;;  %s2396_s17 = sphi %s2471_s17, %s21_s17  }
   0x2   : > { %p355_p1 = scmp.lt.s32.totalorder %s2396_s17, 3 }
   0x4   : > { %p356_p2 = pnand %p1919_p0, %p355_p1 }
   0x5   : > { %p403_p3 = scmp.lt.s32.totalorder (!%p356_p2), %s1915_s18, 1  ;;  %vm426_vm0 = vcmask (!%p356_p2), 261120   ;;  %vm433_vm1 = vcmask (!%p356_p2), 253952   ;;  %v637_v42 = vld [vmem:[%s2932_s6] sm:$0xff] (!%p356_p2)  ;;  %v638_v43 = vld [vmem:[%s2932_s6 + $0x8] sm:$0xff] (!%p356_p2)  ;;  %v2398_v45 = vmov (!%p356_p2), 0.0|0.0  }
   0x6   : > { %359 = sbr.rel (%p356_p2) target bundleno = 2348 (0x92c), region = 64  ;;  %v2227_v44 = vpack.c.bf16 (!%p356_p2), %v638_v43, %v637_v42  ;;  %2226 = vmatprep.subr.bf16.mxu1 (!%p356_p2), %v2398_v45  ;;  %2220 = vmatprep.subr.bf16.mxu0 (!%p356_p2), %v2398_v45  ;;  %v639_v46 = vld [vmem:[%s2932_s6 + $0x10] sm:$0xff] (!%p356_p2)  ;;  %v640_v47 = vld [vmem:[%s2932_s6 + $0x18] sm:$0xff] (!%p356_p2)  ;;  %vm2399_vm2 = vmmov (!%p356_p2), 0   ;;  %v2400_v49 = vmov (!%p356_p2), 0.0   ;;  %v534_v50 = vld [vmem:[%s2930_s4] sm:$0xff] (!%p356_p2) }
   0x7   : > { %v2230_v48 = vpack.c.bf16 (!%p356_p2), %v640_v47, %v639_v46  ;;  %2074 = vmatprep.mubr.msk.f32.mxu1 (!%p356_p2), %vm2399_vm2, %v2400_v49  ;;  %2057 = vmatprep.mubr.msk.f32.mxu0 (!%p356_p2), %vm2399_vm2, %v2400_v49  ;;  %v535_v51 = vld [vmem:[%s2930_s4 + $0x8] sm:$0xff] (!%p356_p2)  ;;  %v536_v53 = vld [vmem:[%s2930_s4 + $0x10] sm:$0xff] (!%p356_p2)  ;;  %v537_v54 = vld [vmem:[%s2930_s4 + $0x18] sm:$0xff] (!%p356_p2)  ;;  %vm744_vm3 = vcmask (!%p356_p2), 64512   ;;  %s2401_s16 = smov (!%p356_p2), 112   ;;  %s2402_s20 = smov (!%p356_p2), 120  }
   0x8   : > { %2228 = vmatpush3.bf16.msra.mxu1 (!%p356_p2), %v2227_v44  ;;  %v2221_v52 = vpack.c.bf16 (!%p356_p2), %v535_v51, %v534_v50  ;;  %v2224_v55 = vpack.c.bf16 (!%p356_p2), %v537_v54, %v536_v53  ;;  %vm2604_vm4 = vmpackc.low (!%p356_p2), %vm744_vm3, %vm744_vm3  ;;  %v1925_v47 = vld [vmem:[%s2931_s5] ss:$0 sm:$0xff] (!%p356_p2)  ;;  %s2403_s21 = smov (!%p356_p2), 96   ;;  %vm895_vm5 = vcmask (!%p356_p2), 1040384   ;;  %vm843_vm6 = vcmask (!%p356_p2), 138240   ;;  %s2406_s27 = smov (!%p356_p2), 104  }
   0x9   : > { %2229 = vmatprep.subr.bf16.mxu1 (!%p356_p2), %v2398_v45  ;;  %vm850_vm7 = vcmask (!%p356_p2), 131072   ;;  %s2407_s28 = smov (!%p356_p2), 72   ;;  %s2408_s29 = smov (!%p356_p2), 8   ;;  %vm1725_vm8 = vcmask (!%p356_p2), 130048   ;;  %vm1729_vm9 = vcmask (!%p356_p2), 195584  }
   0xa   : > { %2222 = vmatpush3.bf16.msra.mxu0 (!%p356_p2), %v2221_v52  ;;  %s2409_s30 = smov (!%p356_p2), 16   ;;  %s2410_s23 = smov (!%p356_p2), 24  }
   0xb   : > { %2223 = vmatprep.subr.bf16.mxu0 (!%p356_p2), %v2398_v45 }
   0xc   : > { %2231 = vmatpush3.bf16.msra.mxu1 (!%p356_p2), %v2230_v48 }
   0xd   : > { %s2941_s18 = smov (!%p403_p3, %s1915_s18), 1  ;;  %2236 = vmatprep.subr.bf16.mxu1 %v2398_v45 }
   0xe   : > { %s2482_s19 = smul.u32 24, %s2941_s18  ;;  %2225 = vmatpush3.bf16.msra.mxu0 %v2224_v55  ;;  %s415_s26 = scalar_lea.vmem %s2936_s10, %s2941_s18 }
   0xf   : > { %2232 = vmatprep.subr.bf16.mxu0 %v2398_v45  ;;  %s2405_s18 = smov 80  }
  0x10   : > { %s412_s22 = scalar_lea.vmem %s2927_s1, %s2482_s19  ;;  %s2492_s25 = scalar_lea.vmem %s2926_s0, %s2482_s19 }
  0x11   : > { %v486_v0 = vld [vmem:[%s412_s22] sm:$0xff]  ;;  %v488_v1 = vld [vmem:[%s412_s22 + $0x10] sm:$0x1]  ;;  %v487_v2 = vld [vmem:[%s412_s22 + $0x8] sm:$0xff]  ;;  %s2404_s22 = smov 88  }
  0x12   : > { %v489_v3 = vsel %vm426_vm0, %v486_v0, 0.0  ;;  %v495_v4 = vsel %vm433_vm1, %v488_v1, 0.0  ;;  %v421_v5 = vld [vmem:[%s2492_s25] sm:$0xff]  ;;  %v492_v6 = vsel %vm426_vm0, %v487_v2, 0.0  ;;  %v422_v8 = vld [vmem:[%s2492_s25 + $0x8] sm:$0xff] }
  0x13   : > { %490 = vadd.xlane.f32.xlu0 %v489_v3  ;;  %496 = vadd.xlane.f32.xlu1 %v495_v4  ;;  %v427_v7 = vsel %vm426_vm0, %v421_v5, 0.0  ;;  %v423_v9 = vld [vmem:[%s2492_s25 + $0x10] sm:$0x1]  ;;  %v430_v10 = vsel %vm426_vm0, %v422_v8, 0.0 }
  0x14   : > { %v434_v11 = vsel %vm433_vm1, %v423_v9, 0.0 }
  0x17   : > { %493 = vadd.xlane.f32.xlu0 %v492_v6  ;;  %428 = vadd.xlane.f32.xlu1 %v427_v7 }
  0x1b   : > { %431 = vadd.xlane.f32.xlu0 %v430_v10  ;;  %435 = vadd.xlane.f32.xlu1 %v434_v11  ;;  %v1923_v11 = vld [vmem:[%s2928_s2] ss:$0 sm:$0xff] }
  0xa0   : > { %v491_v12 = vpop.xlane.xlu0 %490  ;;  %v497_v13 = vpop.xlane.xlu1 %496 }
  0xa1   : > { %v498_v14 = vmul.f32 0.03125, %v491_v12  ;;  %v500_v15 = vmul.f32 0.03125, %v497_v13  ;;  %v1924_v13 = vld [vmem:[%s2929_s3] ss:$0 sm:$0xff] }
  0xa3   : > { %v2503_v16 = vsub.f32 %v486_v0, %v498_v14  ;;  %v2505_v17 = vsub.f32 %v488_v1, %v500_v15 }
  0xa4   : > { %v494_v18 = vpop.xlane.xlu0 %493  ;;  %v429_v19 = vpop.xlane.xlu1 %428 }
  0xa5   : > { %v499_v20 = vmul.f32 0.03125, %v494_v18  ;;  %v504_v21 = vmul.f32 %v2503_v16, %v2503_v16  ;;  %v438_v22 = vmul.f32 0.03125, %v429_v19  ;;  %v506_v23 = vmul.f32 %v2505_v17, %v2505_v17 }
  0xa7   : > { %v2511_v24 = vsub.f32 %v487_v2, %v499_v20  ;;  %v507_v25 = vsel %vm426_vm0, %v504_v21, 0.0  ;;  %v2514_v26 = vsub.f32 %v421_v5, %v438_v22  ;;  %v513_v28 = vsel %vm433_vm1, %v506_v23, 0.0 }
  0xa8   : > { %508 = vadd.xlane.f32.xlu0 %v507_v25  ;;  %v432_v27 = vpop.xlane.xlu0 %431  ;;  %v436_v29 = vpop.xlane.xlu1 %435 }
  0xa9   : > { %v439_v30 = vmul.f32 0.03125, %v432_v27  ;;  %v505_v31 = vmul.f32 %v2511_v24, %v2511_v24  ;;  %v440_v32 = vmul.f32 0.03125, %v436_v29  ;;  %v444_v33 = vmul.f32 %v2514_v26, %v2514_v26 }
  0xab   : > { %v2521_v34 = vsub.f32 %v422_v8, %v439_v30  ;;  %v510_v35 = vsel %vm426_vm0, %v505_v31, 0.0  ;;  %v2524_v36 = vsub.f32 %v423_v9, %v440_v32  ;;  %v447_v38 = vsel %vm426_vm0, %v444_v33, 0.0 }
  0xac   : > { %514 = vadd.xlane.f32.xlu0 %v513_v28  ;;  %511 = vadd.xlane.f32.xlu1 %v510_v35 }
  0xad   : > { %v445_v37 = vmul.f32 %v2521_v34, %v2521_v34  ;;  %v446_v39 = vmul.f32 %v2524_v36, %v2524_v36 }
  0xaf   : > { %v450_v40 = vsel %vm426_vm0, %v445_v37, 0.0  ;;  %v453_v41 = vsel %vm433_vm1, %v446_v39, 0.0 }
  0xb0   : > { %451 = vadd.xlane.f32.xlu0 %v450_v40  ;;  %448 = vadd.xlane.f32.xlu1 %v447_v38  ;;  %v1929_v38 = vld [vmem:[%s2933_s7] ss:$0 sm:$0xff] }
  0xb4   : > { %454 = vadd.xlane.f32.xlu1 %v453_v41 }
 0x135   : > { %v509_v56 = vpop.xlane.xlu0 %508 }
 0x136   : > { %v516_v57 = vmul.f32 0.03125, %v509_v56 }
 0x138   : > { %v519_v58 = vadd.f32 1e-05, %v516_v57 }
 0x139   : > { %v515_v59 = vpop.xlane.xlu0 %514  ;;  %v512_v60 = vpop.xlane.xlu1 %511 }
 0x13a   : > { %2327 = vrsqrt.f32 %v519_v58  ;;  %v518_v61 = vmul.f32 0.03125, %v515_v59  ;;  %v517_v62 = vmul.f32 0.03125, %v512_v60 }
 0x13c   : > { %v521_v63 = vadd.f32 1e-05, %v518_v61  ;;  %v520_v0 = vadd.f32 1e-05, %v517_v62 }
 0x13d   : > { %v452_v1 = vpop.xlane.xlu0 %451  ;;  %v449_v2 = vpop.xlane.xlu1 %448 }
 0x13e   : > { %2329 = vrsqrt.f32 %v521_v63  ;;  %v457_v3 = vmul.f32 0.03125, %v452_v1  ;;  %v456_v4 = vmul.f32 0.03125, %v449_v2 }
 0x13f   : > { %2331 = vrsqrt.f32 %v520_v0 }
 0x140   : > { %v460_v5 = vadd.f32 1e-05, %v457_v3  ;;  %v459_v6 = vadd.f32 1e-05, %v456_v4 }
 0x141   : > { %v455_v7 = vpop.xlane.xlu1 %454 }
 0x142   : > { %2333 = vrsqrt.f32 %v460_v5  ;;  %v458_v8 = vmul.f32 0.03125, %v455_v7 }
 0x143   : > { %2335 = vrsqrt.f32 %v459_v6 }
 0x144   : > { %v2328_v9 = vpop.eup %2327  ;;  %v461_v10 = vadd.f32 1e-05, %v458_v8 }
 0x145   : > { %v525_v12 = vmul.f32 %v2328_v9, %v2503_v16 }
 0x146   : > { %2337 = vrsqrt.f32 %v461_v10 }
 0x147   : > { %v528_v14 = vmul.f32 %v1923_v11, %v525_v12 }
 0x148   : > { %v2330_v15 = vpop.eup %2329 }
 0x149   : > { %v2332_v18 = vpop.eup %2331  ;;  %v531_v19 = vadd.f32 %v1924_v13, %v528_v14  ;;  %v527_v21 = vmul.f32 %v2330_v15, %v2505_v17 }
 0x14a   : > { %v526_v20 = vmul.f32 %v2332_v18, %v2511_v24 }
 0x14b   : > { %2075 = vmatmul.mubr.msk.f32.vlgmr.msra.gmra.mrb[0].mxu1 %vm426_vm0, %v531_v19  ;;  %v530_v28 = vmul.f32 %v1923_v11, %v527_v21 }
 0x14c   : > { %v2334_v22 = vpop.eup %2333  ;;  %2077 = vmatprep.mubr.msk.f32.mxu1 %vm2399_vm2, %v2400_v49  ;;  %v529_v16 = vmul.f32 %v1923_v11, %v526_v20 }
 0x14d   : > { %v2336_v23 = vpop.eup %2335  ;;  %v466_v29 = vmul.f32 %v2334_v22, %v2521_v34  ;;  %v533_v31 = vadd.f32 %v1924_v13, %v530_v28 }
 0x14e   : > { %v532_v25 = vadd.f32 %v1924_v13, %v529_v16  ;;  %v465_v27 = vmul.f32 %v2336_v23, %v2514_v26  ;;  %v2691_v16 = vld [vmem:[%s415_s26] ss:$0 sm:$0xff] }
 0x14f   : > { %v475_v32 = vmul.f32 %v1923_v11, %v466_v29 }
 0x150   : > { %v2338_v30 = vpop.eup %2337  ;;  %2078 = vmatmul.mubr.msk.f32.gmra.mrb[2].mxu1 %vm426_vm0, %v532_v25  ;;  %v474_v24 = vmul.f32 %v1923_v11, %v465_v27 }
 0x151   : > { %2080 = vmatprep.mubr.msk.f32.mxu1 %vm2399_vm2, %v2400_v49  ;;  %v467_v33 = vmul.f32 %v2338_v30, %v2524_v36  ;;  %v484_v26 = vadd.f32 %v1924_v13, %v475_v32 }
 0x152   : > { %v483_v17 = vadd.f32 %v1924_v13, %v474_v24 }
 0x153   : > { %v476_v34 = vmul.f32 %v1923_v11, %v467_v33 }
 0x154   : > { %2058 = vmatmul.mubr.msk.f32.vlgmr.msra.gmra.mrb[0].mxu0 %vm426_vm0, %v483_v17  ;;  %2081 = vmatmul.mubr.msk.f32.gmra.mrb[4].mxu1 %vm426_vm0, %v533_v31 }
 0x155   : > { %2060 = vmatprep.mubr.msk.f32.mxu0 %vm2399_vm2, %v2400_v49  ;;  %2104 = vmatprep.mubr.msk.f32.mxu1 %vm2399_vm2, %v2400_v49  ;;  %v485_v35 = vadd.f32 %v1924_v13, %v476_v34 }
 0x158   : > { %2061 = vmatmul.mubr.msk.f32.gmra.mrb[2].mxu0 %vm426_vm0, %v484_v26 }
 0x159   : > { %2063 = vmatprep.mubr.msk.f32.mxu0 %vm2399_vm2, %v2400_v49 }
 0x15c   : > { %2064 = vmatmul.mubr.msk.f32.gmra.mrb[4].mxu0 %vm426_vm0, %v485_v35 }
 0x15d   : > { %2089 = vmatprep.mubr.msk.f32.mxu0 %vm2399_vm2, %v2400_v49 }
 0x21e   : > { %v723_v36 = vpop.f32.mrb[0].mxu1 }
 0x21f   : > { %v2076_v37 = vpop.f32.mrb[1].mxu1  ;;  %v724_v40 = vadd.f32 %v1929_v38, %v723_v36 }
 0x223   : > { %v728_v39 = vpop.f32.mrb[2].mxu1 }
 0x224   : > { %v729_v41 = vadd.f32 %v1929_v38, %v728_v39  ;;  %v2079_v42 = vpop.f32.mrb[3].mxu1 }
 0x226   : > { %v2600_v43 = vpack.i.bf16 %v729_v41, %v724_v40  ;;  %v2233_v44 = vpack.c.bf16 %v729_v41, %v724_v40 }
 0x227   : > { %v620_v48 = vpop.f32.mrb[0].mxu0  ;;  %v733_v50 = vpop.f32.mrb[4].mxu1 }
 0x228   : > { %2298 = vrot.lane.b32.xlu1 %v2600_v43, %s2401_s16  ;;  %2293 = vrot.lane.b32.xlu0 %v2600_v43, %s2402_s20  ;;  %v2059_v51 = vpop.f32.mrb[1].mxu0  ;;  %v2082_v52 = vpop.f32.mrb[5].mxu1  ;;  %v621_v53 = vadd.f32 %v1925_v47, %v620_v48  ;;  %v2616_v54 = vadd.f32 %v1929_v38, %v733_v50 }
 0x229   : > { %2235 = vmatpush3.bf16.xpose.msk.msra.mxu0 %vm2604_vm4, %v2233_v44 }
 0x22a   : > { %2087 = vmatprep.subr.mxu0 %v2400_v49  ;;  %v2620_v58 = vmul.f32 0.35355338, %v621_v53 }
 0x22b   : > { %v625_v55 = vpop.f32.mrb[2].mxu0 }
 0x22c   : > { %v626_v56 = vadd.f32 %v1925_v47, %v625_v55  ;;  %988 = vrot.lane.b32.xlu1 %v2616_v54, %s2402_s20  ;;  %v2062_v57 = vpop.f32.mrb[3].mxu0 }
 0x22e   : > { %v2622_v59 = vmul.f32 0.35355338, %v626_v56 }
 0x22f   : > { %v630_v60 = vpop.f32.mrb[4].mxu0 }
 0x230   : > { %v631_v61 = vadd.f32 %v1925_v47, %v630_v60  ;;  %978 = vrot.lane.b32.xlu1 %v2620_v58, %s2402_s20  ;;  %980 = vrot.lane.b32.xlu0 %v2622_v59, %s2402_s20  ;;  %v2065_v62 = vpop.f32.mrb[5].mxu0 }
 0x231   : > { %2088 = vmatpush3.xpose.msk.msra.mxu0 %vm744_vm3, %v2616_v54 }
 0x232   : > { %v2628_v63 = vmul.f32 0.35355338, %v631_v61  ;;  %2239 = vmatprep.subr.bf16.mxu0 %v2398_v45 }
 0x234   : > { %2090 = vmatmul.mubr.msk.f32.vlgmr.msra.gmra.mrb[6].mxu0 %vm744_vm3, %v2620_v58  ;;  %1224 = vrot.lane.b32.xlu0 %v2616_v54, %s2401_s16 }
 0x235   : > { %982 = vrot.lane.b32.xlu1 %v2628_v63, %s2402_s20  ;;  %2092 = vmatprep.mubr.msk.f32.mxu0 %vm2399_vm2, %v2400_v49 }
 0x238   : > { %2093 = vmatmul.mubr.msk.f32.gmra.mrb[8].mxu0 %vm744_vm3, %v2622_v59  ;;  %1216 = vrot.lane.b32.xlu0 %v2622_v59, %s2401_s16 }
 0x239   : > { %1214 = vrot.lane.b32.xlu1 %v2620_v58, %s2401_s16  ;;  %2095 = vmatprep.mubr.msk.f32.mxu0 %vm2399_vm2, %v2400_v49 }
 0x23c   : > { %2096 = vmatmul.mubr.msk.f32.gmra.mrb[10].mxu0 %vm744_vm3, %v2628_v63  ;;  %2303 = vrot.lane.b32.xlu0 %v2600_v43, %s2403_s21 }
 0x23d   : > { %1218 = vrot.lane.b32.xlu1 %v2628_v63, %s2401_s16  ;;  %2119 = vmatprep.mubr.msk.f32.mxu0 %vm2399_vm2, %v2400_v49 }
 0x240   : > { %1119 = vrot.lane.b32.xlu0 %v2616_v54, %s2404_s22 }
 0x241   : > { %882 = vrot.lane.b32.xlu1 %v2616_v54, %s2403_s21 }
 0x245   : > { %2308 = vrot.lane.b32.xlu1 %v2600_v43, %s2404_s22 }
 0x29a   : > { %v2294_v0 = vpop.permute.xlu0 %2293  ;;  %v2299_v1 = vpop.permute.xlu1 %2298 }
 0x29b   : > { %v2296_v2 = vunpack.i.h.bf16 %v2294_v0  ;;  %v2295_v3 = vunpack.i.l.bf16 %v2294_v0  ;;  %v2301_v8 = vunpack.i.h.bf16 %v2299_v1  ;;  %v2300_v9 = vunpack.i.l.bf16 %v2299_v1 }
 0x29d   : > { %v2240_v4 = vpack.c.bf16 %v2296_v2, %v2295_v3  ;;  %v2247_v12 = vpack.c.bf16 %v2301_v8, %v2300_v9 }
 0x29e   : > { %v989_v5 = vpop.permute.xlu1 %988 }
 0x29f   : > { %2242 = vmatpush3.bf16.xpose.msk.msra.mxu0 %vm2604_vm4, %v2240_v4 }
 0x2a0   : > { %2117 = vmatprep.subr.mxu0 %v2400_v49 }
 0x2a2   : > { %v981_v6 = vpop.permute.xlu0 %980  ;;  %v979_v7 = vpop.permute.xlu1 %978 }
 0x2a6   : > { %v1225_v10 = vpop.permute.xlu0 %1224 }
 0x2a7   : > { %v983_v11 = vpop.permute.xlu1 %982  ;;  %2118 = vmatpush3.xpose.msk.msra.mxu0 %vm744_vm3, %v989_v5 }
 0x2a8   : > { %2246 = vmatprep.subr.bf16.mxu0 %v2398_v45 }
 0x2aa   : > { %v1217_v13 = vpop.permute.xlu0 %1216  ;;  %2120 = vmatmul.mubr.msk.f32.vlgmr.msra.gmra.mrb[12].mxu0 %vm744_vm3, %v979_v7 }
 0x2ab   : > { %v1215_v14 = vpop.permute.xlu1 %1214  ;;  %2249 = vmatpush3.bf16.xpose.msk.msra.mxu0 %vm2604_vm4, %v2247_v12  ;;  %2122 = vmatprep.mubr.msk.f32.mxu0 %vm2399_vm2, %v2400_v49 }
 0x2ac   : > { %2147 = vmatprep.subr.mxu0 %v2400_v49 }
 0x2ae   : > { %v2304_v15 = vpop.permute.xlu0 %2303  ;;  %2123 = vmatmul.mubr.msk.f32.gmra.mrb[14].mxu0 %vm744_vm3, %v981_v6 }
 0x2af   : > { %v2306_v18 = vunpack.i.h.bf16 %v2304_v15  ;;  %v2305_v19 = vunpack.i.l.bf16 %v2304_v15  ;;  %2125 = vmatprep.mubr.msk.f32.mxu0 %vm2399_vm2, %v2400_v49  ;;  %v1219_v20 = vpop.permute.xlu1 %1218 }
 0x2b1   : > { %v2237_v21 = vpack.c.bf16 %v2306_v18, %v2305_v19 }
 0x2b2   : > { %2126 = vmatmul.mubr.msk.f32.gmra.mrb[16].mxu0 %vm744_vm3, %v983_v11  ;;  %v2716_v2 = vpop.permute.xlu0 %1119 }
 0x2b3   : > { %2238 = vmatpush3.bf16.msra.mxu1 %v2237_v21  ;;  %2148 = vmatpush3.xpose.msk.msra.mxu0 %vm744_vm3, %v1225_v10  ;;  %v883_v22 = vpop.permute.xlu1 %882 }
 0x2b4   : > { %2149 = vmatprep.mubr.msk.f32.mxu0 %vm2399_vm2, %v2400_v49  ;;  %2102 = vmatprep.subr.mxu1 %v2400_v49 }
 0x2b5   : > { %2253 = vmatprep.subr.bf16.mxu0 %v2398_v45 }
 0x2b6   : > { %2150 = vmatmul.mubr.msk.f32.vlgmr.msra.gmra.mrb[18].mxu0 %vm744_vm3, %v1215_v14 }
 0x2b7   : > { %2103 = vmatpush3.msk.msra.mxu1 %vm895_vm5, %v883_v22  ;;  %2152 = vmatprep.mubr.msk.f32.mxu0 %vm2399_vm2, %v2400_v49  ;;  %v2720_v3 = vpop.permute.xlu1 %2308 }
 0x2b8   : > { %2243 = vmatprep.subr.bf16.mxu1 %v2398_v45 }
 0x2ba   : > { %2153 = vmatmul.mubr.msk.f32.gmra.mrb[20].mxu0 %vm744_vm3, %v1217_v13 }
 0x2bb   : > { %2155 = vmatprep.mubr.msk.f32.mxu0 %vm2399_vm2, %v2400_v49 }
 0x2be   : > { %2156 = vmatmul.mubr.msk.f32.gmra.mrb[22].mxu0 %vm744_vm3, %v1219_v20 }
 0x2bf   : > { %2179 = vmatprep.mubr.msk.f32.mxu0 %vm2399_vm2, %v2400_v49 }
 0x307   : > { %v829_v23 = vpop.f32.mrb[6].mxu0 }
 0x308   : > { %v830_v25 = vadd.f32 %v2691_v16, %v829_v23  ;;  %v2091_v27 = vpop.f32.mrb[7].mxu0 }
 0x30a   : > { %v844_v28 = vsel %vm843_vm6, %v830_v25, -inf }
 0x30b   : > { %845 = vmax.xlane.f32.xlu0 %v844_v28  ;;  %v834_v29 = vpop.f32.mrb[8].mxu0 }
 0x30c   : > { %v835_v30 = vadd.f32 %v2691_v16, %v834_v29  ;;  %v2094_v24 = vpop.f32.mrb[9].mxu0 }
 0x30e   : > { %v847_v17 = vsel %vm843_vm6, %v835_v30, -inf }
 0x30f   : > { %848 = vmax.xlane.f32.xlu1 %v847_v17  ;;  %v839_v31 = vpop.f32.mrb[10].mxu0 }
 0x310   : > { %v840_v32 = vadd.f32 %v2691_v16, %v839_v31  ;;  %v2097_v33 = vpop.f32.mrb[11].mxu0 }
 0x312   : > { %v851_v26 = vsel %vm850_vm7, %v840_v32, -inf }
 0x313   : > { %852 = vmax.xlane.f32.xlu0 %v851_v26 }
 0x37d   : > { %v1068_v34 = vpop.f32.mrb[12].mxu0 }
 0x37e   : > { %v1069_v35 = vadd.f32 %v2691_v16, %v1068_v34  ;;  %v2121_v36 = vpop.f32.mrb[13].mxu0 }
 0x380   : > { %v1082_v37 = vsel %vm843_vm6, %v1069_v35, -inf }
 0x381   : > { %1083 = vmax.xlane.f32.xlu0 %v1082_v37  ;;  %v1073_v38 = vpop.f32.mrb[14].mxu0 }
 0x382   : > { %v1074_v39 = vadd.f32 %v2691_v16, %v1073_v38  ;;  %v2124_v40 = vpop.f32.mrb[15].mxu0 }
 0x384   : > { %v1085_v41 = vsel %vm843_vm6, %v1074_v39, -inf }
 0x385   : > { %1086 = vmax.xlane.f32.xlu0 %v1085_v41  ;;  %v1078_v42 = vpop.f32.mrb[16].mxu0 }
 0x386   : > { %v1079_v44 = vadd.f32 %v2691_v16, %v1078_v42  ;;  %v2127_v47 = vpop.f32.mrb[17].mxu0 }
 0x388   : > { %v1088_v48 = vsel %vm850_vm7, %v1079_v44, -inf }
 0x389   : > { %1089 = vmax.xlane.f32.xlu1 %v1088_v48  ;;  %v1304_v50 = vpop.f32.mrb[18].mxu0 }
 0x38a   : > { %v1305_v51 = vadd.f32 %v2691_v16, %v1304_v50  ;;  %v2151_v52 = vpop.f32.mrb[19].mxu0 }
 0x38c   : > { %v1318_v53 = vsel %vm843_vm6, %v1305_v51, -inf }
 0x38d   : > { %1319 = vmax.xlane.f32.xlu0 %v1318_v53  ;;  %v1309_v55 = vpop.f32.mrb[20].mxu0 }
 0x38e   : > { %v2708_v56 = vadd.f32 %v2691_v16, %v1309_v55  ;;  %v2154_v57 = vpop.f32.mrb[21].mxu0 }
 0x390   : > { %v1321_v60 = vsel %vm843_vm6, %v2708_v56, -inf }
 0x391   : > { %1322 = vmax.xlane.f32.xlu1 %v1321_v60  ;;  %v1314_v61 = vpop.f32.mrb[22].mxu0 }
 0x392   : > { %v1315_v62 = vadd.f32 %v2691_v16, %v1314_v61  ;;  %v2157_v0 = vpop.f32.mrb[23].mxu0 }
 0x394   : > { %v1324_v1 = vsel %vm850_vm7, %v1315_v62, -inf }
 0x395   : > { %1325 = vmax.xlane.f32.xlu0 %v1324_v1 }
 0x398   : > { %v846_v4 = vpop.xlane.xlu0 %845 }
 0x399   : > { %v854_v5 = vsub.f32 %v830_v25, %v846_v4 }
 0x39b   : > { %v857_v9 = vmul.f32 1.442695, %v854_v5 }
 0x39c   : > { %v849_v6 = vpop.xlane.xlu1 %848 }
 0x39d   : > { %v855_v8 = vsub.f32 %v835_v30, %v849_v6  ;;  %2339 = vpow2.f32 %v857_v9  ;;  %v2310_v6 = vunpack.i.l.bf16 %v2720_v3 }
 0x39f   : > { %v859_v11 = vmul.f32 1.442695, %v855_v8 }
 0x3a0   : > { %v853_v7 = vpop.xlane.xlu0 %852 }
 0x3a1   : > { %v856_v10 = vsub.f32 %v840_v32, %v853_v7  ;;  %2341 = vpow2.f32 %v859_v11 }
 0x3a2   : > { %2313 = vrot.lane.b32.xlu1 %v2600_v43, %s2405_s18 }
 0x3a3   : > { %v861_v12 = vmul.f32 1.442695, %v856_v10 }
 0x3a5   : > { %2343 = vpow2.f32 %v861_v12 }
 0x3a7   : > { %v2722_v13 = vpop.eup %2339 }
 0x3a8   : > { %v863_v15 = vsel %vm843_vm6, %v2722_v13, 0.0 }
 0x3ab   : > { %2318 = vrot.lane.b32.xlu0 %v2600_v43, %s2406_s27  ;;  %v2724_v14 = vpop.eup %2341 }
 0x3ac   : > { %v866_v20 = vsel %vm843_vm6, %v2724_v14, 0.0 }
 0x3af   : > { %v2728_v18 = vpop.eup %2343 }
 0x3b0   : > { %v869_v19 = vsel %vm850_vm7, %v2728_v18, 0.0 }
 0x3c6   : > { %864 = vadd.xlane.f32.xlu1 %v863_v15 }
 0x3ca   : > { %870 = vadd.xlane.f32.xlu1 %v869_v19  ;;  %867 = vadd.xlane.f32.xlu0 %v866_v20 }
 0x3db   : > { %1460 = vrot.lane.b32.xlu1 %v2616_v54, %s2406_s27 }
 0x40e   : > { %v1084_v21 = vpop.xlane.xlu0 %1083 }
 0x40f   : > { %v1091_v22 = vsub.f32 %v1069_v35, %v1084_v21 }
 0x411   : > { %v1094_v23 = vmul.f32 1.442695, %v1091_v22 }
 0x412   : > { %v1087_v25 = vpop.xlane.xlu0 %1086 }
 0x413   : > { %2345 = vpow2.f32 %v1094_v23  ;;  %v1092_v27 = vsub.f32 %v1074_v39, %v1087_v25 }
 0x415   : > { %v1096_v28 = vmul.f32 1.442695, %v1092_v27 }
 0x416   : > { %v1090_v29 = vpop.xlane.xlu1 %1089 }
 0x417   : > { %2347 = vpow2.f32 %v1096_v28  ;;  %v1093_v30 = vsub.f32 %v1079_v44, %v1090_v29 }
 0x419   : > { %v1098_v24 = vmul.f32 1.442695, %v1093_v30 }
 0x41a   : > { %v1320_v17 = vpop.xlane.xlu0 %1319 }
 0x41b   : > { %2349 = vpow2.f32 %v1098_v24  ;;  %v1327_v31 = vsub.f32 %v1305_v51, %v1320_v17 }
 0x41d   : > { %v2736_v32 = vpop.eup %2345  ;;  %v1330_v33 = vmul.f32 1.442695, %v1327_v31 }
 0x41e   : > { %v1100_v26 = vsel %vm843_vm6, %v2736_v32, 0.0  ;;  %v1323_v53 = vpop.xlane.xlu1 %1322 }
 0x41f   : > { %2351 = vpow2.f32 %v1330_v33  ;;  %1101 = vadd.xlane.f32.xlu0 %v1100_v26  ;;  %v1328_v55 = vsub.f32 %v2708_v56, %v1323_v53  ;;  %v2311_v56 = vunpack.i.h.bf16 %v2720_v3 }
 0x421   : > { %v2740_v34 = vpop.eup %2347  ;;  %v1332_v57 = vmul.f32 1.442695, %v1328_v55  ;;  %v2244_v8 = vpack.c.bf16 %v2311_v56, %v2310_v6 }
 0x422   : > { %v1326_v35 = vpop.xlane.xlu0 %1325  ;;  %v1103_v36 = vsel %vm843_vm6, %v2740_v34, 0.0  ;;  %v2314_v60 = vpop.permute.xlu1 %2313 }
 0x423   : > { %v1329_v37 = vsub.f32 %v1315_v62, %v1326_v35  ;;  %1104 = vadd.xlane.f32.xlu1 %v1103_v36  ;;  %v2315_v15 = vunpack.i.l.bf16 %v2314_v60 }
 0x425   : > { %v2744_v38 = vpop.eup %2349  ;;  %v1334_v39 = vmul.f32 1.442695, %v1329_v37 }
 0x426   : > { %v2319_v40 = vpop.permute.xlu0 %2318  ;;  %v1106_v41 = vsel %vm850_vm7, %v2744_v38, 0.0 }
 0x427   : > { %2353 = vpow2.f32 %v1334_v39  ;;  %v2321_v42 = vunpack.i.h.bf16 %v2319_v40  ;;  %v2320_v44 = vunpack.i.l.bf16 %v2319_v40  ;;  %1107 = vadd.xlane.f32.xlu1 %v1106_v41 }
 0x428   : > { %2355 = vpow2.f32 %v1332_v57 }
 0x429   : > { %v2748_v47 = vpop.eup %2351  ;;  %v2750_v48 = vpack.c.bf16 %v2321_v42, %v2320_v44 }
 0x42a   : > { %v1336_v50 = vsel %vm843_vm6, %v2748_v47, 0.0 }
 0x42b   : > { %1337 = vadd.xlane.f32.xlu1 %v1336_v50  ;;  %2256 = vmatpush3.bf16.xpose.msk.msra.mxu0 %vm2604_vm4, %v2750_v48 }
 0x42c   : > { %2177 = vmatprep.subr.mxu0 %v2400_v49 }
 0x431   : > { %v2758_v51 = vpop.eup %2353 }
 0x432   : > { %v1342_v52 = vsel %vm850_vm7, %v2758_v51, 0.0  ;;  %v2767_v61 = vpop.eup %2355 }
 0x433   : > { %1343 = vadd.xlane.f32.xlu1 %v1342_v52  ;;  %v1339_v0 = vsel %vm843_vm6, %v2767_v61, 0.0 }
 0x435   : > { %1355 = vrot.lane.b32.xlu0 %v2616_v54, %s2405_s18 }
 0x444   : > { %1452 = vrot.lane.b32.xlu1 %v2622_v59, %s2406_s27 }
 0x453   : > { %v865_v62 = vpop.xlane.xlu1 %864 }
 0x454   : > { %2357 = vrcp.f32 %v865_v62  ;;  %1340 = vadd.xlane.f32.xlu0 %v1339_v0 }
 0x457   : > { %v871_v1 = vpop.xlane.xlu1 %870  ;;  %v868_v4 = vpop.xlane.xlu0 %867 }
 0x458   : > { %2359 = vrcp.f32 %v868_v4 }
 0x459   : > { %2361 = vrcp.f32 %v871_v1 }
 0x45b   : > { %v1461_v5 = vpop.permute.xlu1 %1460 }
 0x45c   : > { %2178 = vmatpush3.xpose.msk.msra.mxu0 %vm744_vm3, %v1461_v5 }
 0x45d   : > { %2260 = vmatprep.subr.bf16.mxu0 %v2398_v45 }
 0x45e   : > { %v2358_v59 = vpop.eup %2357 }
 0x45f   : > { %v875_v7 = vmul.f32 %v2358_v59, %v2722_v13 }
 0x461   : > { %2105 = vmatmul.mubr.msk.f32.vlgmr.msra.gmra.mrb[6].mxu1 %vm843_vm6, %v875_v7 }
 0x462   : > { %2245 = vmatpush3.bf16.msra.mxu1 %v2244_v8  ;;  %2107 = vmatprep.mubr.msk.f32.mxu1 %vm2399_vm2, %v2400_v49  ;;  %v2360_v9 = vpop.eup %2359 }
 0x463   : > { %2132 = vmatprep.subr.mxu1 %v2400_v49  ;;  %v876_v10 = vmul.f32 %v2360_v9, %v2724_v14  ;;  %v2362_v3 = vpop.eup %2361  ;;  %v2316_v14 = vunpack.i.h.bf16 %v2314_v60 }
 0x464   : > { %v877_v11 = vmul.f32 %v2362_v3, %v2728_v18 }
 0x465   : > { %2108 = vmatmul.mubr.msk.f32.gmra.mrb[8].mxu1 %vm843_vm6, %v876_v10  ;;  %v2251_v21 = vpack.c.bf16 %v2316_v14, %v2315_v15 }
 0x466   : > { %2133 = vmatpush3.msk.msra.mxu1 %vm895_vm5, %v2716_v2  ;;  %2110 = vmatprep.mubr.msk.f32.mxu1 %vm2399_vm2, %v2400_v49 }
 0x467   : > { %2250 = vmatprep.subr.bf16.mxu1 %v2398_v45 }
 0x469   : > { %2111 = vmatmul.mubr.msk.f32.gmra.mrb[10].mxu1 %vm843_vm6, %v877_v11 }
 0x46a   : > { %1450 = vrot.lane.b32.xlu0 %v2620_v58, %s2406_s27  ;;  %2134 = vmatprep.mubr.msk.f32.mxu1 %vm2399_vm2, %v2400_v49 }
 0x46e   : > { %1454 = vrot.lane.b32.xlu0 %v2628_v63, %s2406_s27 }
 0x4ac   : > { %v1102_v12 = vpop.xlane.xlu0 %1101 }
 0x4ad   : > { %2363 = vrcp.f32 %v1102_v12 }
 0x4b0   : > { %v1105_v2 = vpop.xlane.xlu1 %1104  ;;  %v1356_v22 = vpop.permute.xlu0 %1355 }
 0x4b1   : > { %2365 = vrcp.f32 %v1105_v2 }
 0x4b4   : > { %v1108_v13 = vpop.xlane.xlu1 %1107 }
 0x4b5   : > { %2367 = vrcp.f32 %v1108_v13 }
 0x4b7   : > { %v2364_v18 = vpop.eup %2363 }
 0x4b8   : > { %v1112_v19 = vmul.f32 %v2364_v18, %v2736_v32  ;;  %v1338_v20 = vpop.xlane.xlu1 %1337 }
 0x4b9   : > { %2369 = vrcp.f32 %v1338_v20 }
 0x4ba   : > { %2135 = vmatmul.mubr.msk.f32.vlgmr.msra.gmra.mrb[12].mxu1 %vm843_vm6, %v1112_v19 }
 0x4bb   : > { %v2366_v58 = vpop.eup %2365  ;;  %2252 = vmatpush3.bf16.msra.mxu1 %v2251_v21  ;;  %2137 = vmatprep.mubr.msk.f32.mxu1 %vm2399_vm2, %v2400_v49 }
 0x4bc   : > { %2162 = vmatprep.subr.mxu1 %v2400_v49  ;;  %v1113_v63 = vmul.f32 %v2366_v58, %v2740_v34 }
 0x4be   : > { %2138 = vmatmul.mubr.msk.f32.gmra.mrb[14].mxu1 %vm843_vm6, %v1113_v63 }
 0x4bf   : > { %v2368_v23 = vpop.eup %2367  ;;  %2163 = vmatpush3.msk.msra.mxu1 %vm895_vm5, %v1356_v22  ;;  %2140 = vmatprep.mubr.msk.f32.mxu1 %vm2399_vm2, %v2400_v49 }
 0x4c0   : > { %v1114_v25 = vmul.f32 %v2368_v23, %v2744_v38  ;;  %2266 = vmatprep.subr.bf16.mxu1 %v2398_v45  ;;  %v1344_v29 = vpop.xlane.xlu1 %1343 }
 0x4c2   : > { %2141 = vmatmul.mubr.msk.f32.gmra.mrb[16].mxu1 %vm843_vm6, %v1114_v25 }
 0x4c3   : > { %v2370_v27 = vpop.eup %2369  ;;  %2164 = vmatprep.mubr.msk.f32.mxu1 %vm2399_vm2, %v2400_v49 }
 0x4c4   : > { %v1348_v28 = vmul.f32 %v2370_v27, %v2748_v47  ;;  %v1453_v46 = vpop.permute.xlu1 %1452 }
 0x4c6   : > { %2165 = vmatmul.mubr.msk.f32.vlgmr.msra.gmra.mrb[18].mxu1 %vm843_vm6, %v1348_v28 }
 0x4c7   : > { %2268 = vmatpush3.bf16.xpose.msk.msra.mxu1 %vm2604_vm4, %v2750_v48  ;;  %2167 = vmatprep.mubr.msk.f32.mxu1 %vm2399_vm2, %v2400_v49 }
 0x4c8   : > { %2267 = vmatprep.subr.mxu1 %v2400_v49 }
 0x4cf   : > { %2269 = vmatpush3.xpose.msk.msra.mxu1 %vm744_vm3, %v1461_v5 }
 0x4d0   : > { %2257 = vmatprep.subr.bf16.mxu1 %v2398_v45 }
 0x4e1   : > { %v1341_v30 = vpop.xlane.xlu0 %1340 }
 0x4e2   : > { %2371 = vrcp.f32 %v1341_v30 }
 0x4e3   : > { %2373 = vrcp.f32 %v1344_v29 }
 0x4e5   : > { %v1451_v24 = vpop.permute.xlu0 %1450 }
 0x4e6   : > { %2180 = vmatmul.mubr.msk.f32.vlgmr.msra.gmra.mrb[24].mxu0 %vm744_vm3, %v1451_v24 }
 0x4e7   : > { %2182 = vmatprep.mubr.msk.f32.mxu0 %vm2399_vm2, %v2400_v49 }
 0x4e9   : > { %v1455_v26 = vpop.permute.xlu0 %1454 }
 0x4ea   : > { %2183 = vmatmul.mubr.msk.f32.gmra.mrb[26].mxu0 %vm744_vm3, %v1453_v46 }
 0x4eb   : > { %2211 = vmatprep.mubr.msk.f32.mxu0 %vm2399_vm2, %v2400_v49 }
 0x4ec   : > { %v2372_v17 = vpop.eup %2371 }
 0x4ed   : > { %v1349_v31 = vmul.f32 %v2372_v17, %v2767_v61  ;;  %v2374_v32 = vpop.eup %2373 }
 0x4ee   : > { %v1350_v33 = vmul.f32 %v2374_v32, %v2758_v51  ;;  %v1733_v32 = vld [vmem:[%s2934_s8] sm:$0xff] }
 0x4ef   : > { %2168 = vmatmul.mubr.msk.f32.gmra.mrb[20].mxu1 %vm843_vm6, %v1349_v31 }
 0x4f0   : > { %2170 = vmatprep.mubr.msk.f32.mxu1 %vm2399_vm2, %v2400_v49 }
 0x4f3   : > { %2171 = vmatmul.mubr.msk.f32.gmra.mrb[22].mxu1 %vm843_vm6, %v1350_v33  ;;  %v1734_v33 = vld [vmem:[%s2934_s8 + $0x8] sm:$0xff] }
 0x4f4   : > { %2185 = vmatprep.mubr.msk.f32.mxu1 %vm2399_vm2, %v2400_v49 }
 0x4f7   : > { %2186 = vmatmul.mubr.msk.f32.vlgmr.msra.gmra.mrb[24].mxu1 %vm744_vm3, %v1455_v26  ;;  %v1735_v26 = vld [vmem:[%s2934_s8 + $0x10] sm:$0xff] }
 0x4f8   : > { %2194 = vmatprep.mubr.msk.f32.mxu1 %vm2399_vm2, %v2400_v49 }
 0x534   : > { %v2837_v34 = vpop.f32.mrb[6].mxu1 }
 0x535   : > { %v2106_v35 = vpop.f32.mrb[7].mxu1 }
 0x536   : > { %v2261_v35 = vpack.c.bf16 %v1734_v33, %v1733_v32 }
 0x538   : > { %v2839_v36 = vpop.f32.mrb[8].mxu1  ;;  %2262 = vmatpush3.bf16.msra.mxu0 %v2261_v35 }
 0x539   : > { %v2109_v37 = vpop.f32.mrb[9].mxu1  ;;  %2263 = vmatprep.subr.bf16.mxu0 %v2398_v45 }
 0x53a   : > { %v1736_v37 = vld [vmem:[%s2934_s8 + $0x18] sm:$0xff] }
 0x53c   : > { %v2841_v38 = vpop.f32.mrb[10].mxu1 }
 0x53d   : > { %v2112_v39 = vpop.f32.mrb[11].mxu1 }
 0x53e   : > { %v2264_v39 = vpack.c.bf16 %v1736_v37, %v1735_v26 }
 0x540   : > { %2265 = vmatpush3.bf16.msra.mxu0 %v2264_v39 }
 0x58d   : > { %v1200_v40 = vpop.f32.mrb[12].mxu1 }
 0x58e   : > { %v2136_v41 = vpop.f32.mrb[13].mxu1 }
 0x591   : > { %v1205_v42 = vpop.f32.mrb[14].mxu1 }
 0x592   : > { %v2139_v44 = vpop.f32.mrb[15].mxu1 }
 0x595   : > { %v2843_v47 = vpop.f32.mrb[16].mxu1 }
 0x596   : > { %v2142_v48 = vpop.f32.mrb[17].mxu1 }
 0x599   : > { %v1436_v50 = vpop.f32.mrb[18].mxu1 }
 0x59a   : > { %v2166_v51 = vpop.f32.mrb[19].mxu1 }
 0x5b9   : > { %v1540_v52 = vpop.f32.mrb[24].mxu0 }
 0x5ba   : > { %v1541_v53 = vadd.f32 %v2691_v16, %v1540_v52  ;;  %v2181_v55 = vpop.f32.mrb[25].mxu0 }
 0x5bc   : > { %v1554_v57 = vsel %vm843_vm6, %v1541_v53, -inf }
 0x5bd   : > { %1555 = vmax.xlane.f32.xlu1 %v1554_v57  ;;  %v1545_v60 = vpop.f32.mrb[26].mxu0 }
 0x5be   : > { %v1546_v61 = vadd.f32 %v2691_v16, %v1545_v60  ;;  %v2184_v62 = vpop.f32.mrb[27].mxu0 }
 0x5c0   : > { %v1557_v0 = vsel %vm843_vm6, %v1546_v61, -inf }
 0x5c1   : > { %1558 = vmax.xlane.f32.xlu0 %v1557_v0 }
 0x5c2   : > { %v2849_v1 = vpop.f32.mrb[20].mxu1 }
 0x5c3   : > { %v2169_v4 = vpop.f32.mrb[21].mxu1 }
 0x5c6   : > { %v2851_v5 = vpop.f32.mrb[22].mxu1 }
 0x5c7   : > { %v2172_v56 = vpop.f32.mrb[23].mxu1 }
 0x5ca   : > { %v1550_v6 = vpop.f32.mrb[24].mxu1 }
 0x5cb   : > { %v1551_v59 = vadd.f32 %v2691_v16, %v1550_v6  ;;  %v2187_v7 = vpop.f32.mrb[25].mxu1 }
 0x5cd   : > { %v1560_v8 = vsel %vm850_vm7, %v1551_v59, -inf }
 0x5ce   : > { %1561 = vmax.xlane.f32.xlu0 %v1560_v8 }
 0x64a   : > { %v1556_v9 = vpop.xlane.xlu1 %1555 }
 0x64b   : > { %v1563_v10 = vsub.f32 %v1541_v53, %v1556_v9 }
 0x64d   : > { %v1566_v3 = vmul.f32 1.442695, %v1563_v10 }
 0x64e   : > { %v1559_v11 = vpop.xlane.xlu0 %1558 }
 0x64f   : > { %2375 = vpow2.f32 %v1566_v3  ;;  %v1564_v12 = vsub.f32 %v1546_v61, %v1559_v11 }
 0x651   : > { %v1568_v2 = vmul.f32 1.442695, %v1564_v12  ;;  %v2388_v12 = vld [vmem:[%s2492_s25 + $0x8] sm:$0xff] }
 0x653   : > { %2377 = vpow2.f32 %v1568_v2 }
 0x659   : > { %v2376_v13 = vpop.eup %2375 }
 0x65a   : > { %v1572_v14 = vsel %vm843_vm6, %v2376_v13, 0.0 }
 0x65b   : > { %1573 = vadd.xlane.f32.xlu0 %v1572_v14  ;;  %v1562_v15 = vpop.xlane.xlu0 %1561 }
 0x65c   : > { %v1565_v18 = vsub.f32 %v1551_v59, %v1562_v15  ;;  %v1974_v59 = vld [vmem:[%s2935_s9] ss:$0 sm:$0xff] }
 0x65d   : > { %v2378_v19 = vpop.eup %2377 }
 0x65e   : > { %v1570_v16 = vmul.f32 1.442695, %v1565_v18  ;;  %v1575_v20 = vsel %vm843_vm6, %v2378_v19, 0.0  ;;  %v2389_v18 = vld [vmem:[%s2492_s25 + $0x10] sm:$0x1] }
 0x65f   : > { %1576 = vadd.xlane.f32.xlu1 %v1575_v20 }
 0x660   : > { %2379 = vpow2.f32 %v1570_v16 }
 0x66a   : > { %v2380_v21 = vpop.eup %2379 }
 0x66b   : > { %v1578_v58 = vsel %vm850_vm7, %v2380_v21, 0.0 }
 0x66c   : > { %1579 = vadd.xlane.f32.xlu0 %v1578_v58 }
 0x670   : > { %2323 = vrot.lane.b32.xlu1 %v2600_v43, %s2407_s28 }
 0x674   : > { %1689 = vrot.lane.b32.xlu1 %v1200_v40, %s2408_s29 }
 0x678   : > { %1701 = vrot.lane.b32.xlu1 %v1436_v50, %s2409_s30 }
 0x682   : > { %1591 = vrot.lane.b32.xlu0 %v2616_v54, %s2407_s28  ;;  %s420_s28 = scalar_lea.vmem %s2937_s11, %s2482_s19 }
 0x686   : > { %1691 = vrot.lane.b32.xlu0 %v1205_v42, %s2408_s29 }
 0x6e8   : > { %v1574_v22 = vpop.xlane.xlu0 %1573 }
 0x6e9   : > { %2381 = vrcp.f32 %v1574_v22 }
 0x6ec   : > { %v1577_v63 = vpop.xlane.xlu1 %1576 }
 0x6ed   : > { %2383 = vrcp.f32 %v1577_v63 }
 0x6f0   : > { %v2324_v23 = vpop.permute.xlu1 %2323 }
 0x6f1   : > { %v2326_v25 = vunpack.i.h.bf16 %v2324_v23  ;;  %v2325_v27 = vunpack.i.l.bf16 %v2324_v23 }
 0x6f3   : > { %v2258_v28 = vpack.c.bf16 %v2326_v25, %v2325_v27  ;;  %v2382_v29 = vpop.eup %2381 }
 0x6f4   : > { %v1584_v30 = vmul.f32 %v2382_v29, %v2376_v13  ;;  %v1690_v45 = vpop.permute.xlu1 %1689 }
 0x6f5   : > { %2259 = vmatpush3.bf16.msra.mxu1 %v2258_v28  ;;  %v1722_v52 = vsel %vm744_vm3, %v2837_v34, %v1690_v45 }
 0x6f6   : > { %2192 = vmatprep.subr.mxu1 %v2400_v49 }
 0x6f7   : > { %v2384_v46 = vpop.eup %2383 }
 0x6f8   : > { %v1585_v54 = vmul.f32 %v2384_v46, %v2378_v19  ;;  %v1702_v51 = vpop.permute.xlu1 %1701 }
 0x6f9   : > { %v1580_v43 = vpop.xlane.xlu0 %1579  ;;  %v1726_v53 = vsel %vm1725_vm8, %v1722_v52, %v1702_v51 }
 0x6fa   : > { %2385 = vrcp.f32 %v1580_v43 }
 0x6fd   : > { %v1592_v24 = vpop.permute.xlu0 %1591 }
 0x6fe   : > { %2193 = vmatpush3.msk.msra.mxu1 %vm895_vm5, %v1592_v24 }
 0x6ff   : > { %2195 = vmatmul.mubr.msk.f32.vlgmr.msra.gmra.mrb[26].mxu1 %vm843_vm6, %v1584_v30 }
 0x700   : > { %2197 = vmatprep.mubr.msk.f32.mxu1 %vm2399_vm2, %v2400_v49 }
 0x701   : > { %v1692_v55 = vpop.permute.xlu0 %1691 }
 0x703   : > { %2198 = vmatmul.mubr.msk.f32.gmra.mrb[28].mxu1 %vm843_vm6, %v1585_v54 }
 0x704   : > { %v2386_v17 = vpop.eup %2385  ;;  %2200 = vmatprep.mubr.msk.f32.mxu1 %vm2399_vm2, %v2400_v49 }
 0x705   : > { %v1586_v31 = vmul.f32 %v2386_v17, %v2380_v21 }
 0x707   : > { %2201 = vmatmul.mubr.msk.f32.gmra.mrb[30].mxu1 %vm843_vm6, %v1586_v31 }
 0x7d2   : > { %v1672_v40 = vpop.f32.mrb[26].mxu1 }
 0x7d3   : > { %1713 = vrot.lane.b32.xlu1 %v1672_v40, %s2410_s23  ;;  %v2196_v41 = vpop.f32.mrb[27].mxu1 }
 0x7d6   : > { %v1677_v42 = vpop.f32.mrb[28].mxu1 }
 0x7d7   : > { %1703 = vrot.lane.b32.xlu1 %v2849_v1, %s2409_s30  ;;  %1715 = vrot.lane.b32.xlu0 %v1677_v42, %s2410_s23  ;;  %v2199_v44 = vpop.f32.mrb[29].mxu1 }
 0x7da   : > { %v1682_v48 = vpop.f32.mrb[30].mxu1 }
 0x7db   : > { %1693 = vrot.lane.b32.xlu1 %v2843_v47, %s2408_s29  ;;  %1705 = vrot.lane.b32.xlu0 %v2851_v5, %s2409_s30  ;;  %v2202_v50 = vpop.f32.mrb[31].mxu1  ;;  %v1723_v47 = vsel %vm744_vm3, %v2839_v36, %v1692_v55 }
 0x7df   : > { %1717 = vrot.lane.b32.xlu1 %v1682_v48, %s2410_s23 }
 0x845   : > { %v1714_v57 = vpop.permute.xlu1 %1713 }
 0x846   : > { %v1730_v60 = vsel %vm1729_vm9, %v1726_v53, %v1714_v57 }
 0x847   : > { %2212 = vmatmul.mubr.msk.f32.vlgmr.msra.gmra.mrb[28].mxu0 %vm426_vm0, %v1730_v60 }
 0x848   : > { %2214 = vmatprep.mubr.msk.f32.mxu0 %vm2399_vm2, %v2400_v49 }
 0x849   : > { %v1704_v61 = vpop.permute.xlu1 %1703  ;;  %v1716_v62 = vpop.permute.xlu0 %1715 }
 0x84a   : > { %v1727_v0 = vsel %vm1725_vm8, %v1723_v47, %v1704_v61 }
 0x84b   : > { %v1731_v34 = vsel %vm1729_vm9, %v1727_v0, %v1716_v62 }
 0x84c   : > { %2215 = vmatmul.mubr.msk.f32.gmra.mrb[30].mxu0 %vm426_vm0, %v1731_v34 }
 0x84d   : > { %v1694_v1 = vpop.permute.xlu1 %1693  ;;  %2217 = vmatprep.mubr.msk.f32.mxu0 %vm2399_vm2, %v2400_v49  ;;  %v1706_v5 = vpop.permute.xlu0 %1705 }
 0x84e   : > { %v1724_v4 = vsel %vm744_vm3, %v2841_v38, %v1694_v1  ;;  %v2387_v38 = vld [vmem:[%s2492_s25] sm:$0xff] }
 0x84f   : > { %v1728_v36 = vsel %vm1725_vm8, %v1724_v4, %v1706_v5 }
 0x851   : > { %v1718_v56 = vpop.permute.xlu1 %1717 }
 0x852   : > { %v1732_v6 = vsel %vm1729_vm9, %v1728_v36, %v1718_v56 }
 0x853   : > { %2218 = vmatmul.mubr.msk.f32.gmra.mrb[32].mxu0 %vm426_vm0, %v1732_v6 }
 0x91a   : > { %v1819_v7 = vpop.f32.mrb[28].mxu0 }
 0x91b   : > { %v1820_v8 = vadd.f32 %v1974_v59, %v1819_v7  ;;  %v2213_v49 = vpop.f32.mrb[29].mxu0 }
 0x91d   : > { %v1833_v9 = vadd.f32 %v2387_v38, %v1820_v8 }
 0x91f   : > { %1836 = vst.msk [vmem:[%s420_s28] sm:$0xff] %vm426_vm0, %v1833_v9  ;;  %v1824_v10 = vpop.f32.mrb[30].mxu0 }
 0x920   : > { %v1825_v3 = vadd.f32 %v1974_v59, %v1824_v10  ;;  %v2216_v11 = vpop.f32.mrb[31].mxu0 }
 0x922   : > { %v1834_v2 = vadd.f32 %v2388_v12, %v1825_v3 }
 0x924   : > { %1837 = vst.msk [vmem:[%s420_s28 + $0x8] sm:$0xff] %vm426_vm0, %v1834_v2 }
 0x926   : > { %v1829_v13 = vpop.f32.mrb[32].mxu0 }
 0x927   : > { %v1830_v14 = vadd.f32 %v1974_v59, %v1829_v13  ;;  %v2219_v15 = vpop.f32.mrb[33].mxu0 }
 0x929   : > { %v1835_v19 = vadd.f32 %v2389_v18, %v1830_v14 }
 0x92b   : > { %1838 = vst.msk [vmem:[%s420_s28 + $0x10] sm:$0x1] %vm433_vm1, %v1835_v19 }
 0x92c PF: > { %s21_s17 = sadd.s32 1, %s2396_s17  }
 0x92d   : > { %p18_p4 = scmp.ge.s32.totalorder %s21_s17, 4  }
 0x92f   :  { %20 = sbr.rel (!%p18_p4) target bundleno = 1 (0x1), region = 100 }

// kernel: hoi_transformer_forward.14
= control target key start
LH: loop header
LB: loop body
LE: loop exit
PB: predicated region body
PF: predicated region fallthrough
CT: control target
= control target key end

     0   :  { %s2080_s13 = smov 0   ;;  %s2285_s0 = inlined_call_operand.vmem [shape: f32[2,9,32], index: 0, kind: input, shape index: {}, may-alias: {0,1}]   ;;  %s2286_s1 = inlined_call_operand.vmem [shape: f32[2,9,32], index: 1, kind: input, shape index: {}, may-alias: {0,1}]   ;;  %s2287_s2 = inlined_call_operand.vmem [shape: f32[1,32], index: 2, kind: input, shape index: {}]   ;;  %s2288_s3 = inlined_call_operand.vmem [shape: f32[1,32], index: 3, kind: input, shape index: {}]   ;;  %s2289_s4 = inlined_call_operand.vmem [shape: f32[32,32], index: 4, kind: input, shape index: {}]   ;;  %s2290_s5 = inlined_call_operand.vmem [shape: f32[1,32], index: 5, kind: input, shape index: {}]   ;;  %s2291_s6 = inlined_call_operand.vmem [shape: f32[32,64], index: 6, kind: input, shape index: {}]   ;;  %s2292_s7 = inlined_call_operand.vmem [shape: f32[1,64], index: 7, kind: input, shape index: {}]   ;;  %s2293_s8 = inlined_call_operand.vmem [shape: f32[32,32], index: 8, kind: input, shape index: {}]   ;;  %s2294_s9 = inlined_call_operand.vmem [shape: f32[1,32], index: 9, kind: input, shape index: {}]   ;;  %s2295_s10 = inlined_call_operand.vmem [shape: f32[2,9,32], index: 10, kind: output, shape index: {}]  }
   0x1 LB: > { %s1646_s14 = sadd.s32 4294967295, %s2012_s13   ;;  %p1650_p0 = scmp.ge.s32.totalorder %s2012_s13, 1  ;;  %s2012_s13 = sphi %s2080_s13, %s20_s13  }
   0x2   : > { %p322_p1 = scmp.lt.s32.totalorder %s2012_s13, 3 }
   0x4   : > { %p323_p2 = pnand %p1650_p0, %p322_p1 }
   0x5   : > { %p365_p3 = scmp.lt.s32.totalorder (!%p323_p2), %s1646_s14, 1  ;;  %vm384_vm0 = vcmask (!%p323_p2), 261120   ;;  %vm388_vm1 = vcmask (!%p323_p2), 253952   ;;  %v555_v28 = vld [vmem:[%s2291_s6] sm:$0xff] (!%p323_p2)  ;;  %v556_v29 = vld [vmem:[%s2291_s6 + $0x8] sm:$0xff] (!%p323_p2)  ;;  %v557_v33 = vld [vmem:[%s2291_s6 + $0x10] sm:$0xff] (!%p323_p2) }
   0x6   : > { %326 = sbr.rel (%p323_p2) target bundleno = 2779 (0xadb), region = 60  ;;  %v461_v30 = vld [vmem:[%s2289_s4] sm:$0xff] (!%p323_p2)  ;;  %v1848_v31 = vpack.c.bf16 (!%p323_p2), %v556_v29, %v555_v28  ;;  %v462_v32 = vld [vmem:[%s2289_s4 + $0x8] sm:$0xff] (!%p323_p2)  ;;  %v558_v34 = vld [vmem:[%s2291_s6 + $0x18] sm:$0xff] (!%p323_p2)  ;;  %vm647_vm2 = vcmask (!%p323_p2), 64512   ;;  %vm739_vm4 = vcmask (!%p323_p2), 65536  }
   0x7   : > { %v1840_v35 = vpack.c.bf16 (!%p323_p2), %v462_v32, %v461_v30  ;;  %v1852_v36 = vpack.c.bf16 (!%p323_p2), %v558_v34, %v557_v33  ;;  %v463_v37 = vld [vmem:[%s2289_s4 + $0x10] sm:$0xff] (!%p323_p2)  ;;  %v464_v38 = vld [vmem:[%s2289_s4 + $0x18] sm:$0xff] (!%p323_p2)  ;;  %v1657_v53 = vld [vmem:[%s2287_s2] ss:$0 sm:$0xff] (!%p323_p2)  ;;  %vm735_vm5 = vcmask (!%p323_p2), 72704   ;;  %s2014_s28 = smov (!%p323_p2), 120  }
   0x8   : > { %1849 = vmatprep.subr.bf16.mxu1 (!%p323_p2), %v1848_v31  ;;  %v1844_v39 = vpack.c.bf16 (!%p323_p2), %v464_v38, %v463_v37  ;;  %v1658_v55 = vld [vmem:[%s2288_s3] ss:$0 sm:$0xff] (!%p323_p2)  ;;  %vm2156_vm3 = vmpackc.low (!%p323_p2), %vm647_vm2, %vm647_vm2  ;;  %s2015_s29 = smov (!%p323_p2), 96   ;;  %s2016_s30 = smov (!%p323_p2), 112   ;;  %vm770_vm6 = vcmask (!%p323_p2), 1040384   ;;  %vm2017_vm7 = vmmov (!%p323_p2), 1  }
   0x9   : > { %1851 = vmatpush3.bf16.msra.mxu1 (!%p323_p2), %v1848_v31  ;;  %1841 = vmatprep.subr.bf16.mxu0 (!%p323_p2), %v1840_v35  ;;  %vm2185_vm8 = vmpackc.low (!%p323_p2), %vm770_vm6, %vm2017_vm7  ;;  %s2018_s11 = smov (!%p323_p2), 88   ;;  %s2019_s12 = smov (!%p323_p2), 80   ;;  %vm1477_vm9 = vcmask (!%p323_p2), 130048   ;;  %vm1480_vm10 = vcmask (!%p323_p2), 195584  }
   0xa   : > { %1853 = vmatprep.subr.bf16.mxu1 (!%p323_p2), %v1852_v36  ;;  %1843 = vmatpush3.bf16.msra.mxu0 (!%p323_p2), %v1840_v35  ;;  %s2021_s16 = smov (!%p323_p2), 8   ;;  %s2022_s17 = smov (!%p323_p2), 16  }
   0xb   : > { %1845 = vmatprep.subr.bf16.mxu0 (!%p323_p2), %v1844_v39  ;;  %s2024_s27 = smov (!%p323_p2), 24  }
   0xd   : > { %s2301_s14 = smov (!%p365_p3, %s1646_s14), 1  ;;  %1855 = vmatpush3.bf16.msra.mxu1 %v1852_v36 }
   0xe   : > { %s2088_s15 = sshll.u32 %s2301_s14, 4  ;;  %1847 = vmatpush3.bf16.msra.mxu0 %v1844_v39  ;;  %s2020_s14 = smov 104  }
   0xf   : > { %s374_s18 = scalar_lea.vmem %s2286_s1, %s2088_s15  ;;  %s369_s21 = scalar_lea.vmem %s2285_s0, %s2088_s15 }
  0x10   : > { %v429_v0 = vld [vmem:[%s374_s18] sm:$0xff]  ;;  %v430_v1 = vld [vmem:[%s374_s18 + $0x8] sm:$0x1]  ;;  %s2023_s18 = smov 72  }
  0x11   : > { %v431_v2 = vsel %vm384_vm0, %v429_v0, 0.0  ;;  %v2099_v3 = vld [vmem:[%s369_s21] sm:$0xff]  ;;  %v2101_v4 = vld [vmem:[%s369_s21 + $0x8] sm:$0x1]  ;;  %v434_v6 = vsel %vm388_vm1, %v430_v1, 0.0 }
  0x12   : > { %432 = vadd.xlane.f32.xlu0 %v431_v2  ;;  %v385_v5 = vsel %vm384_vm0, %v2099_v3, 0.0  ;;  %v389_v7 = vsel %vm388_vm1, %v2101_v4, 0.0 }
  0x13   : > { %386 = vadd.xlane.f32.xlu1 %v385_v5 }
  0x16   : > { %435 = vadd.xlane.f32.xlu0 %v434_v6 }
  0x17   : > { %390 = vadd.xlane.f32.xlu1 %v389_v7 }
  0x9f   : > { %v433_v8 = vpop.xlane.xlu0 %432 }
  0xa0   : > { %v437_v9 = vmul.f32 0.03125, %v433_v8  ;;  %v387_v10 = vpop.xlane.xlu1 %386  ;;  %v1662_v8 = vld [vmem:[%s2292_s7] ss:$0 sm:$0xff] }
  0xa1   : > { %v393_v11 = vmul.f32 0.03125, %v387_v10 }
  0xa2   : > { %v439_v12 = vsub.f32 %v429_v0, %v437_v9 }
  0xa3   : > { %v436_v13 = vpop.xlane.xlu0 %435  ;;  %v395_v14 = vsub.f32 %v2099_v3, %v393_v11 }
  0xa4   : > { %v438_v15 = vmul.f32 0.03125, %v436_v13  ;;  %v441_v16 = vmul.f32 %v439_v12, %v439_v12  ;;  %v391_v17 = vpop.xlane.xlu1 %390  ;;  %v1659_v13 = vld [vmem:[%s2290_s5] ss:$0 sm:$0xff] }
  0xa5   : > { %v394_v18 = vmul.f32 0.03125, %v391_v17  ;;  %v397_v19 = vmul.f32 %v395_v14, %v395_v14 }
  0xa6   : > { %v440_v20 = vsub.f32 %v430_v1, %v438_v15  ;;  %v443_v21 = vsel %vm384_vm0, %v441_v16, 0.0 }
  0xa7   : > { %444 = vadd.xlane.f32.xlu0 %v443_v21  ;;  %v396_v22 = vsub.f32 %v2101_v4, %v394_v18  ;;  %v399_v24 = vsel %vm384_vm0, %v397_v19, 0.0 }
  0xa8   : > { %v442_v23 = vmul.f32 %v440_v20, %v440_v20 }
  0xa9   : > { %v398_v25 = vmul.f32 %v396_v22, %v396_v22 }
  0xaa   : > { %v446_v26 = vsel %vm388_vm1, %v442_v23, 0.0 }
  0xab   : > { %447 = vadd.xlane.f32.xlu1 %v446_v26  ;;  %400 = vadd.xlane.f32.xlu0 %v399_v24  ;;  %v402_v27 = vsel %vm388_vm1, %v398_v25, 0.0 }
  0xaf   : > { %403 = vadd.xlane.f32.xlu1 %v402_v27 }
 0x134   : > { %v445_v40 = vpop.xlane.xlu0 %444 }
 0x135   : > { %v449_v41 = vmul.f32 0.03125, %v445_v40 }
 0x137   : > { %v451_v42 = vadd.f32 1e-05, %v449_v41 }
 0x138   : > { %v401_v43 = vpop.xlane.xlu0 %400  ;;  %v448_v44 = vpop.xlane.xlu1 %447 }
 0x139   : > { %1966 = vrsqrt.f32 %v451_v42  ;;  %v405_v45 = vmul.f32 0.03125, %v401_v43  ;;  %v450_v46 = vmul.f32 0.03125, %v448_v44 }
 0x13b   : > { %v407_v47 = vadd.f32 1e-05, %v405_v45  ;;  %v452_v48 = vadd.f32 1e-05, %v450_v46  ;;  %v1485_v45 = vld [vmem:[%s2293_s8 + $0x10] sm:$0xff] }
 0x13c   : > { %v404_v49 = vpop.xlane.xlu1 %403 }
 0x13d   : > { %1968 = vrsqrt.f32 %v407_v47  ;;  %v406_v50 = vmul.f32 0.03125, %v404_v49 }
 0x13e   : > { %1970 = vrsqrt.f32 %v452_v48 }
 0x13f   : > { %v408_v51 = vadd.f32 1e-05, %v406_v50 }
 0x141   : > { %1972 = vrsqrt.f32 %v408_v51 }
 0x143   : > { %v1967_v52 = vpop.eup %1966 }
 0x144   : > { %v455_v54 = vmul.f32 %v1967_v52, %v439_v12 }
 0x146   : > { %v457_v56 = vmul.f32 %v1657_v53, %v455_v54 }
 0x147   : > { %v1969_v57 = vpop.eup %1968 }
 0x148   : > { %v1971_v58 = vpop.eup %1970  ;;  %v459_v59 = vadd.f32 %v1658_v55, %v457_v56  ;;  %v411_v60 = vmul.f32 %v1969_v57, %v395_v14 }
 0x149   : > { %v456_v61 = vmul.f32 %v1971_v58, %v440_v20 }
 0x14a   : > { %1770 = vmatprep.mubr.msk.f32.mxu1 %vm384_vm0, %v459_v59  ;;  %v419_v62 = vmul.f32 %v1657_v53, %v411_v60 }
 0x14b   : > { %v1973_v63 = vpop.eup %1972  ;;  %v458_v0 = vmul.f32 %v1657_v53, %v456_v61 }
 0x14c   : > { %v427_v1 = vadd.f32 %v1658_v55, %v419_v62  ;;  %v412_v2 = vmul.f32 %v1973_v63, %v396_v22 }
 0x14d   : > { %v460_v5 = vadd.f32 %v1658_v55, %v458_v0 }
 0x14e   : > { %1759 = vmatprep.mubr.msk.f32.mxu0 %vm384_vm0, %v427_v1  ;;  %v420_v6 = vmul.f32 %v1657_v53, %v412_v2 }
 0x14f   : > { %1771 = vmatmul.mubr.msk.f32.vlgmr.msra.gmra.mrb[0].mxu1 %vm384_vm0, %v460_v5 }
 0x150   : > { %v428_v7 = vadd.f32 %v1658_v55, %v420_v6 }
 0x152   : > { %1760 = vmatmul.mubr.msk.f32.vlgmr.msra.gmra.mrb[0].mxu0 %vm384_vm0, %v428_v7 }
 0x222   : > { %v1772_v9 = vpop.f32.mrb[0].mxu1 }
 0x223   : > { %v644_v10 = vadd.f32 %v1772_v9, %v1662_v8  ;;  %v638_v11 = vpop.f32.mrb[1].mxu1 }
 0x224   : > { %v639_v12 = vadd.f32 %v1662_v8, %v638_v11 }
 0x225   : > { %v1761_v14 = vpop.f32.mrb[0].mxu0 }
 0x226   : > { %v544_v16 = vpop.f32.mrb[1].mxu0  ;;  %v1856_v17 = vpack.c.bf16 %v644_v10, %v639_v12  ;;  %v2160_v18 = vpack.i.bf16 %v644_v10, %v639_v12  ;;  %v550_v21 = vadd.f32 %v1761_v14, %v1659_v13 }
 0x227   : > { %v545_v19 = vadd.f32 %v1659_v13, %v544_v16 }
 0x228   : > { %1858 = vmatprep.subr.msk.bf16.mxu0 %vm2156_vm3, %v1856_v17  ;;  %v2170_v22 = vmul.f32 0.35355338, %v550_v21 }
 0x229   : > { %v2164_v20 = vmul.f32 0.35355338, %v545_v19  ;;  %1861 = vmatpush3.bf16.xpose.msk.msra.mxu0 %vm2156_vm3, %v1856_v17 }
 0x22b   : > { %1777 = vmatprep.mubr.msk.f32.mxu0 %vm647_vm2, %v2164_v20 }
 0x230   : > { %1778 = vmatmul.mubr.msk.f32.vlgmr.msra.gmra.mrb[2].mxu0 %vm647_vm2, %v2170_v22 }
 0x303   : > { %v1779_v23 = vpop.f32.mrb[2].mxu0 }
 0x304   : > { %v726_v24 = vpop.f32.mrb[3].mxu0  ;;  %v740_v25 = vsel %vm739_vm4, %v1779_v23, -inf }
 0x305   : > { %741 = vmax.xlane.f32.xlu1 %v740_v25  ;;  %v736_v26 = vsel %vm735_vm5, %v726_v24, -inf }
 0x306   : > { %737 = vmax.xlane.f32.xlu0 %v736_v26 }
 0x392   : > { %v742_v27 = vpop.xlane.xlu1 %741 }
 0x393   : > { %v744_v28 = vsub.f32 %v1779_v23, %v742_v27  ;;  %v738_v29 = vpop.xlane.xlu0 %737 }
 0x394   : > { %v743_v30 = vsub.f32 %v726_v24, %v738_v29 }
 0x395   : > { %v747_v31 = vmul.f32 1.442695, %v744_v28 }
 0x396   : > { %v745_v32 = vmul.f32 1.442695, %v743_v30 }
 0x397   : > { %1974 = vpow2.f32 %v747_v31 }
 0x398   : > { %1976 = vpow2.f32 %v745_v32 }
 0x3a1   : > { %v1975_v33 = vpop.eup %1974 }
 0x3a2   : > { %v1977_v34 = vpop.eup %1976  ;;  %v752_v35 = vsel %vm739_vm4, %v1975_v33, 0.0 }
 0x3a3   : > { %753 = vadd.xlane.f32.xlu1 %v752_v35  ;;  %v749_v36 = vsel %vm735_vm5, %v1977_v34, 0.0 }
 0x3a4   : > { %750 = vadd.xlane.f32.xlu0 %v749_v36 }
 0x3b4   : > { %1937 = vrot.lane.b32.xlu1 %v2160_v18, %s2014_s28 }
 0x3b8   : > { %848 = vrot.lane.b32.xlu1 %v2164_v20, %s2014_s28 }
 0x3ba   : > { %1932 = vrot.lane.b32.xlu0 %v2160_v18, %s2015_s29 }
 0x3bc   : > { %1942 = vrot.lane.b32.xlu1 %v2160_v18, %s2016_s30 }
 0x3be   : > { %850 = vrot.lane.b32.xlu0 %v2170_v22, %s2014_s28 }
 0x3c0   : > { %1049 = vrot.lane.b32.xlu1 %v2164_v20, %s2016_s30 }
 0x3c2   : > { %1051 = vrot.lane.b32.xlu0 %v2170_v22, %s2016_s30 }
 0x430   : > { %v754_v37 = vpop.xlane.xlu1 %753 }
 0x431   : > { %1978 = vrcp.f32 %v754_v37  ;;  %v751_v38 = vpop.xlane.xlu0 %750 }
 0x432   : > { %1980 = vrcp.f32 %v751_v38 }
 0x434   : > { %v1938_v39 = vpop.permute.xlu1 %1937 }
 0x435   : > { %v1933_v40 = vpop.permute.xlu0 %1932  ;;  %v1940_v41 = vunpack.i.h.bf16 %v1938_v39  ;;  %v1939_v42 = vunpack.i.l.bf16 %v1938_v39 }
 0x436   : > { %v1935_v43 = vunpack.i.h.bf16 %v1933_v40  ;;  %v1934_v44 = vunpack.i.l.bf16 %v1933_v40 }
 0x437   : > { %v1868_v48 = vpack.c.bf16 %v1940_v41, %v1939_v42 }
 0x438   : > { %v1862_v46 = vpack.c.bf16 %v1935_v43, %v1934_v44  ;;  %v849_v47 = vpop.permute.xlu1 %848 }
 0x439   : > { %v851_v58 = vpop.permute.xlu0 %850 }
 0x43a   : > { %1864 = vmatprep.subr.msk.bf16.mxu1 %vm2185_vm8, %v1862_v46 }
 0x43b   : > { %v1979_v49 = vpop.eup %1978  ;;  %1867 = vmatpush3.bf16.msk.msra.mxu1 %vm2185_vm8, %v1862_v46 }
 0x43c   : > { %v1981_v50 = vpop.eup %1980  ;;  %v1943_v51 = vpop.permute.xlu1 %1942  ;;  %1870 = vmatprep.subr.msk.bf16.mxu1 %vm2156_vm3, %v1868_v48  ;;  %v758_v55 = vmul.f32 %v1979_v49, %v1975_v33 }
 0x43d   : > { %v1945_v52 = vunpack.i.h.bf16 %v1943_v51  ;;  %v1944_v53 = vunpack.i.l.bf16 %v1943_v51  ;;  %v757_v54 = vmul.f32 %v1981_v50, %v1977_v34  ;;  %v1052_v59 = vpop.permute.xlu0 %1051 }
 0x43f   : > { %v1880_v56 = vpack.c.bf16 %v1945_v52, %v1944_v53  ;;  %1784 = vmatprep.mubr.msk.f32.mxu1 %vm735_vm5, %v757_v54 }
 0x440   : > { %v1050_v57 = vpop.permute.xlu1 %1049  ;;  %1785 = vmatmul.mubr.msk.f32.vlgmr.msra.gmra.mrb[2].mxu1 %vm735_vm5, %v758_v55 }
 0x441   : > { %1791 = vmatprep.mubr.msk.f32.mxu1 %vm647_vm2, %v849_v47  ;;  %1882 = vmatprep.subr.msk.bf16.mxu0 %vm2156_vm3, %v1880_v56 }
 0x442   : > { %1805 = vmatprep.mubr.msk.f32.mxu0 %vm647_vm2, %v1050_v57  ;;  %1885 = vmatpush3.bf16.xpose.msk.msra.mxu0 %vm2156_vm3, %v1880_v56 }
 0x444   : > { %1873 = vmatpush3.bf16.xpose.msk.msra.mxu1 %vm2156_vm3, %v1868_v48 }
 0x449   : > { %1806 = vmatmul.mubr.msk.f32.vlgmr.msra.gmra.mrb[4].mxu0 %vm647_vm2, %v1052_v59 }
 0x44b   : > { %1792 = vmatmul.mubr.msk.f32.vlgmr.msra.gmra.mrb[4].mxu1 %vm647_vm2, %v851_v58 }
 0x513   : > { %v2207_v60 = vpop.f32.mrb[2].mxu1 }
 0x514   : > { %v2209_v61 = vpop.f32.mrb[3].mxu1 }
 0x51c   : > { %v1807_v62 = vpop.f32.mrb[4].mxu0 }
 0x51d   : > { %v1131_v63 = vpop.f32.mrb[5].mxu0  ;;  %v1143_v7 = vsel %vm739_vm4, %v1807_v62, -inf }
 0x51e   : > { %v1793_v0 = vpop.f32.mrb[4].mxu1  ;;  %v1140_v6 = vsel %vm735_vm5, %v1131_v63, -inf }
 0x51f   : > { %v930_v1 = vpop.f32.mrb[5].mxu1  ;;  %v942_v2 = vsel %vm739_vm4, %v1793_v0, -inf }
 0x520   : > { %943 = vmax.xlane.f32.xlu0 %v942_v2  ;;  %v939_v5 = vsel %vm735_vm5, %v930_v1, -inf }
 0x521   : > { %940 = vmax.xlane.f32.xlu1 %v939_v5 }
 0x524   : > { %1141 = vmax.xlane.f32.xlu0 %v1140_v6 }
 0x528   : > { %1144 = vmax.xlane.f32.xlu0 %v1143_v7 }
 0x5ad   : > { %v944_v8 = vpop.xlane.xlu0 %943 }
 0x5ae   : > { %v946_v11 = vsub.f32 %v1793_v0, %v944_v8  ;;  %v941_v27 = vpop.xlane.xlu1 %940 }
 0x5af   : > { %v945_v28 = vsub.f32 %v930_v1, %v941_v27 }
 0x5b0   : > { %v949_v16 = vmul.f32 1.442695, %v946_v11 }
 0x5b1   : > { %v1142_v9 = vpop.xlane.xlu0 %1141  ;;  %v947_v29 = vmul.f32 1.442695, %v945_v28  ;;  %v1484_v28 = vld [vmem:[%s2293_s8 + $0x8] sm:$0xff] }
 0x5b2   : > { %v1146_v10 = vsub.f32 %v1131_v63, %v1142_v9 }
 0x5b4   : > { %v1148_v12 = vmul.f32 1.442695, %v1146_v10 }
 0x5b5   : > { %v1145_v13 = vpop.xlane.xlu0 %1144 }
 0x5b6   : > { %1982 = vpow2.f32 %v1148_v12  ;;  %v1147_v14 = vsub.f32 %v1807_v62, %v1145_v13 }
 0x5b8   : > { %v1150_v17 = vmul.f32 1.442695, %v1147_v14 }
 0x5ba   : > { %1984 = vpow2.f32 %v1150_v17 }
 0x5bb   : > { %1986 = vpow2.f32 %v949_v16 }
 0x5bc   : > { %1988 = vpow2.f32 %v947_v29 }
 0x5c0   : > { %v1983_v19 = vpop.eup %1982 }
 0x5c1   : > { %v1152_v21 = vsel %vm735_vm5, %v1983_v19, 0.0 }
 0x5c2   : > { %1153 = vadd.xlane.f32.xlu1 %v1152_v21 }
 0x5c4   : > { %v1985_v23 = vpop.eup %1984 }
 0x5c5   : > { %v1155_v24 = vsel %vm739_vm4, %v1985_v23, 0.0  ;;  %v1987_v25 = vpop.eup %1986 }
 0x5c6   : > { %1156 = vadd.xlane.f32.xlu0 %v1155_v24  ;;  %v954_v26 = vsel %vm739_vm4, %v1987_v25, 0.0  ;;  %v1989_v30 = vpop.eup %1988 }
 0x5c7   : > { %v951_v31 = vsel %vm735_vm5, %v1989_v30, 0.0 }
 0x5ca   : > { %955 = vadd.xlane.f32.xlu0 %v954_v26 }
 0x5d3   : > { %1947 = vrot.lane.b32.xlu1 %v2160_v18, %s2018_s11 }
 0x5e0   : > { %1952 = vrot.lane.b32.xlu0 %v2160_v18, %s2019_s12  ;;  %s379_s12 = scalar_lea.vmem %s2295_s10, %s2088_s15 }
 0x5f7   : > { %952 = vadd.xlane.f32.xlu1 %v951_v31 }
 0x608   : > { %1957 = vrot.lane.b32.xlu1 %v2160_v18, %s2020_s14 }
 0x60c   : > { %1250 = vrot.lane.b32.xlu1 %v2164_v20, %s2020_s14 }
 0x610   : > { %1252 = vrot.lane.b32.xlu1 %v2170_v22, %s2020_s14 }
 0x64f   : > { %v1154_v32 = vpop.xlane.xlu1 %1153 }
 0x650   : > { %1990 = vrcp.f32 %v1154_v32 }
 0x653   : > { %v1157_v33 = vpop.xlane.xlu0 %1156  ;;  %v1948_v34 = vpop.permute.xlu1 %1947 }
 0x654   : > { %v1950_v35 = vunpack.i.h.bf16 %v1948_v34  ;;  %v1949_v36 = vunpack.i.l.bf16 %v1948_v34 }
 0x656   : > { %v1874_v37 = vpack.c.bf16 %v1950_v35, %v1949_v36 }
 0x657   : > { %v956_v38 = vpop.xlane.xlu0 %955 }
 0x658   : > { %1876 = vmatprep.subr.msk.bf16.mxu1 %vm2185_vm8, %v1874_v37  ;;  %1992 = vrcp.f32 %v956_v38 }
 0x659   : > { %1879 = vmatpush3.bf16.msk.msra.mxu1 %vm2185_vm8, %v1874_v37 }
 0x65a   : > { %v1991_v43 = vpop.eup %1990 }
 0x65b   : > { %v1953_v39 = vpop.permute.xlu0 %1952  ;;  %v1160_v52 = vmul.f32 %v1991_v43, %v1983_v19 }
 0x65c   : > { %v1955_v40 = vunpack.i.h.bf16 %v1953_v39  ;;  %v1954_v41 = vunpack.i.l.bf16 %v1953_v39 }
 0x65e   : > { %v1886_v42 = vpack.c.bf16 %v1955_v40, %v1954_v41 }
 0x660   : > { %1888 = vmatprep.subr.msk.bf16.mxu1 %vm2185_vm8, %v1886_v42 }
 0x662   : > { %v1993_v44 = vpop.eup %1992 }
 0x663   : > { %v960_v50 = vmul.f32 %v1993_v44, %v1987_v25  ;;  %v1693_v44 = vld [vmem:[%s2294_s9] ss:$0 sm:$0xff] }
 0x684   : > { %v953_v20 = vpop.xlane.xlu1 %952 }
 0x685   : > { %1994 = vrcp.f32 %v953_v20 }
 0x686   : > { %1996 = vrcp.f32 %v1157_v33 }
 0x688   : > { %v1958_v22 = vpop.permute.xlu1 %1957 }
 0x689   : > { %v1960_v47 = vunpack.i.h.bf16 %v1958_v22  ;;  %v1959_v48 = vunpack.i.l.bf16 %v1958_v22 }
 0x68b   : > { %v1892_v53 = vpack.c.bf16 %v1960_v47, %v1959_v48 }
 0x68c   : > { %v1251_v55 = vpop.permute.xlu1 %1250 }
 0x68f   : > { %v1995_v46 = vpop.eup %1994 }
 0x690   : > { %v959_v49 = vmul.f32 %v1995_v46, %v1989_v30  ;;  %v1997_v51 = vpop.eup %1996  ;;  %v1253_v56 = vpop.permute.xlu1 %1252  ;;  %v1486_v30 = vld [vmem:[%s2293_s8 + $0x18] sm:$0xff] }
 0x691   : > { %v1161_v54 = vmul.f32 %v1997_v51, %v1985_v23  ;;  %v1908_v31 = vpack.c.bf16 %v1486_v30, %v1485_v45 }
 0x692   : > { %1798 = vmatprep.mubr.msk.f32.mxu1 %vm735_vm5, %v959_v49 }
 0x693   : > { %1799 = vmatmul.mubr.msk.f32.vlgmr.msra.gmra.mrb[6].mxu1 %vm735_vm5, %v960_v50 }
 0x694   : > { %1891 = vmatpush3.bf16.msk.msra.mxu1 %vm2185_vm8, %v1886_v42  ;;  %1812 = vmatprep.mubr.msk.f32.mxu1 %vm735_vm5, %v1160_v52 }
 0x695   : > { %1894 = vmatprep.subr.msk.bf16.mxu1 %vm2156_vm3, %v1892_v53 }
 0x697   : > { %1813 = vmatmul.mubr.msk.f32.vlgmr.msra.gmra.mrb[8].mxu1 %vm735_vm5, %v1161_v54 }
 0x698   : > { %1819 = vmatprep.mubr.msk.f32.mxu1 %vm647_vm2, %v1251_v55 }
 0x69d   : > { %1897 = vmatpush3.bf16.xpose.msk.msra.mxu1 %vm2156_vm3, %v1892_v53 }
 0x6a4   : > { %1820 = vmatmul.mubr.msk.f32.vlgmr.msra.gmra.mrb[10].mxu1 %vm647_vm2, %v1253_v56 }
 0x766   : > { %v1800_v57 = vpop.f32.mrb[6].mxu1 }
 0x767   : > { %v1040_v58 = vpop.f32.mrb[7].mxu1 }
 0x76a   : > { %v1814_v59 = vpop.f32.mrb[8].mxu1 }
 0x76b   : > { %v1241_v62 = vpop.f32.mrb[9].mxu1 }
 0x777   : > { %v1821_v63 = vpop.f32.mrb[10].mxu1 }
 0x778   : > { %v1332_v0 = vpop.f32.mrb[11].mxu1  ;;  %v1344_v1 = vsel %vm739_vm4, %v1821_v63, -inf }
 0x779   : > { %1345 = vmax.xlane.f32.xlu1 %v1344_v1  ;;  %v1341_v2 = vsel %vm735_vm5, %v1332_v0, -inf }
 0x77a   : > { %1342 = vmax.xlane.f32.xlu0 %v1341_v2 }
 0x78a   : > { %1453 = vrot.lane.b32.xlu1 %v1040_v58, %s2021_s16 }
 0x78e   : > { %1455 = vrot.lane.b32.xlu1 %v1800_v57, %s2021_s16 }
 0x792   : > { %1461 = vrot.lane.b32.xlu1 %v1241_v62, %s2022_s17 }
 0x806   : > { %v1346_v15 = vpop.xlane.xlu1 %1345 }
 0x807   : > { %v1348_v5 = vsub.f32 %v1821_v63, %v1346_v15  ;;  %v1343_v6 = vpop.xlane.xlu0 %1342 }
 0x808   : > { %v1347_v7 = vsub.f32 %v1332_v0, %v1343_v6 }
 0x809   : > { %v1351_v8 = vmul.f32 1.442695, %v1348_v5 }
 0x80a   : > { %v1349_v9 = vmul.f32 1.442695, %v1347_v7  ;;  %v1454_v34 = vpop.permute.xlu1 %1453 }
 0x80b   : > { %1998 = vpow2.f32 %v1351_v8  ;;  %v1475_v38 = vsel %vm647_vm2, %v2209_v61, %v1454_v34 }
 0x80c   : > { %2000 = vpow2.f32 %v1349_v9 }
 0x80e   : > { %v1456_v35 = vpop.permute.xlu1 %1455 }
 0x80f   : > { %v1476_v40 = vsel %vm647_vm2, %v2207_v60, %v1456_v35 }
 0x812   : > { %v1462_v37 = vpop.permute.xlu1 %1461 }
 0x813   : > { %v1478_v41 = vsel %vm1477_vm9, %v1475_v38, %v1462_v37 }
 0x815   : > { %v1999_v10 = vpop.eup %1998 }
 0x816   : > { %v1356_v11 = vsel %vm739_vm4, %v1999_v10, 0.0  ;;  %v2001_v12 = vpop.eup %2000 }
 0x817   : > { %1357 = vadd.xlane.f32.xlu0 %v1356_v11  ;;  %v1353_v13 = vsel %vm735_vm5, %v2001_v12, 0.0 }
 0x81b   : > { %1354 = vadd.xlane.f32.xlu0 %v1353_v13 }
 0x831   : > { %1962 = vrot.lane.b32.xlu0 %v2160_v18, %s2023_s18  ;;  %v1483_v18 = vld [vmem:[%s2293_s8] sm:$0xff] }
 0x832   : > { %v1904_v29 = vpack.c.bf16 %v1484_v28, %v1483_v18 }
 0x835   : > { %1463 = vrot.lane.b32.xlu0 %v1814_v59, %s2022_s17 }
 0x8a4   : > { %v1358_v14 = vpop.xlane.xlu0 %1357 }
 0x8a5   : > { %2002 = vrcp.f32 %v1358_v14 }
 0x8a8   : > { %v1355_v16 = vpop.xlane.xlu0 %1354 }
 0x8a9   : > { %2004 = vrcp.f32 %v1355_v16 }
 0x8ac   : > { %v1963_v17 = vpop.permute.xlu0 %1962 }
 0x8ad   : > { %v1965_v19 = vunpack.i.h.bf16 %v1963_v17  ;;  %v1964_v21 = vunpack.i.l.bf16 %v1963_v17 }
 0x8af   : > { %v1898_v23 = vpack.c.bf16 %v1965_v19, %v1964_v21  ;;  %v2003_v24 = vpop.eup %2002 }
 0x8b0   : > { %v1362_v27 = vmul.f32 %v2003_v24, %v1999_v10  ;;  %v1464_v36 = vpop.permute.xlu0 %1463 }
 0x8b1   : > { %1900 = vmatprep.subr.msk.bf16.mxu0 %vm2185_vm8, %v1898_v23  ;;  %v1479_v20 = vsel %vm1477_vm9, %v1476_v40, %v1464_v36 }
 0x8b2   : > { %1903 = vmatpush3.bf16.msk.msra.mxu0 %vm2185_vm8, %v1898_v23 }
 0x8b3   : > { %v2005_v25 = vpop.eup %2004  ;;  %1905 = vmatprep.subr.bf16.mxu0 %v1904_v29 }
 0x8b4   : > { %v1361_v26 = vmul.f32 %v2005_v25, %v2001_v12 }
 0x8b6   : > { %1826 = vmatprep.mubr.msk.f32.mxu0 %vm735_vm5, %v1361_v26 }
 0x8b7   : > { %1827 = vmatmul.mubr.msk.f32.vlgmr.msra.gmra.mrb[6].mxu0 %vm735_vm5, %v1362_v27 }
 0x8b8   : > { %1907 = vmatpush3.bf16.msra.mxu0 %v1904_v29 }
 0x8b9   : > { %1909 = vmatprep.subr.bf16.mxu0 %v1908_v31 }
 0x8bc   : > { %1911 = vmatpush3.bf16.msra.mxu0 %v1908_v31 }
 0x98a   : > { %v1828_v32 = vpop.f32.mrb[6].mxu0 }
 0x98b   : > { %1471 = vrot.lane.b32.xlu0 %v1828_v32, %s2024_s27  ;;  %v1442_v33 = vpop.f32.mrb[7].mxu0 }
 0x98c   : > { %1469 = vrot.lane.b32.xlu1 %v1442_v33, %s2024_s27 }
 0x9fd   : > { %v1472_v39 = vpop.permute.xlu0 %1471 }
 0x9fe   : > { %v1470_v42 = vpop.permute.xlu1 %1469  ;;  %v1482_v43 = vsel %vm1480_vm10, %v1479_v20, %v1472_v39 }
 0x9ff   : > { %v1481_v22 = vsel %vm1480_vm10, %v1478_v41, %v1470_v42 }
 0xa00   : > { %1837 = vmatprep.mubr.msk.f32.mxu0 %vm384_vm0, %v1481_v22 }
 0xa01   : > { %1838 = vmatmul.mubr.msk.f32.vlgmr.msra.gmra.mrb[8].mxu0 %vm384_vm0, %v1482_v43 }
 0xad4   : > { %v1839_v46 = vpop.f32.mrb[8].mxu0 }
 0xad5   : > { %v1572_v47 = vadd.f32 %v1839_v46, %v1693_v44  ;;  %v1566_v61 = vpop.f32.mrb[9].mxu0 }
 0xad6   : > { %v1567_v60 = vadd.f32 %v1693_v44, %v1566_v61 }
 0xad7   : > { %v1576_v48 = vadd.f32 %v1572_v47, %v2101_v4 }
 0xad8   : > { %v1575_v49 = vadd.f32 %v1567_v60, %v2099_v3 }
 0xad9   : > { %1578 = vst.msk [vmem:[%s379_s12 + $0x8] sm:$0x1] %vm388_vm1, %v1576_v48 }
 0xada   : > { %1577 = vst.msk [vmem:[%s379_s12] sm:$0xff] %vm384_vm0, %v1575_v49 }
 0xadb PF: > { %s20_s13 = sadd.s32 1, %s2012_s13  }
 0xadc   : > { %p17_p4 = scmp.ge.s32.totalorder %s20_s13, 4  }
 0xade   :  { %19 = sbr.rel (!%p17_p4) target bundleno = 1 (0x1), region = 93 }

</bundles_post_ra>
